<compile_context>
chip_gen: v7x
topology: tpu7x:2x2x1
jax: 0.10.0
libtpu: 0.0.40
codegen_flags: <defaults>
</compile_context>

<pallas_src>
import math
from functools import partial

import jax
import jax.numpy as jnp
from jax.experimental import pallas as pl
from jax.experimental.pallas import tpu as pltpu


_VMEM_LIMIT = 32 * 1024 * 1024   # far above the <1 MiB working set; valid on v5e/v6e/v7x
_SQRT_2_OVER_PI = 0.7978845608028654
_LN_EPS = 1e-6


def _gelu_tanh(y):
    return 0.5 * y * (1.0 + jnp.tanh(_SQRT_2_OVER_PI * (y + 0.044715 * y * y * y)))


def _layernorm_f32(x, g, b, eps):
    mu = jnp.mean(x, axis=-1, keepdims=True)
    xc = x - mu
    var = jnp.mean(xc * xc, axis=-1, keepdims=True)
    return xc * jax.lax.rsqrt(var + eps) * g + b


def _cparams(dims):
    return pltpu.CompilerParams(dimension_semantics=dims,
                                vmem_limit_bytes=_VMEM_LIMIT)


# ----------------------------------------------------------------------------
# Fused attention block kernel:  query + [gamma *] MHA(LN(query), LN(feat), LN(feat))
# ----------------------------------------------------------------------------
def _fused_attn_kernel(*refs, num_heads, eps, use_gamma, approx_recip):
    if use_gamma:
        (q_ref, f_ref, qg_ref, qb_ref, fg_ref, fb_ref,
         wq_ref, bq_ref, wkv_ref, bkv_ref, wo_ref, bo_ref, gamma_ref,
         o_ref, o_sc) = refs
    else:
        (q_ref, f_ref, qg_ref, qb_ref, fg_ref, fb_ref,
         wq_ref, bq_ref, wkv_ref, bkv_ref, wo_ref, bo_ref,
         o_ref, o_sc) = refs
        gamma_ref = None

    cd = wq_ref.dtype
    x = q_ref[0].astype(jnp.float32)      # (Nq, D)  residual stream
    f = f_ref[0].astype(jnp.float32)      # (Nk, D)

    xn = _layernorm_f32(x, qg_ref[...], qb_ref[...], eps)
    fn = _layernorm_f32(f, fg_ref[...], fb_ref[...], eps)

    # Q projection (1/sqrt(hd) pre-folded into wq/bq) and fused K|V projection.
    q = jnp.dot(xn.astype(cd), wq_ref[...],
                preferred_element_type=jnp.float32) + bq_ref[...]          # (Nq, D)
    kv = jnp.dot(fn.astype(cd), wkv_ref[...],
                 preferred_element_type=jnp.float32) + bkv_ref[...]        # (Nk, 2D)

    D = q.shape[-1]
    hd = D // num_heads
    # Unrolled per-head attention; whole KV is resident, single-pass softmax.
    for h in range(num_heads):
        qh = q[:, h * hd:(h + 1) * hd].astype(cd)            # (Nq, hd)
        kh = kv[:, h * hd:(h + 1) * hd].astype(cd)            # (Nk, hd)
        vh = kv[:, D + h * hd:D + (h + 1) * hd].astype(cd)    # (Nk, hd)
        s = jnp.einsum("qd,kd->qk", qh, kh,
                       preferred_element_type=jnp.float32)    # (Nq, Nk)
        m = s.max(axis=-1, keepdims=True)
        p = jnp.exp(s - m)
        l = p.sum(axis=-1, keepdims=True)
        oh = jnp.dot(p.astype(cd), vh, preferred_element_type=jnp.float32)
        inv_l = pl.reciprocal(l, approx=approx_recip)
        o_sc[:, h * hd:(h + 1) * hd] = oh * inv_l             # heads re-packed in VMEM

    # Output projection + optional gamma + residual, all in f32.
    z = jnp.dot(o_sc[...].astype(cd), wo_ref[...],
                preferred_element_type=jnp.float32) + bo_ref[...]
    if use_gamma:
        z = gamma_ref[...] * z
    o_ref[0] = (x + z).astype(o_ref.dtype)


def fused_attention_block(query, feat, p, num_heads, approx_recip):
    B, Nq, D = query.shape
    Nk = feat.shape[1]
    assert D % num_heads == 0
    use_gamma = p.get("gamma") is not None

    const2 = lambda b: (0, 0)
    operands = [query, feat,
                p["q_ln_g"], p["q_ln_b"], p["f_ln_g"], p["f_ln_b"],
                p["wq"], p["bq"], p["wkv"], p["bkv"], p["wo"], p["bo"]]
    in_specs = [
        pl.BlockSpec((1, Nq, D), lambda b: (b, 0, 0)),
        pl.BlockSpec((1, Nk, D), lambda b: (b, 0, 0)),
        pl.BlockSpec((1, D), const2), pl.BlockSpec((1, D), const2),
        pl.BlockSpec((1, D), const2), pl.BlockSpec((1, D), const2),
        pl.BlockSpec((D, D), const2), pl.BlockSpec((1, D), const2),
        pl.BlockSpec((D, 2 * D), const2), pl.BlockSpec((1, 2 * D), const2),
        pl.BlockSpec((D, D), const2), pl.BlockSpec((1, D), const2),
    ]
    if use_gamma:
        operands.append(p["gamma"])
        in_specs.append(pl.BlockSpec((1, D), const2))

    w_item = jnp.dtype(p["wq"].dtype).itemsize
    cost = pl.CostEstimate(
        flops=int(B * (4 * Nq * D * D + 4 * Nk * D * D + 4 * num_heads * Nq * Nk * (D // num_heads))),
        transcendentals=int(B * num_heads * Nq * Nk),
        bytes_accessed=int((2 * query.size + feat.size) * 4 + 4 * D * D * w_item))

    return pl.pallas_call(
        partial(_fused_attn_kernel, num_heads=num_heads, eps=_LN_EPS,
                use_gamma=use_gamma, approx_recip=approx_recip),
        out_shape=jax.ShapeDtypeStruct((B, Nq, D), jnp.float32),
        grid=(B,),
        in_specs=in_specs,
        out_specs=pl.BlockSpec((1, Nq, D), lambda b: (b, 0, 0)),
        scratch_shapes=[pltpu.VMEM((Nq, D), jnp.float32)],   # head-packed attention out
        compiler_params=_cparams(("parallel",)),
        cost_estimate=cost,
    )(*operands)


# ----------------------------------------------------------------------------
# Example external block: fused residual MLP  x + W2 @ gelu(W1 @ x)
# ----------------------------------------------------------------------------
def _mlp_block_kernel(x_ref, w1_ref, b1_ref, w2_ref, b2_ref, o_ref):
    cd = w1_ref.dtype
    x = x_ref[0].astype(jnp.float32)
    h = jnp.dot(x.astype(cd), w1_ref[...],
                preferred_element_type=jnp.float32) + b1_ref[...]
    h = _gelu_tanh(h)
    y = jnp.dot(h.astype(cd), w2_ref[...],
                preferred_element_type=jnp.float32) + b2_ref[...]
    o_ref[0] = (x + y).astype(o_ref.dtype)


def make_pallas_mlp_block(bp):
    def blk(x):
        B, N, D = x.shape
        Dh = bp["w1"].shape[1]
        const2 = lambda b: (0, 0)
        w_item = jnp.dtype(bp["w1"].dtype).itemsize
        cost = pl.CostEstimate(flops=int(4 * B * N * D * Dh),
                               transcendentals=int(B * N * Dh),
                               bytes_accessed=int(2 * x.size * 4 + 2 * D * Dh * w_item))
        return pl.pallas_call(
            _mlp_block_kernel,
            out_shape=jax.ShapeDtypeStruct((B, N, D), jnp.float32),
            grid=(B,),
            in_specs=[
                pl.BlockSpec((1, N, D), lambda b: (b, 0, 0)),
                pl.BlockSpec((D, Dh), const2), pl.BlockSpec((1, Dh), const2),
                pl.BlockSpec((Dh, D), const2), pl.BlockSpec((1, D), const2),
            ],
            out_specs=pl.BlockSpec((1, N, D), lambda b: (b, 0, 0)),
            compiler_params=_cparams(("parallel",)),
            cost_estimate=cost,
        )(x, bp["w1"], bp["b1"], bp["w2"], bp["b2"])
    return blk


# ----------------------------------------------------------------------------
# Forward + parameter preparation (casts / concat / scale folding hoisted here)
# ----------------------------------------------------------------------------
def interaction_block_forward(x, c, prep_attn, blocks, num_heads, approx_recip):
    # Injector: x = x + gamma * attn(LN(x), LN(c), LN(c))
    x = fused_attention_block(x, c, prep_attn["injector"], num_heads, approx_recip)
    for blk in blocks:
        x = blk(x)
    # Extractor: c = c + attn(LN(c), LN(x), LN(x))
    c = fused_attention_block(c, x, prep_attn["extractor"], num_heads, approx_recip)
    return x, c


def _prepare_attn(p, num_heads, compute_dtype, with_gamma):
    D = p["wq"].shape[0]
    scale = 1.0 / math.sqrt(D // num_heads)
    out = {
        "q_ln_g": p["q_ln_g"].reshape(1, D).astype(jnp.float32),
        "q_ln_b": p["q_ln_b"].reshape(1, D).astype(jnp.float32),
        "f_ln_g": p["f_ln_g"].reshape(1, D).astype(jnp.float32),
        "f_ln_b": p["f_ln_b"].reshape(1, D).astype(jnp.float32),
        "wq": (p["wq"] * scale).astype(compute_dtype),          # 1/sqrt(hd) folded in
        "bq": (p["bq"] * scale).reshape(1, D).astype(jnp.float32),
        "wkv": jnp.concatenate([p["wk"], p["wv"]], axis=1).astype(compute_dtype),
        "bkv": jnp.concatenate([p["bk"], p["bv"]], axis=0).reshape(1, 2 * D).astype(jnp.float32),
        "wo": p["wo"].astype(compute_dtype),
        "bo": p["bo"].reshape(1, D).astype(jnp.float32),
        "gamma": p["gamma"].reshape(1, D).astype(jnp.float32) if with_gamma else None,
    }
    return out


def prepare_params(params, num_heads, compute_dtype):
    return {
        "injector": _prepare_attn(params["injector"], num_heads, compute_dtype, True),
        "extractor": _prepare_attn(params["extractor"], num_heads, compute_dtype, False),
        "blocks": [
            {"w1": bp["w1"].astype(compute_dtype),
             "b1": bp["b1"].reshape(1, -1).astype(jnp.float32),
             "w2": bp["w2"].astype(compute_dtype),
             "b2": bp["b2"].reshape(1, -1).astype(jnp.float32)}
            for bp in params["blocks"]],
    }


# ----------------------------------------------------------------------------
# Deterministic synthetic parameters
# ----------------------------------------------------------------------------
def make_params(key, dim, num_heads, num_blocks=2, init_values=0.1):
    keys = iter(jax.random.split(key, 64))

    def lin(cin, cout):
        w = jax.random.normal(next(keys), (cin, cout), jnp.float32) / math.sqrt(cin)
        b = 0.02 * jax.random.normal(next(keys), (cout,), jnp.float32)
        return w, b

    def ln(c):
        g = 1.0 + 0.05 * jax.random.normal(next(keys), (c,), jnp.float32)
        b = 0.05 * jax.random.normal(next(keys), (c,), jnp.float32)
        return g, b

    def attn_params():
        p = {}
        p["q_ln_g"], p["q_ln_b"] = ln(dim)
        p["f_ln_g"], p["f_ln_b"] = ln(dim)
        p["wq"], p["bq"] = lin(dim, dim)
        p["wk"], p["bk"] = lin(dim, dim)
        p["wv"], p["bv"] = lin(dim, dim)
        p["wo"], p["bo"] = lin(dim, dim)
        return p

    params = {"injector": attn_params(), "extractor": attn_params()}
    # PyTorch init is gamma = init_values * ones(dim); 0.1 so the path is exercised.
    params["injector"]["gamma"] = init_values * jnp.ones((dim,), jnp.float32)

    blocks = []
    for _ in range(num_blocks):
        w1, b1 = lin(dim, 4 * dim)
        w2, b2 = lin(4 * dim, dim)
        blocks.append({"w1": w1, "b1": b1, "w2": w2, "b2": b2})
    params["blocks"] = blocks
    return params


# ----------------------------------------------------------------------------
# Pure-JAX reference (for correctness checking)
# ----------------------------------------------------------------------------
def reference_forward(x, c, params, num_heads):
    def lnorm(t, g, b):
        mu = t.mean(-1, keepdims=True)
        var = ((t - mu) ** 2).mean(-1, keepdims=True)
        return (t - mu) / jnp.sqrt(var + 1e-6) * g + b

    def mha(q_in, kv_in, p):
        B, Nq, D = q_in.shape
        Nk = kv_in.shape[1]
        hd = D // num_heads
        q = q_in @ p["wq"] + p["bq"]
        k = kv_in @ p["wk"] + p["bk"]
        v = kv_in @ p["wv"] + p["bv"]

        def heads(t, n):
            return t.reshape(B, n, num_heads, hd).transpose(0, 2, 1, 3)

        s = jnp.einsum("bhqd,bhkd->bhqk", heads(q, Nq), heads(k, Nk)) / math.sqrt(hd)
        a = jax.nn.softmax(s, axis=-1)
        o = jnp.einsum("bhqk,bhkd->bhqd", a, heads(v, Nk))
        o = o.transpose(0, 2, 1, 3).reshape(B, Nq, D)
        return o @ p["wo"] + p["bo"]

    def attn_block(query, feat, p, gamma):
        a = mha(lnorm(query, p["q_ln_g"], p["q_ln_b"]),
                lnorm(feat, p["f_ln_g"], p["f_ln_b"]), p)
        return query + (gamma * a if gamma is not None else a)

    x = attn_block(x, c, params["injector"], params["injector"]["gamma"])
    for bp in params["blocks"]:
        h = _gelu_tanh(x @ bp["w1"] + bp["b1"])
        x = x + h @ bp["w2"] + bp["b2"]
    c = attn_block(c, x, params["extractor"], None)
    return x, c


# ----------------------------------------------------------------------------
if __name__ == "__main__":
    dim, num_heads = 64, 4
    B, Nx, Nc = 2, 32, 96   # x: query tokens, c: spatial-prior tokens

    key = jax.random.PRNGKey(0)
    kx, kc, kp = jax.random.split(key, 3)
    x = jax.random.normal(kx, (B, Nx, dim), jnp.float32)
    c = jax.random.normal(kc, (B, Nc, dim), jnp.float32)
    params = make_params(kp, dim, num_heads, num_blocks=2)

    # One-time parameter preparation (casts / concat / scale folding hoisted here).
    prep_f32 = prepare_params(params, num_heads, jnp.float32)
    prep_bf16 = prepare_params(params, num_heads, jnp.bfloat16)
    blocks_f32 = tuple(make_pallas_mlp_block(bp) for bp in prep_f32["blocks"])
    blocks_bf16 = tuple(make_pallas_mlp_block(bp) for bp in prep_bf16["blocks"])

    attn_f32 = {"injector": prep_f32["injector"], "extractor": prep_f32["extractor"]}
    attn_bf16 = {"injector": prep_bf16["injector"], "extractor": prep_bf16["extractor"]}

    fwd_f32 = jax.jit(lambda xx, cc, pp: interaction_block_forward(
        xx, cc, pp, blocks_f32, num_heads, approx_recip=False))
    fwd_bf16 = jax.jit(lambda xx, cc, pp: interaction_block_forward(
        xx, cc, pp, blocks_bf16, num_heads, approx_recip=True))

    x32, c32 = fwd_f32(x, c, attn_f32)
    jax.block_until_ready((x32, c32))
    xb16, cb16 = fwd_bf16(x, c, attn_bf16)
    jax.block_until_ready((xb16, cb16))

    xr, cr = reference_forward(x, c, params, num_heads)

    # Tight check on the f32 path (exact semantics), loose check on the bf16-MXU path.
    checks = (
        ("x_f32", x32, xr, 1e-3),
        ("c_f32", c32, cr, 1e-3),
        ("x_bf16", xb16, xr, 1.5e-1),
        ("c_bf16", cb16, cr, 1.5e-1),
    )
    for name, got, ref, tol in checks:
        assert got.shape == ref.shape, (name, got.shape, ref.shape)
        err = float(jnp.max(jnp.abs(got - ref)))
        assert err < tol, f"{name}: max abs err {err} >= {tol}"

    print("KERNEL_OK")
</pallas_src>

<mosaic_0001>
module attributes {stable_mosaic.version = 11 : i64} {
  func.func @_mlp_block_kernel(%arg0: i32, %arg1: memref<1x32x64xf32, #tpu.memory_space<vmem>>, %arg2: memref<64x256xf32, #tpu.memory_space<vmem>>, %arg3: memref<1x256xf32, #tpu.memory_space<vmem>>, %arg4: memref<256x64xf32, #tpu.memory_space<vmem>>, %arg5: memref<1x64xf32, #tpu.memory_space<vmem>>, %arg6: memref<1x32x64xf32, #tpu.memory_space<vmem>>) attributes {dimension_semantics = [#tpu.dimension_semantics<parallel>], iteration_bounds = array<i64: 2>, scalar_prefetch = 0 : i64, scratch_operands = 0 : i64, tpu.core_type = #tpu.core_type<tc>, window_params = [{transform_indices = @transform_0, window_bounds = array<i64: 1, 32, 64>}, {pipeline_mode = #tpu.pipeline_mode<synchronous>, transform_indices = @transform_1, window_bounds = array<i64: 64, 256>}, {pipeline_mode = #tpu.pipeline_mode<synchronous>, transform_indices = @transform_2, window_bounds = array<i64: 1, 256>}, {pipeline_mode = #tpu.pipeline_mode<synchronous>, transform_indices = @transform_3, window_bounds = array<i64: 256, 64>}, {pipeline_mode = #tpu.pipeline_mode<synchronous>, transform_indices = @transform_4, window_bounds = array<i64: 1, 64>}, {transform_indices = @transform_5, window_bounds = array<i64: 1, 32, 64>}]} {
    %c0 = arith.constant 0 : index
    %c0_0 = arith.constant 0 : index
    %c0_1 = arith.constant 0 : index
    %0 = vector.load %arg1[%c0, %c0_0, %c0_1] : memref<1x32x64xf32, #tpu.memory_space<vmem>>, vector<1x32x64xf32>
    %1 = vector.shape_cast %0 : vector<1x32x64xf32> to vector<32x64xf32>
    %c0_2 = arith.constant 0 : index
    %c0_3 = arith.constant 0 : index
    %2 = vector.load %arg2[%c0_2, %c0_3] : memref<64x256xf32, #tpu.memory_space<vmem>>, vector<64x256xf32>
    %cst = arith.constant dense<0.000000e+00> : vector<32x256xf32>
    %3 = tpu.matmul %1, %2, %cst {dimension_numbers = #tpu.dot_dimension_numbers<[1], [0], [0], [1], [0, 0, 1, 1], [], []>} : vector<32x64xf32>, vector<64x256xf32>, vector<32x256xf32> -> vector<32x256xf32>
    %c0_4 = arith.constant 0 : index
    %c0_5 = arith.constant 0 : index
    %4 = vector.load %arg3[%c0_4, %c0_5] : memref<1x256xf32, #tpu.memory_space<vmem>>, vector<1x256xf32>
    %5 = vector.broadcast %4 : vector<1x256xf32> to vector<32x256xf32>
    %6 = arith.addf %3, %5 : vector<32x256xf32>
    %cst_6 = arith.constant 5.000000e-01 : f32
    %7 = vector.broadcast %cst_6 : f32 to vector<32x256xf32>
    %8 = arith.mulf %7, %6 : vector<32x256xf32>
    %cst_7 = arith.constant 4.471500e-02 : f32
    %9 = vector.broadcast %cst_7 : f32 to vector<32x256xf32>
    %10 = arith.mulf %9, %6 : vector<32x256xf32>
    %11 = arith.mulf %10, %6 : vector<32x256xf32>
    %12 = arith.mulf %11, %6 : vector<32x256xf32>
    %13 = arith.addf %6, %12 : vector<32x256xf32>
    %cst_8 = arith.constant 0.797884583 : f32
    %14 = vector.broadcast %cst_8 : f32 to vector<32x256xf32>
    %15 = arith.mulf %14, %13 : vector<32x256xf32>
    %16 = math.tanh %15 : vector<32x256xf32>
    %cst_9 = arith.constant 1.000000e+00 : f32
    %17 = vector.broadcast %cst_9 : f32 to vector<32x256xf32>
    %18 = arith.addf %17, %16 : vector<32x256xf32>
    %19 = arith.mulf %8, %18 : vector<32x256xf32>
    %c0_10 = arith.constant 0 : index
    %c0_11 = arith.constant 0 : index
    %20 = vector.load %arg4[%c0_10, %c0_11] : memref<256x64xf32, #tpu.memory_space<vmem>>, vector<256x64xf32>
    %cst_12 = arith.constant dense<0.000000e+00> : vector<32x64xf32>
    %21 = tpu.matmul %19, %20, %cst_12 {dimension_numbers = #tpu.dot_dimension_numbers<[1], [0], [0], [1], [0, 0, 1, 1], [], []>} : vector<32x256xf32>, vector<256x64xf32>, vector<32x64xf32> -> vector<32x64xf32>
    %c0_13 = arith.constant 0 : index
    %c0_14 = arith.constant 0 : index
    %22 = vector.load %arg5[%c0_13, %c0_14] : memref<1x64xf32, #tpu.memory_space<vmem>>, vector<1x64xf32>
    %23 = vector.broadcast %22 : vector<1x64xf32> to vector<32x64xf32>
    %24 = arith.addf %21, %23 : vector<32x64xf32>
    %25 = arith.addf %1, %24 : vector<32x64xf32>
    %c0_15 = arith.constant 0 : index
    %c0_16 = arith.constant 0 : index
    %c0_17 = arith.constant 0 : index
    %26 = vector.load %arg6[%c0_15, %c0_16, %c0_17] : memref<1x32x64xf32, #tpu.memory_space<vmem>>, vector<1x32x64xf32>
    %27 = vector.shape_cast %26 : vector<1x32x64xf32> to vector<32x64xf32>
    %28 = vector.shape_cast %25 : vector<32x64xf32> to vector<1x32x64xf32>
    tpu.vector_store %arg6[%c0_15, %c0_16, %c0_17], %28 {strides = array<i32>} : memref<1x32x64xf32, #tpu.memory_space<vmem>>, vector<1x32x64xf32>,
    return
  }
  func.func @transform_0(%arg0: i32) -> (i32, i32, i32) {
    %c0_i32 = arith.constant 0 : i32
    %c0_i32_0 = arith.constant 0 : i32
    %c0_i32_1 = arith.constant 0 : i32
    return %arg0, %c0_i32, %c0_i32_0 : i32, i32, i32
  }
  func.func @transform_1(%arg0: i32) -> (i32, i32) {
    %c0_i32 = arith.constant 0 : i32
    %c0_i32_0 = arith.constant 0 : i32
    %c0_i32_1 = arith.constant 0 : i32
    return %c0_i32, %c0_i32_0 : i32, i32
  }
  func.func @transform_2(%arg0: i32) -> (i32, i32) {
    %c0_i32 = arith.constant 0 : i32
    %c0_i32_0 = arith.constant 0 : i32
    %c0_i32_1 = arith.constant 0 : i32
    return %c0_i32, %c0_i32_0 : i32, i32
  }
  func.func @transform_3(%arg0: i32) -> (i32, i32) {
    %c0_i32 = arith.constant 0 : i32
    %c0_i32_0 = arith.constant 0 : i32
    %c0_i32_1 = arith.constant 0 : i32
    return %c0_i32, %c0_i32_0 : i32, i32
  }
  func.func @transform_4(%arg0: i32) -> (i32, i32) {
    %c0_i32 = arith.constant 0 : i32
    %c0_i32_0 = arith.constant 0 : i32
    %c0_i32_1 = arith.constant 0 : i32
    return %c0_i32, %c0_i32_0 : i32, i32
  }
  func.func @transform_5(%arg0: i32) -> (i32, i32, i32) {
    %c0_i32 = arith.constant 0 : i32
    %c0_i32_0 = arith.constant 0 : i32
    %c0_i32_1 = arith.constant 0 : i32
    return %arg0, %c0_i32, %c0_i32_0 : i32, i32, i32
  }
}

module attributes {stable_mosaic.version = 11 : i64} {
  func.func @_fused_attn_kernel(%arg0: i32, %arg1: memref<1x32x64xf32, #tpu.memory_space<vmem>>, %arg2: memref<1x96x64xf32, #tpu.memory_space<vmem>>, %arg3: memref<1x64xf32, #tpu.memory_space<vmem>>, %arg4: memref<1x64xf32, #tpu.memory_space<vmem>>, %arg5: memref<1x64xf32, #tpu.memory_space<vmem>>, %arg6: memref<1x64xf32, #tpu.memory_space<vmem>>, %arg7: memref<64x64xf32, #tpu.memory_space<vmem>>, %arg8: memref<1x64xf32, #tpu.memory_space<vmem>>, %arg9: memref<64x128xf32, #tpu.memory_space<vmem>>, %arg10: memref<1x128xf32, #tpu.memory_space<vmem>>, %arg11: memref<64x64xf32, #tpu.memory_space<vmem>>, %arg12: memref<1x64xf32, #tpu.memory_space<vmem>>, %arg13: memref<1x64xf32, #tpu.memory_space<vmem>>, %arg14: memref<1x32x64xf32, #tpu.memory_space<vmem>>, %arg15: memref<32x64xf32, #tpu.memory_space<vmem>>) attributes {dimension_semantics = [#tpu.dimension_semantics<parallel>], iteration_bounds = array<i64: 2>, scalar_prefetch = 0 : i64, scratch_operands = 1 : i64, tpu.core_type = #tpu.core_type<tc>, window_params = [{transform_indices = @transform_0, window_bounds = array<i64: 1, 32, 64>}, {transform_indices = @transform_1, window_bounds = array<i64: 1, 96, 64>}, {pipeline_mode = #tpu.pipeline_mode<synchronous>, transform_indices = @transform_2, window_bounds = array<i64: 1, 64>}, {pipeline_mode = #tpu.pipeline_mode<synchronous>, transform_indices = @transform_3, window_bounds = array<i64: 1, 64>}, {pipeline_mode = #tpu.pipeline_mode<synchronous>, transform_indices = @transform_4, window_bounds = array<i64: 1, 64>}, {pipeline_mode = #tpu.pipeline_mode<synchronous>, transform_indices = @transform_5, window_bounds = array<i64: 1, 64>}, {pipeline_mode = #tpu.pipeline_mode<synchronous>, transform_indices = @transform_6, window_bounds = array<i64: 64, 64>}, {pipeline_mode = #tpu.pipeline_mode<synchronous>, transform_indices = @transform_7, window_bounds = array<i64: 1, 64>}, {pipeline_mode = #tpu.pipeline_mode<synchronous>, transform_indices = @transform_8, window_bounds = array<i64: 64, 128>}, {pipeline_mode = #tpu.pipeline_mode<synchronous>, transform_indices = @transform_9, window_bounds = array<i64: 1, 128>}, {pipeline_mode = #tpu.pipeline_mode<synchronous>, transform_indices = @transform_10, window_bounds = array<i64: 64, 64>}, {pipeline_mode = #tpu.pipeline_mode<synchronous>, transform_indices = @transform_11, window_bounds = array<i64: 1, 64>}, {pipeline_mode = #tpu.pipeline_mode<synchronous>, transform_indices = @transform_12, window_bounds = array<i64: 1, 64>}, {transform_indices = @transform_13, window_bounds = array<i64: 1, 32, 64>}]} {
    %c0 = arith.constant 0 : index
    %c0_0 = arith.constant 0 : index
    %c0_1 = arith.constant 0 : index
    %0 = vector.load %arg1[%c0, %c0_0, %c0_1] : memref<1x32x64xf32, #tpu.memory_space<vmem>>, vector<1x32x64xf32>
    %1 = vector.shape_cast %0 : vector<1x32x64xf32> to vector<32x64xf32>
    %c0_2 = arith.constant 0 : index
    %c0_3 = arith.constant 0 : index
    %c0_4 = arith.constant 0 : index
    %2 = vector.load %arg2[%c0_2, %c0_3, %c0_4] : memref<1x96x64xf32, #tpu.memory_space<vmem>>, vector<1x96x64xf32>
    %3 = vector.shape_cast %2 : vector<1x96x64xf32> to vector<96x64xf32>
    %c0_5 = arith.constant 0 : index
    %c0_6 = arith.constant 0 : index
    %4 = vector.load %arg3[%c0_5, %c0_6] : memref<1x64xf32, #tpu.memory_space<vmem>>, vector<1x64xf32>
    %c0_7 = arith.constant 0 : index
    %c0_8 = arith.constant 0 : index
    %5 = vector.load %arg4[%c0_7, %c0_8] : memref<1x64xf32, #tpu.memory_space<vmem>>, vector<1x64xf32>
    %cst = arith.constant dense<0.000000e+00> : vector<32xf32>
    %6 = vector.multi_reduction <add>, %1, %cst [1] : vector<32x64xf32> to vector<32xf32>
    %7 = vector.shape_cast %6 : vector<32xf32> to vector<32x1xf32>
    %cst_9 = arith.constant 6.400000e+01 : f32
    %8 = vector.broadcast %cst_9 : f32 to vector<32x1xf32>
    %9 = arith.divf %7, %8 : vector<32x1xf32>
    %10 = vector.broadcast %9 : vector<32x1xf32> to vector<32x64xf32>
    %11 = arith.subf %1, %10 : vector<32x64xf32>
    %12 = arith.mulf %11, %11 : vector<32x64xf32>
    %cst_10 = arith.constant dense<0.000000e+00> : vector<32xf32>
    %13 = vector.multi_reduction <add>, %12, %cst_10 [1] : vector<32x64xf32> to vector<32xf32>
    %14 = vector.shape_cast %13 : vector<32xf32> to vector<32x1xf32>
    %cst_11 = arith.constant 6.400000e+01 : f32
    %15 = vector.broadcast %cst_11 : f32 to vector<32x1xf32>
    %16 = arith.divf %14, %15 : vector<32x1xf32>
    %cst_12 = arith.constant 9.99999997E-7 : f32
    %17 = vector.broadcast %cst_12 : f32 to vector<32x1xf32>
    %18 = arith.addf %16, %17 : vector<32x1xf32>
    %19 = math.rsqrt %18 : vector<32x1xf32>
    %20 = vector.broadcast %19 : vector<32x1xf32> to vector<32x64xf32>
    %21 = arith.mulf %11, %20 : vector<32x64xf32>
    %22 = vector.broadcast %4 : vector<1x64xf32> to vector<32x64xf32>
    %23 = arith.mulf %21, %22 : vector<32x64xf32>
    %24 = vector.broadcast %5 : vector<1x64xf32> to vector<32x64xf32>
    %25 = arith.addf %23, %24 : vector<32x64xf32>
    %c0_13 = arith.constant 0 : index
    %c0_14 = arith.constant 0 : index
    %26 = vector.load %arg5[%c0_13, %c0_14] : memref<1x64xf32, #tpu.memory_space<vmem>>, vector<1x64xf32>
    %c0_15 = arith.constant 0 : index
    %c0_16 = arith.constant 0 : index
    %27 = vector.load %arg6[%c0_15, %c0_16] : memref<1x64xf32, #tpu.memory_space<vmem>>, vector<1x64xf32>
    %cst_17 = arith.constant dense<0.000000e+00> : vector<96xf32>
    %28 = vector.multi_reduction <add>, %3, %cst_17 [1] : vector<96x64xf32> to vector<96xf32>
    %29 = vector.shape_cast %28 : vector<96xf32> to vector<96x1xf32>
    %cst_18 = arith.constant 6.400000e+01 : f32
    %30 = vector.broadcast %cst_18 : f32 to vector<96x1xf32>
    %31 = arith.divf %29, %30 : vector<96x1xf32>
    %32 = vector.broadcast %31 : vector<96x1xf32> to vector<96x64xf32>
    %33 = arith.subf %3, %32 : vector<96x64xf32>
    %34 = arith.mulf %33, %33 : vector<96x64xf32>
    %cst_19 = arith.constant dense<0.000000e+00> : vector<96xf32>
    %35 = vector.multi_reduction <add>, %34, %cst_19 [1] : vector<96x64xf32> to vector<96xf32>
    %36 = vector.shape_cast %35 : vector<96xf32> to vector<96x1xf32>
    %cst_20 = arith.constant 6.400000e+01 : f32
    %37 = vector.broadcast %cst_20 : f32 to vector<96x1xf32>
    %38 = arith.divf %36, %37 : vector<96x1xf32>
    %cst_21 = arith.constant 9.99999997E-7 : f32
    %39 = vector.broadcast %cst_21 : f32 to vector<96x1xf32>
    %40 = arith.addf %38, %39 : vector<96x1xf32>
    %41 = math.rsqrt %40 : vector<96x1xf32>
    %42 = vector.broadcast %41 : vector<96x1xf32> to vector<96x64xf32>
    %43 = arith.mulf %33, %42 : vector<96x64xf32>
    %44 = vector.broadcast %26 : vector<1x64xf32> to vector<96x64xf32>
    %45 = arith.mulf %43, %44 : vector<96x64xf32>
    %46 = vector.broadcast %27 : vector<1x64xf32> to vector<96x64xf32>
    %47 = arith.addf %45, %46 : vector<96x64xf32>
    %c0_22 = arith.constant 0 : index
    %c0_23 = arith.constant 0 : index
    %48 = vector.load %arg7[%c0_22, %c0_23] : memref<64x64xf32, #tpu.memory_space<vmem>>, vector<64x64xf32>
    %cst_24 = arith.constant dense<0.000000e+00> : vector<32x64xf32>
    %49 = tpu.matmul %25, %48, %cst_24 {dimension_numbers = #tpu.dot_dimension_numbers<[1], [0], [0], [1], [0, 0, 1, 1], [], []>} : vector<32x64xf32>, vector<64x64xf32>, vector<32x64xf32> -> vector<32x64xf32>
    %c0_25 = arith.constant 0 : index
    %c0_26 = arith.constant 0 : index
    %50 = vector.load %arg8[%c0_25, %c0_26] : memref<1x64xf32, #tpu.memory_space<vmem>>, vector<1x64xf32>
    %51 = vector.broadcast %50 : vector<1x64xf32> to vector<32x64xf32>
    %52 = arith.addf %49, %51 : vector<32x64xf32>
    %c0_27 = arith.constant 0 : index
    %c0_28 = arith.constant 0 : index
    %53 = vector.load %arg9[%c0_27, %c0_28] : memref<64x128xf32, #tpu.memory_space<vmem>>, vector<64x128xf32>
    %cst_29 = arith.constant dense<0.000000e+00> : vector<96x128xf32>
    %54 = tpu.matmul %47, %53, %cst_29 {dimension_numbers = #tpu.dot_dimension_numbers<[1], [0], [0], [1], [0, 0, 1, 1], [], []>} : vector<96x64xf32>, vector<64x128xf32>, vector<96x128xf32> -> vector<96x128xf32>
    %c0_30 = arith.constant 0 : index
    %c0_31 = arith.constant 0 : index
    %55 = vector.load %arg10[%c0_30, %c0_31] : memref<1x128xf32, #tpu.memory_space<vmem>>, vector<1x128xf32>
    %56 = vector.broadcast %55 : vector<1x128xf32> to vector<96x128xf32>
    %57 = arith.addf %54, %56 : vector<96x128xf32>
    %58 = vector.extract_strided_slice %52 {offsets = [0, 0], sizes = [32, 16], strides = [1, 1]} : vector<32x64xf32> to vector<32x16xf32>
    %59 = vector.extract_strided_slice %57 {offsets = [0, 0], sizes = [96, 16], strides = [1, 1]} : vector<96x128xf32> to vector<96x16xf32>
    %60 = vector.extract_strided_slice %57 {offsets = [0, 64], sizes = [96, 16], strides = [1, 1]} : vector<96x128xf32> to vector<96x16xf32>
    "tpu.trace_start"() <{level = 10 : i32, message = "qd,kd->qk"}> : () -> ()
    %cst_32 = arith.constant dense<0.000000e+00> : vector<32x96xf32>
    %61 = tpu.matmul %58, %59, %cst_32 {dimension_numbers = #tpu.dot_dimension_numbers<[1], [1], [0], [0], [0, 0, 1, 0], [], []>} : vector<32x16xf32>, vector<96x16xf32>, vector<32x96xf32> -> vector<32x96xf32>
    "tpu.trace_stop"() : () -> ()
    %cst_33 = arith.constant dense<0xFF800000> : vector<32xf32>
    %62 = vector.multi_reduction <maximumf>, %61, %cst_33 [1] : vector<32x96xf32> to vector<32xf32>
    %63 = vector.shape_cast %62 : vector<32xf32> to vector<32x1xf32>
    %64 = vector.broadcast %63 : vector<32x1xf32> to vector<32x96xf32>
    %65 = arith.subf %61, %64 : vector<32x96xf32>
    %66 = math.exp %65 : vector<32x96xf32>
    %cst_34 = arith.constant dense<0.000000e+00> : vector<32xf32>
    %67 = vector.multi_reduction <add>, %66, %cst_34 [1] : vector<32x96xf32> to vector<32xf32>
    %68 = vector.shape_cast %67 : vector<32xf32> to vector<32x1xf32>
    %cst_35 = arith.constant dense<0.000000e+00> : vector<32x16xf32>
    %69 = tpu.matmul %66, %60, %cst_35 {dimension_numbers = #tpu.dot_dimension_numbers<[1], [0], [0], [1], [0, 0, 1, 1], [], []>} : vector<32x96xf32>, vector<96x16xf32>, vector<32x16xf32> -> vector<32x16xf32>
    %70 = tpu.reciprocal %68 : vector<32x1xf32> -> vector<32x1xf32>
    %71 = vector.broadcast %70 : vector<32x1xf32> to vector<32x16xf32>
    %72 = arith.mulf %69, %71 : vector<32x16xf32>
    %c0_36 = arith.constant 0 : index
    %c0_37 = arith.constant 0 : index
    %73 = vector.load %arg15[%c0_36, %c0_37] : memref<32x64xf32, #tpu.memory_space<vmem>>, vector<32x16xf32>
    tpu.vector_store %arg15[%c0_36, %c0_37], %72 {strides = array<i32>} : memref<32x64xf32, #tpu.memory_space<vmem>>, vector<32x16xf32>,
    %74 = vector.extract_strided_slice %52 {offsets = [0, 16], sizes = [32, 16], strides = [1, 1]} : vector<32x64xf32> to vector<32x16xf32>
    %75 = vector.extract_strided_slice %57 {offsets = [0, 16], sizes = [96, 16], strides = [1, 1]} : vector<96x128xf32> to vector<96x16xf32>
    %76 = vector.extract_strided_slice %57 {offsets = [0, 80], sizes = [96, 16], strides = [1, 1]} : vector<96x128xf32> to vector<96x16xf32>
    "tpu.trace_start"() <{level = 10 : i32, message = "qd,kd->qk"}> : () -> ()
    %cst_38 = arith.constant dense<0.000000e+00> : vector<32x96xf32>
    %77 = tpu.matmul %74, %75, %cst_38 {dimension_numbers = #tpu.dot_dimension_numbers<[1], [1], [0], [0], [0, 0, 1, 0], [], []>} : vector<32x16xf32>, vector<96x16xf32>, vector<32x96xf32> -> vector<32x96xf32>
    "tpu.trace_stop"() : () -> ()
    %cst_39 = arith.constant dense<0xFF800000> : vector<32xf32>
    %78 = vector.multi_reduction <maximumf>, %77, %cst_39 [1] : vector<32x96xf32> to vector<32xf32>
    %79 = vector.shape_cast %78 : vector<32xf32> to vector<32x1xf32>
    %80 = vector.broadcast %79 : vector<32x1xf32> to vector<32x96xf32>
    %81 = arith.subf %77, %80 : vector<32x96xf32>
    %82 = math.exp %81 : vector<32x96xf32>
    %cst_40 = arith.constant dense<0.000000e+00> : vector<32xf32>
    %83 = vector.multi_reduction <add>, %82, %cst_40 [1] : vector<32x96xf32> to vector<32xf32>
    %84 = vector.shape_cast %83 : vector<32xf32> to vector<32x1xf32>
    %cst_41 = arith.constant dense<0.000000e+00> : vector<32x16xf32>
    %85 = tpu.matmul %82, %76, %cst_41 {dimension_numbers = #tpu.dot_dimension_numbers<[1], [0], [0], [1], [0, 0, 1, 1], [], []>} : vector<32x96xf32>, vector<96x16xf32>, vector<32x16xf32> -> vector<32x16xf32>
    %86 = tpu.reciprocal %84 : vector<32x1xf32> -> vector<32x1xf32>
    %87 = vector.broadcast %86 : vector<32x1xf32> to vector<32x16xf32>
    %88 = arith.mulf %85, %87 : vector<32x16xf32>
    %c0_42 = arith.constant 0 : index
    %c16 = arith.constant 16 : index
    %89 = vector.load %arg15[%c0_42, %c16] : memref<32x64xf32, #tpu.memory_space<vmem>>, vector<32x16xf32>
    tpu.vector_store %arg15[%c0_42, %c16], %88 {strides = array<i32>} : memref<32x64xf32, #tpu.memory_space<vmem>>, vector<32x16xf32>,
    %90 = vector.extract_strided_slice %52 {offsets = [0, 32], sizes = [32, 16], strides = [1, 1]} : vector<32x64xf32> to vector<32x16xf32>
    %91 = vector.extract_strided_slice %57 {offsets = [0, 32], sizes = [96, 16], strides = [1, 1]} : vector<96x128xf32> to vector<96x16xf32>
    %92 = vector.extract_strided_slice %57 {offsets = [0, 96], sizes = [96, 16], strides = [1, 1]} : vector<96x128xf32> to vector<96x16xf32>
    "tpu.trace_start"() <{level = 10 : i32, message = "qd,kd->qk"}> : () -> ()
    %cst_43 = arith.constant dense<0.000000e+00> : vector<32x96xf32>
    %93 = tpu.matmul %90, %91, %cst_43 {dimension_numbers = #tpu.dot_dimension_numbers<[1], [1], [0], [0], [0, 0, 1, 0], [], []>} : vector<32x16xf32>, vector<96x16xf32>, vector<32x96xf32> -> vector<32x96xf32>
    "tpu.trace_stop"() : () -> ()
    %cst_44 = arith.constant dense<0xFF800000> : vector<32xf32>
    %94 = vector.multi_reduction <maximumf>, %93, %cst_44 [1] : vector<32x96xf32> to vector<32xf32>
    %95 = vector.shape_cast %94 : vector<32xf32> to vector<32x1xf32>
    %96 = vector.broadcast %95 : vector<32x1xf32> to vector<32x96xf32>
    %97 = arith.subf %93, %96 : vector<32x96xf32>
    %98 = math.exp %97 : vector<32x96xf32>
    %cst_45 = arith.constant dense<0.000000e+00> : vector<32xf32>
    %99 = vector.multi_reduction <add>, %98, %cst_45 [1] : vector<32x96xf32> to vector<32xf32>
    %100 = vector.shape_cast %99 : vector<32xf32> to vector<32x1xf32>
    %cst_46 = arith.constant dense<0.000000e+00> : vector<32x16xf32>
    %101 = tpu.matmul %98, %92, %cst_46 {dimension_numbers = #tpu.dot_dimension_numbers<[1], [0], [0], [1], [0, 0, 1, 1], [], []>} : vector<32x96xf32>, vector<96x16xf32>, vector<32x16xf32> -> vector<32x16xf32>
    %102 = tpu.reciprocal %100 : vector<32x1xf32> -> vector<32x1xf32>
    %103 = vector.broadcast %102 : vector<32x1xf32> to vector<32x16xf32>
    %104 = arith.mulf %101, %103 : vector<32x16xf32>
    %c0_47 = arith.constant 0 : index
    %c32 = arith.constant 32 : index
    %105 = vector.load %arg15[%c0_47, %c32] : memref<32x64xf32, #tpu.memory_space<vmem>>, vector<32x16xf32>
    tpu.vector_store %arg15[%c0_47, %c32], %104 {strides = array<i32>} : memref<32x64xf32, #tpu.memory_space<vmem>>, vector<32x16xf32>,
    %106 = vector.extract_strided_slice %52 {offsets = [0, 48], sizes = [32, 16], strides = [1, 1]} : vector<32x64xf32> to vector<32x16xf32>
    %107 = vector.extract_strided_slice %57 {offsets = [0, 48], sizes = [96, 16], strides = [1, 1]} : vector<96x128xf32> to vector<96x16xf32>
    %108 = vector.extract_strided_slice %57 {offsets = [0, 112], sizes = [96, 16], strides = [1, 1]} : vector<96x128xf32> to vector<96x16xf32>
    "tpu.trace_start"() <{level = 10 : i32, message = "qd,kd->qk"}> : () -> ()
    %cst_48 = arith.constant dense<0.000000e+00> : vector<32x96xf32>
    %109 = tpu.matmul %106, %107, %cst_48 {dimension_numbers = #tpu.dot_dimension_numbers<[1], [1], [0], [0], [0, 0, 1, 0], [], []>} : vector<32x16xf32>, vector<96x16xf32>, vector<32x96xf32> -> vector<32x96xf32>
    "tpu.trace_stop"() : () -> ()
    %cst_49 = arith.constant dense<0xFF800000> : vector<32xf32>
    %110 = vector.multi_reduction <maximumf>, %109, %cst_49 [1] : vector<32x96xf32> to vector<32xf32>
    %111 = vector.shape_cast %110 : vector<32xf32> to vector<32x1xf32>
    %112 = vector.broadcast %111 : vector<32x1xf32> to vector<32x96xf32>
    %113 = arith.subf %109, %112 : vector<32x96xf32>
    %114 = math.exp %113 : vector<32x96xf32>
    %cst_50 = arith.constant dense<0.000000e+00> : vector<32xf32>
    %115 = vector.multi_reduction <add>, %114, %cst_50 [1] : vector<32x96xf32> to vector<32xf32>
    %116 = vector.shape_cast %115 : vector<32xf32> to vector<32x1xf32>
    %cst_51 = arith.constant dense<0.000000e+00> : vector<32x16xf32>
    %117 = tpu.matmul %114, %108, %cst_51 {dimension_numbers = #tpu.dot_dimension_numbers<[1], [0], [0], [1], [0, 0, 1, 1], [], []>} : vector<32x96xf32>, vector<96x16xf32>, vector<32x16xf32> -> vector<32x16xf32>
    %118 = tpu.reciprocal %116 : vector<32x1xf32> -> vector<32x1xf32>
    %119 = vector.broadcast %118 : vector<32x1xf32> to vector<32x16xf32>
    %120 = arith.mulf %117, %119 : vector<32x16xf32>
    %c0_52 = arith.constant 0 : index
    %c48 = arith.constant 48 : index
    %121 = vector.load %arg15[%c0_52, %c48] : memref<32x64xf32, #tpu.memory_space<vmem>>, vector<32x16xf32>
    tpu.vector_store %arg15[%c0_52, %c48], %120 {strides = array<i32>} : memref<32x64xf32, #tpu.memory_space<vmem>>, vector<32x16xf32>,
    %c0_53 = arith.constant 0 : index
    %c0_54 = arith.constant 0 : index
    %122 = vector.load %arg15[%c0_53, %c0_54] : memref<32x64xf32, #tpu.memory_space<vmem>>, vector<32x64xf32>
    %c0_55 = arith.constant 0 : index
    %c0_56 = arith.constant 0 : index
    %123 = vector.load %arg11[%c0_55, %c0_56] : memref<64x64xf32, #tpu.memory_space<vmem>>, vector<64x64xf32>
    %cst_57 = arith.constant dense<0.000000e+00> : vector<32x64xf32>
    %124 = tpu.matmul %122, %123, %cst_57 {dimension_numbers = #tpu.dot_dimension_numbers<[1], [0], [0], [1], [0, 0, 1, 1], [], []>} : vector<32x64xf32>, vector<64x64xf32>, vector<32x64xf32> -> vector<32x64xf32>
    %c0_58 = arith.constant 0 : index
    %c0_59 = arith.constant 0 : index
    %125 = vector.load %arg12[%c0_58, %c0_59] : memref<1x64xf32, #tpu.memory_space<vmem>>, vector<1x64xf32>
    %126 = vector.broadcast %125 : vector<1x64xf32> to vector<32x64xf32>
    %127 = arith.addf %124, %126 : vector<32x64xf32>
    %c0_60 = arith.constant 0 : index
    %c0_61 = arith.constant 0 : index
    %128 = vector.load %arg13[%c0_60, %c0_61] : memref<1x64xf32, #tpu.memory_space<vmem>>, vector<1x64xf32>
    %129 = vector.broadcast %128 : vector<1x64xf32> to vector<32x64xf32>
    %130 = arith.mulf %129, %127 : vector<32x64xf32>
    %131 = arith.addf %1, %130 : vector<32x64xf32>
    %c0_62 = arith.constant 0 : index
    %c0_63 = arith.constant 0 : index
    %c0_64 = arith.constant 0 : index
    %132 = vector.load %arg14[%c0_62, %c0_63, %c0_64] : memref<1x32x64xf32, #tpu.memory_space<vmem>>, vector<1x32x64xf32>
    %133 = vector.shape_cast %132 : vector<1x32x64xf32> to vector<32x64xf32>
    %134 = vector.shape_cast %131 : vector<32x64xf32> to vector<1x32x64xf32>
    tpu.vector_store %arg14[%c0_62, %c0_63, %c0_64], %134 {strides = array<i32>} : memref<1x32x64xf32, #tpu.memory_space<vmem>>, vector<1x32x64xf32>,
    return
  }
  func.func @transform_0(%arg0: i32) -> (i32, i32, i32) {
    %c0_i32 = arith.constant 0 : i32
    %c0_i32_0 = arith.constant 0 : i32
    %c0_i32_1 = arith.constant 0 : i32
    return %arg0, %c0_i32, %c0_i32_0 : i32, i32, i32
  }
  func.func @transform_1(%arg0: i32) -> (i32, i32, i32) {
    %c0_i32 = arith.constant 0 : i32
    %c0_i32_0 = arith.constant 0 : i32
    %c0_i32_1 = arith.constant 0 : i32
    return %arg0, %c0_i32, %c0_i32_0 : i32, i32, i32
  }
  func.func @transform_2(%arg0: i32) -> (i32, i32) {
    %c0_i32 = arith.constant 0 : i32
    %c0_i32_0 = arith.constant 0 : i32
    %c0_i32_1 = arith.constant 0 : i32
    return %c0_i32, %c0_i32_0 : i32, i32
  }
  func.func @transform_3(%arg0: i32) -> (i32, i32) {
    %c0_i32 = arith.constant 0 : i32
    %c0_i32_0 = arith.constant 0 : i32
    %c0_i32_1 = arith.constant 0 : i32
    return %c0_i32, %c0_i32_0 : i32, i32
  }
  func.func @transform_4(%arg0: i32) -> (i32, i32) {
    %c0_i32 = arith.constant 0 : i32
    %c0_i32_0 = arith.constant 0 : i32
    %c0_i32_1 = arith.constant 0 : i32
    return %c0_i32, %c0_i32_0 : i32, i32
  }
  func.func @transform_5(%arg0: i32) -> (i32, i32) {
    %c0_i32 = arith.constant 0 : i32
    %c0_i32_0 = arith.constant 0 : i32
    %c0_i32_1 = arith.constant 0 : i32
    return %c0_i32, %c0_i32_0 : i32, i32
  }
  func.func @transform_6(%arg0: i32) -> (i32, i32) {
    %c0_i32 = arith.constant 0 : i32
    %c0_i32_0 = arith.constant 0 : i32
    %c0_i32_1 = arith.constant 0 : i32
    return %c0_i32, %c0_i32_0 : i32, i32
  }
  func.func @transform_7(%arg0: i32) -> (i32, i32) {
    %c0_i32 = arith.constant 0 : i32
    %c0_i32_0 = arith.constant 0 : i32
    %c0_i32_1 = arith.constant 0 : i32
    return %c0_i32, %c0_i32_0 : i32, i32
  }
  func.func @transform_8(%arg0: i32) -> (i32, i32) {
    %c0_i32 = arith.constant 0 : i32
    %c0_i32_0 = arith.constant 0 : i32
    %c0_i32_1 = arith.constant 0 : i32
    return %c0_i32, %c0_i32_0 : i32, i32
  }
  func.func @transform_9(%arg0: i32) -> (i32, i32) {
    %c0_i32 = arith.constant 0 : i32
    %c0_i32_0 = arith.constant 0 : i32
    %c0_i32_1 = arith.constant 0 : i32
    return %c0_i32, %c0_i32_0 : i32, i32
  }
  func.func @transform_10(%arg0: i32) -> (i32, i32) {
    %c0_i32 = arith.constant 0 : i32
    %c0_i32_0 = arith.constant 0 : i32
    %c0_i32_1 = arith.constant 0 : i32
    return %c0_i32, %c0_i32_0 : i32, i32
  }
  func.func @transform_11(%arg0: i32) -> (i32, i32) {
    %c0_i32 = arith.constant 0 : i32
    %c0_i32_0 = arith.constant 0 : i32
    %c0_i32_1 = arith.constant 0 : i32
    return %c0_i32, %c0_i32_0 : i32, i32
  }
  func.func @transform_12(%arg0: i32) -> (i32, i32) {
    %c0_i32 = arith.constant 0 : i32
    %c0_i32_0 = arith.constant 0 : i32
    %c0_i32_1 = arith.constant 0 : i32
    return %c0_i32, %c0_i32_0 : i32, i32
  }
  func.func @transform_13(%arg0: i32) -> (i32, i32, i32) {
    %c0_i32 = arith.constant 0 : i32
    %c0_i32_0 = arith.constant 0 : i32
    %c0_i32_1 = arith.constant 0 : i32
    return %arg0, %c0_i32, %c0_i32_0 : i32, i32, i32
  }
}

module attributes {stable_mosaic.version = 11 : i64} {
  func.func @_fused_attn_kernel(%arg0: i32, %arg1: memref<1x96x64xf32, #tpu.memory_space<vmem>>, %arg2: memref<1x32x64xf32, #tpu.memory_space<vmem>>, %arg3: memref<1x64xf32, #tpu.memory_space<vmem>>, %arg4: memref<1x64xf32, #tpu.memory_space<vmem>>, %arg5: memref<1x64xf32, #tpu.memory_space<vmem>>, %arg6: memref<1x64xf32, #tpu.memory_space<vmem>>, %arg7: memref<64x64xf32, #tpu.memory_space<vmem>>, %arg8: memref<1x64xf32, #tpu.memory_space<vmem>>, %arg9: memref<64x128xf32, #tpu.memory_space<vmem>>, %arg10: memref<1x128xf32, #tpu.memory_space<vmem>>, %arg11: memref<64x64xf32, #tpu.memory_space<vmem>>, %arg12: memref<1x64xf32, #tpu.memory_space<vmem>>, %arg13: memref<1x96x64xf32, #tpu.memory_space<vmem>>, %arg14: memref<96x64xf32, #tpu.memory_space<vmem>>) attributes {dimension_semantics = [#tpu.dimension_semantics<parallel>], iteration_bounds = array<i64: 2>, scalar_prefetch = 0 : i64, scratch_operands = 1 : i64, tpu.core_type = #tpu.core_type<tc>, window_params = [{transform_indices = @transform_0, window_bounds = array<i64: 1, 96, 64>}, {transform_indices = @transform_1, window_bounds = array<i64: 1, 32, 64>}, {pipeline_mode = #tpu.pipeline_mode<synchronous>, transform_indices = @transform_2, window_bounds = array<i64: 1, 64>}, {pipeline_mode = #tpu.pipeline_mode<synchronous>, transform_indices = @transform_3, window_bounds = array<i64: 1, 64>}, {pipeline_mode = #tpu.pipeline_mode<synchronous>, transform_indices = @transform_4, window_bounds = array<i64: 1, 64>}, {pipeline_mode = #tpu.pipeline_mode<synchronous>, transform_indices = @transform_5, window_bounds = array<i64: 1, 64>}, {pipeline_mode = #tpu.pipeline_mode<synchronous>, transform_indices = @transform_6, window_bounds = array<i64: 64, 64>}, {pipeline_mode = #tpu.pipeline_mode<synchronous>, transform_indices = @transform_7, window_bounds = array<i64: 1, 64>}, {pipeline_mode = #tpu.pipeline_mode<synchronous>, transform_indices = @transform_8, window_bounds = array<i64: 64, 128>}, {pipeline_mode = #tpu.pipeline_mode<synchronous>, transform_indices = @transform_9, window_bounds = array<i64: 1, 128>}, {pipeline_mode = #tpu.pipeline_mode<synchronous>, transform_indices = @transform_10, window_bounds = array<i64: 64, 64>}, {pipeline_mode = #tpu.pipeline_mode<synchronous>, transform_indices = @transform_11, window_bounds = array<i64: 1, 64>}, {transform_indices = @transform_12, window_bounds = array<i64: 1, 96, 64>}]} {
    %c0 = arith.constant 0 : index
    %c0_0 = arith.constant 0 : index
    %c0_1 = arith.constant 0 : index
    %0 = vector.load %arg1[%c0, %c0_0, %c0_1] : memref<1x96x64xf32, #tpu.memory_space<vmem>>, vector<1x96x64xf32>
    %1 = vector.shape_cast %0 : vector<1x96x64xf32> to vector<96x64xf32>
    %c0_2 = arith.constant 0 : index
    %c0_3 = arith.constant 0 : index
    %c0_4 = arith.constant 0 : index
    %2 = vector.load %arg2[%c0_2, %c0_3, %c0_4] : memref<1x32x64xf32, #tpu.memory_space<vmem>>, vector<1x32x64xf32>
    %3 = vector.shape_cast %2 : vector<1x32x64xf32> to vector<32x64xf32>
    %c0_5 = arith.constant 0 : index
    %c0_6 = arith.constant 0 : index
    %4 = vector.load %arg3[%c0_5, %c0_6] : memref<1x64xf32, #tpu.memory_space<vmem>>, vector<1x64xf32>
    %c0_7 = arith.constant 0 : index
    %c0_8 = arith.constant 0 : index
    %5 = vector.load %arg4[%c0_7, %c0_8] : memref<1x64xf32, #tpu.memory_space<vmem>>, vector<1x64xf32>
    %cst = arith.constant dense<0.000000e+00> : vector<96xf32>
    %6 = vector.multi_reduction <add>, %1, %cst [1] : vector<96x64xf32> to vector<96xf32>
    %7 = vector.shape_cast %6 : vector<96xf32> to vector<96x1xf32>
    %cst_9 = arith.constant 6.400000e+01 : f32
    %8 = vector.broadcast %cst_9 : f32 to vector<96x1xf32>
    %9 = arith.divf %7, %8 : vector<96x1xf32>
    %10 = vector.broadcast %9 : vector<96x1xf32> to vector<96x64xf32>
    %11 = arith.subf %1, %10 : vector<96x64xf32>
    %12 = arith.mulf %11, %11 : vector<96x64xf32>
    %cst_10 = arith.constant dense<0.000000e+00> : vector<96xf32>
    %13 = vector.multi_reduction <add>, %12, %cst_10 [1] : vector<96x64xf32> to vector<96xf32>
    %14 = vector.shape_cast %13 : vector<96xf32> to vector<96x1xf32>
    %cst_11 = arith.constant 6.400000e+01 : f32
    %15 = vector.broadcast %cst_11 : f32 to vector<96x1xf32>
    %16 = arith.divf %14, %15 : vector<96x1xf32>
    %cst_12 = arith.constant 9.99999997E-7 : f32
    %17 = vector.broadcast %cst_12 : f32 to vector<96x1xf32>
    %18 = arith.addf %16, %17 : vector<96x1xf32>
    %19 = math.rsqrt %18 : vector<96x1xf32>
    %20 = vector.broadcast %19 : vector<96x1xf32> to vector<96x64xf32>
    %21 = arith.mulf %11, %20 : vector<96x64xf32>
    %22 = vector.broadcast %4 : vector<1x64xf32> to vector<96x64xf32>
    %23 = arith.mulf %21, %22 : vector<96x64xf32>
    %24 = vector.broadcast %5 : vector<1x64xf32> to vector<96x64xf32>
    %25 = arith.addf %23, %24 : vector<96x64xf32>
    %c0_13 = arith.constant 0 : index
    %c0_14 = arith.constant 0 : index
    %26 = vector.load %arg5[%c0_13, %c0_14] : memref<1x64xf32, #tpu.memory_space<vmem>>, vector<1x64xf32>
    %c0_15 = arith.constant 0 : index
    %c0_16 = arith.constant 0 : index
    %27 = vector.load %arg6[%c0_15, %c0_16] : memref<1x64xf32, #tpu.memory_space<vmem>>, vector<1x64xf32>
    %cst_17 = arith.constant dense<0.000000e+00> : vector<32xf32>
    %28 = vector.multi_reduction <add>, %3, %cst_17 [1] : vector<32x64xf32> to vector<32xf32>
    %29 = vector.shape_cast %28 : vector<32xf32> to vector<32x1xf32>
    %cst_18 = arith.constant 6.400000e+01 : f32
    %30 = vector.broadcast %cst_18 : f32 to vector<32x1xf32>
    %31 = arith.divf %29, %30 : vector<32x1xf32>
    %32 = vector.broadcast %31 : vector<32x1xf32> to vector<32x64xf32>
    %33 = arith.subf %3, %32 : vector<32x64xf32>
    %34 = arith.mulf %33, %33 : vector<32x64xf32>
    %cst_19 = arith.constant dense<0.000000e+00> : vector<32xf32>
    %35 = vector.multi_reduction <add>, %34, %cst_19 [1] : vector<32x64xf32> to vector<32xf32>
    %36 = vector.shape_cast %35 : vector<32xf32> to vector<32x1xf32>
    %cst_20 = arith.constant 6.400000e+01 : f32
    %37 = vector.broadcast %cst_20 : f32 to vector<32x1xf32>
    %38 = arith.divf %36, %37 : vector<32x1xf32>
    %cst_21 = arith.constant 9.99999997E-7 : f32
    %39 = vector.broadcast %cst_21 : f32 to vector<32x1xf32>
    %40 = arith.addf %38, %39 : vector<32x1xf32>
    %41 = math.rsqrt %40 : vector<32x1xf32>
    %42 = vector.broadcast %41 : vector<32x1xf32> to vector<32x64xf32>
    %43 = arith.mulf %33, %42 : vector<32x64xf32>
    %44 = vector.broadcast %26 : vector<1x64xf32> to vector<32x64xf32>
    %45 = arith.mulf %43, %44 : vector<32x64xf32>
    %46 = vector.broadcast %27 : vector<1x64xf32> to vector<32x64xf32>
    %47 = arith.addf %45, %46 : vector<32x64xf32>
    %c0_22 = arith.constant 0 : index
    %c0_23 = arith.constant 0 : index
    %48 = vector.load %arg7[%c0_22, %c0_23] : memref<64x64xf32, #tpu.memory_space<vmem>>, vector<64x64xf32>
    %cst_24 = arith.constant dense<0.000000e+00> : vector<96x64xf32>
    %49 = tpu.matmul %25, %48, %cst_24 {dimension_numbers = #tpu.dot_dimension_numbers<[1], [0], [0], [1], [0, 0, 1, 1], [], []>} : vector<96x64xf32>, vector<64x64xf32>, vector<96x64xf32> -> vector<96x64xf32>
    %c0_25 = arith.constant 0 : index
    %c0_26 = arith.constant 0 : index
    %50 = vector.load %arg8[%c0_25, %c0_26] : memref<1x64xf32, #tpu.memory_space<vmem>>, vector<1x64xf32>
    %51 = vector.broadcast %50 : vector<1x64xf32> to vector<96x64xf32>
    %52 = arith.addf %49, %51 : vector<96x64xf32>
    %c0_27 = arith.constant 0 : index
    %c0_28 = arith.constant 0 : index
    %53 = vector.load %arg9[%c0_27, %c0_28] : memref<64x128xf32, #tpu.memory_space<vmem>>, vector<64x128xf32>
    %cst_29 = arith.constant dense<0.000000e+00> : vector<32x128xf32>
    %54 = tpu.matmul %47, %53, %cst_29 {dimension_numbers = #tpu.dot_dimension_numbers<[1], [0], [0], [1], [0, 0, 1, 1], [], []>} : vector<32x64xf32>, vector<64x128xf32>, vector<32x128xf32> -> vector<32x128xf32>
    %c0_30 = arith.constant 0 : index
    %c0_31 = arith.constant 0 : index
    %55 = vector.load %arg10[%c0_30, %c0_31] : memref<1x128xf32, #tpu.memory_space<vmem>>, vector<1x128xf32>
    %56 = vector.broadcast %55 : vector<1x128xf32> to vector<32x128xf32>
    %57 = arith.addf %54, %56 : vector<32x128xf32>
    %58 = vector.extract_strided_slice %52 {offsets = [0, 0], sizes = [96, 16], strides = [1, 1]} : vector<96x64xf32> to vector<96x16xf32>
    %59 = vector.extract_strided_slice %57 {offsets = [0, 0], sizes = [32, 16], strides = [1, 1]} : vector<32x128xf32> to vector<32x16xf32>
    %60 = vector.extract_strided_slice %57 {offsets = [0, 64], sizes = [32, 16], strides = [1, 1]} : vector<32x128xf32> to vector<32x16xf32>
    "tpu.trace_start"() <{level = 10 : i32, message = "qd,kd->qk"}> : () -> ()
    %cst_32 = arith.constant dense<0.000000e+00> : vector<96x32xf32>
    %61 = tpu.matmul %58, %59, %cst_32 {dimension_numbers = #tpu.dot_dimension_numbers<[1], [1], [0], [0], [0, 0, 1, 0], [], []>} : vector<96x16xf32>, vector<32x16xf32>, vector<96x32xf32> -> vector<96x32xf32>
    "tpu.trace_stop"() : () -> ()
    %cst_33 = arith.constant dense<0xFF800000> : vector<96xf32>
    %62 = vector.multi_reduction <maximumf>, %61, %cst_33 [1] : vector<96x32xf32> to vector<96xf32>
    %63 = vector.shape_cast %62 : vector<96xf32> to vector<96x1xf32>
    %64 = vector.broadcast %63 : vector<96x1xf32> to vector<96x32xf32>
    %65 = arith.subf %61, %64 : vector<96x32xf32>
    %66 = math.exp %65 : vector<96x32xf32>
    %cst_34 = arith.constant dense<0.000000e+00> : vector<96xf32>
    %67 = vector.multi_reduction <add>, %66, %cst_34 [1] : vector<96x32xf32> to vector<96xf32>
    %68 = vector.shape_cast %67 : vector<96xf32> to vector<96x1xf32>
    %cst_35 = arith.constant dense<0.000000e+00> : vector<96x16xf32>
    %69 = tpu.matmul %66, %60, %cst_35 {dimension_numbers = #tpu.dot_dimension_numbers<[1], [0], [0], [1], [0, 0, 1, 1], [], []>} : vector<96x32xf32>, vector<32x16xf32>, vector<96x16xf32> -> vector<96x16xf32>
    %70 = tpu.reciprocal %68 : vector<96x1xf32> -> vector<96x1xf32>
    %71 = vector.broadcast %70 : vector<96x1xf32> to vector<96x16xf32>
    %72 = arith.mulf %69, %71 : vector<96x16xf32>
    %c0_36 = arith.constant 0 : index
    %c0_37 = arith.constant 0 : index
    %73 = vector.load %arg14[%c0_36, %c0_37] : memref<96x64xf32, #tpu.memory_space<vmem>>, vector<96x16xf32>
    tpu.vector_store %arg14[%c0_36, %c0_37], %72 {strides = array<i32>} : memref<96x64xf32, #tpu.memory_space<vmem>>, vector<96x16xf32>,
    %74 = vector.extract_strided_slice %52 {offsets = [0, 16], sizes = [96, 16], strides = [1, 1]} : vector<96x64xf32> to vector<96x16xf32>
    %75 = vector.extract_strided_slice %57 {offsets = [0, 16], sizes = [32, 16], strides = [1, 1]} : vector<32x128xf32> to vector<32x16xf32>
    %76 = vector.extract_strided_slice %57 {offsets = [0, 80], sizes = [32, 16], strides = [1, 1]} : vector<32x128xf32> to vector<32x16xf32>
    "tpu.trace_start"() <{level = 10 : i32, message = "qd,kd->qk"}> : () -> ()
    %cst_38 = arith.constant dense<0.000000e+00> : vector<96x32xf32>
    %77 = tpu.matmul %74, %75, %cst_38 {dimension_numbers = #tpu.dot_dimension_numbers<[1], [1], [0], [0], [0, 0, 1, 0], [], []>} : vector<96x16xf32>, vector<32x16xf32>, vector<96x32xf32> -> vector<96x32xf32>
    "tpu.trace_stop"() : () -> ()
    %cst_39 = arith.constant dense<0xFF800000> : vector<96xf32>
    %78 = vector.multi_reduction <maximumf>, %77, %cst_39 [1] : vector<96x32xf32> to vector<96xf32>
    %79 = vector.shape_cast %78 : vector<96xf32> to vector<96x1xf32>
    %80 = vector.broadcast %79 : vector<96x1xf32> to vector<96x32xf32>
    %81 = arith.subf %77, %80 : vector<96x32xf32>
    %82 = math.exp %81 : vector<96x32xf32>
    %cst_40 = arith.constant dense<0.000000e+00> : vector<96xf32>
    %83 = vector.multi_reduction <add>, %82, %cst_40 [1] : vector<96x32xf32> to vector<96xf32>
    %84 = vector.shape_cast %83 : vector<96xf32> to vector<96x1xf32>
    %cst_41 = arith.constant dense<0.000000e+00> : vector<96x16xf32>
    %85 = tpu.matmul %82, %76, %cst_41 {dimension_numbers = #tpu.dot_dimension_numbers<[1], [0], [0], [1], [0, 0, 1, 1], [], []>} : vector<96x32xf32>, vector<32x16xf32>, vector<96x16xf32> -> vector<96x16xf32>
    %86 = tpu.reciprocal %84 : vector<96x1xf32> -> vector<96x1xf32>
    %87 = vector.broadcast %86 : vector<96x1xf32> to vector<96x16xf32>
    %88 = arith.mulf %85, %87 : vector<96x16xf32>
    %c0_42 = arith.constant 0 : index
    %c16 = arith.constant 16 : index
    %89 = vector.load %arg14[%c0_42, %c16] : memref<96x64xf32, #tpu.memory_space<vmem>>, vector<96x16xf32>
    tpu.vector_store %arg14[%c0_42, %c16], %88 {strides = array<i32>} : memref<96x64xf32, #tpu.memory_space<vmem>>, vector<96x16xf32>,
    %90 = vector.extract_strided_slice %52 {offsets = [0, 32], sizes = [96, 16], strides = [1, 1]} : vector<96x64xf32> to vector<96x16xf32>
    %91 = vector.extract_strided_slice %57 {offsets = [0, 32], sizes = [32, 16], strides = [1, 1]} : vector<32x128xf32> to vector<32x16xf32>
    %92 = vector.extract_strided_slice %57 {offsets = [0, 96], sizes = [32, 16], strides = [1, 1]} : vector<32x128xf32> to vector<32x16xf32>
    "tpu.trace_start"() <{level = 10 : i32, message = "qd,kd->qk"}> : () -> ()
    %cst_43 = arith.constant dense<0.000000e+00> : vector<96x32xf32>
    %93 = tpu.matmul %90, %91, %cst_43 {dimension_numbers = #tpu.dot_dimension_numbers<[1], [1], [0], [0], [0, 0, 1, 0], [], []>} : vector<96x16xf32>, vector<32x16xf32>, vector<96x32xf32> -> vector<96x32xf32>
    "tpu.trace_stop"() : () -> ()
    %cst_44 = arith.constant dense<0xFF800000> : vector<96xf32>
    %94 = vector.multi_reduction <maximumf>, %93, %cst_44 [1] : vector<96x32xf32> to vector<96xf32>
    %95 = vector.shape_cast %94 : vector<96xf32> to vector<96x1xf32>
    %96 = vector.broadcast %95 : vector<96x1xf32> to vector<96x32xf32>
    %97 = arith.subf %93, %96 : vector<96x32xf32>
    %98 = math.exp %97 : vector<96x32xf32>
    %cst_45 = arith.constant dense<0.000000e+00> : vector<96xf32>
    %99 = vector.multi_reduction <add>, %98, %cst_45 [1] : vector<96x32xf32> to vector<96xf32>
    %100 = vector.shape_cast %99 : vector<96xf32> to vector<96x1xf32>
    %cst_46 = arith.constant dense<0.000000e+00> : vector<96x16xf32>
    %101 = tpu.matmul %98, %92, %cst_46 {dimension_numbers = #tpu.dot_dimension_numbers<[1], [0], [0], [1], [0, 0, 1, 1], [], []>} : vector<96x32xf32>, vector<32x16xf32>, vector<96x16xf32> -> vector<96x16xf32>
    %102 = tpu.reciprocal %100 : vector<96x1xf32> -> vector<96x1xf32>
    %103 = vector.broadcast %102 : vector<96x1xf32> to vector<96x16xf32>
    %104 = arith.mulf %101, %103 : vector<96x16xf32>
    %c0_47 = arith.constant 0 : index
    %c32 = arith.constant 32 : index
    %105 = vector.load %arg14[%c0_47, %c32] : memref<96x64xf32, #tpu.memory_space<vmem>>, vector<96x16xf32>
    tpu.vector_store %arg14[%c0_47, %c32], %104 {strides = array<i32>} : memref<96x64xf32, #tpu.memory_space<vmem>>, vector<96x16xf32>,
    %106 = vector.extract_strided_slice %52 {offsets = [0, 48], sizes = [96, 16], strides = [1, 1]} : vector<96x64xf32> to vector<96x16xf32>
    %107 = vector.extract_strided_slice %57 {offsets = [0, 48], sizes = [32, 16], strides = [1, 1]} : vector<32x128xf32> to vector<32x16xf32>
    %108 = vector.extract_strided_slice %57 {offsets = [0, 112], sizes = [32, 16], strides = [1, 1]} : vector<32x128xf32> to vector<32x16xf32>
    "tpu.trace_start"() <{level = 10 : i32, message = "qd,kd->qk"}> : () -> ()
    %cst_48 = arith.constant dense<0.000000e+00> : vector<96x32xf32>
    %109 = tpu.matmul %106, %107, %cst_48 {dimension_numbers = #tpu.dot_dimension_numbers<[1], [1], [0], [0], [0, 0, 1, 0], [], []>} : vector<96x16xf32>, vector<32x16xf32>, vector<96x32xf32> -> vector<96x32xf32>
    "tpu.trace_stop"() : () -> ()
    %cst_49 = arith.constant dense<0xFF800000> : vector<96xf32>
    %110 = vector.multi_reduction <maximumf>, %109, %cst_49 [1] : vector<96x32xf32> to vector<96xf32>
    %111 = vector.shape_cast %110 : vector<96xf32> to vector<96x1xf32>
    %112 = vector.broadcast %111 : vector<96x1xf32> to vector<96x32xf32>
    %113 = arith.subf %109, %112 : vector<96x32xf32>
    %114 = math.exp %113 : vector<96x32xf32>
    %cst_50 = arith.constant dense<0.000000e+00> : vector<96xf32>
    %115 = vector.multi_reduction <add>, %114, %cst_50 [1] : vector<96x32xf32> to vector<96xf32>
    %116 = vector.shape_cast %115 : vector<96xf32> to vector<96x1xf32>
    %cst_51 = arith.constant dense<0.000000e+00> : vector<96x16xf32>
    %117 = tpu.matmul %114, %108, %cst_51 {dimension_numbers = #tpu.dot_dimension_numbers<[1], [0], [0], [1], [0, 0, 1, 1], [], []>} : vector<96x32xf32>, vector<32x16xf32>, vector<96x16xf32> -> vector<96x16xf32>
    %118 = tpu.reciprocal %116 : vector<96x1xf32> -> vector<96x1xf32>
    %119 = vector.broadcast %118 : vector<96x1xf32> to vector<96x16xf32>
    %120 = arith.mulf %117, %119 : vector<96x16xf32>
    %c0_52 = arith.constant 0 : index
    %c48 = arith.constant 48 : index
    %121 = vector.load %arg14[%c0_52, %c48] : memref<96x64xf32, #tpu.memory_space<vmem>>, vector<96x16xf32>
    tpu.vector_store %arg14[%c0_52, %c48], %120 {strides = array<i32>} : memref<96x64xf32, #tpu.memory_space<vmem>>, vector<96x16xf32>,
    %c0_53 = arith.constant 0 : index
    %c0_54 = arith.constant 0 : index
    %122 = vector.load %arg14[%c0_53, %c0_54] : memref<96x64xf32, #tpu.memory_space<vmem>>, vector<96x64xf32>
    %c0_55 = arith.constant 0 : index
    %c0_56 = arith.constant 0 : index
    %123 = vector.load %arg11[%c0_55, %c0_56] : memref<64x64xf32, #tpu.memory_space<vmem>>, vector<64x64xf32>
    %cst_57 = arith.constant dense<0.000000e+00> : vector<96x64xf32>
    %124 = tpu.matmul %122, %123, %cst_57 {dimension_numbers = #tpu.dot_dimension_numbers<[1], [0], [0], [1], [0, 0, 1, 1], [], []>} : vector<96x64xf32>, vector<64x64xf32>, vector<96x64xf32> -> vector<96x64xf32>
    %c0_58 = arith.constant 0 : index
    %c0_59 = arith.constant 0 : index
    %125 = vector.load %arg12[%c0_58, %c0_59] : memref<1x64xf32, #tpu.memory_space<vmem>>, vector<1x64xf32>
    %126 = vector.broadcast %125 : vector<1x64xf32> to vector<96x64xf32>
    %127 = arith.addf %124, %126 : vector<96x64xf32>
    %128 = arith.addf %1, %127 : vector<96x64xf32>
    %c0_60 = arith.constant 0 : index
    %c0_61 = arith.constant 0 : index
    %c0_62 = arith.constant 0 : index
    %129 = vector.load %arg13[%c0_60, %c0_61, %c0_62] : memref<1x96x64xf32, #tpu.memory_space<vmem>>, vector<1x96x64xf32>
    %130 = vector.shape_cast %129 : vector<1x96x64xf32> to vector<96x64xf32>
    %131 = vector.shape_cast %128 : vector<96x64xf32> to vector<1x96x64xf32>
    tpu.vector_store %arg13[%c0_60, %c0_61, %c0_62], %131 {strides = array<i32>} : memref<1x96x64xf32, #tpu.memory_space<vmem>>, vector<1x96x64xf32>,
    return
  }
  func.func @transform_0(%arg0: i32) -> (i32, i32, i32) {
    %c0_i32 = arith.constant 0 : i32
    %c0_i32_0 = arith.constant 0 : i32
    %c0_i32_1 = arith.constant 0 : i32
    return %arg0, %c0_i32, %c0_i32_0 : i32, i32, i32
  }
  func.func @transform_1(%arg0: i32) -> (i32, i32, i32) {
    %c0_i32 = arith.constant 0 : i32
    %c0_i32_0 = arith.constant 0 : i32
    %c0_i32_1 = arith.constant 0 : i32
    return %arg0, %c0_i32, %c0_i32_0 : i32, i32, i32
  }
  func.func @transform_2(%arg0: i32) -> (i32, i32) {
    %c0_i32 = arith.constant 0 : i32
    %c0_i32_0 = arith.constant 0 : i32
    %c0_i32_1 = arith.constant 0 : i32
    return %c0_i32, %c0_i32_0 : i32, i32
  }
  func.func @transform_3(%arg0: i32) -> (i32, i32) {
    %c0_i32 = arith.constant 0 : i32
    %c0_i32_0 = arith.constant 0 : i32
    %c0_i32_1 = arith.constant 0 : i32
    return %c0_i32, %c0_i32_0 : i32, i32
  }
  func.func @transform_4(%arg0: i32) -> (i32, i32) {
    %c0_i32 = arith.constant 0 : i32
    %c0_i32_0 = arith.constant 0 : i32
    %c0_i32_1 = arith.constant 0 : i32
    return %c0_i32, %c0_i32_0 : i32, i32
  }
  func.func @transform_5(%arg0: i32) -> (i32, i32) {
    %c0_i32 = arith.constant 0 : i32
    %c0_i32_0 = arith.constant 0 : i32
    %c0_i32_1 = arith.constant 0 : i32
    return %c0_i32, %c0_i32_0 : i32, i32
  }
  func.func @transform_6(%arg0: i32) -> (i32, i32) {
    %c0_i32 = arith.constant 0 : i32
    %c0_i32_0 = arith.constant 0 : i32
    %c0_i32_1 = arith.constant 0 : i32
    return %c0_i32, %c0_i32_0 : i32, i32
  }
  func.func @transform_7(%arg0: i32) -> (i32, i32) {
    %c0_i32 = arith.constant 0 : i32
    %c0_i32_0 = arith.constant 0 : i32
    %c0_i32_1 = arith.constant 0 : i32
    return %c0_i32, %c0_i32_0 : i32, i32
  }
  func.func @transform_8(%arg0: i32) -> (i32, i32) {
    %c0_i32 = arith.constant 0 : i32
    %c0_i32_0 = arith.constant 0 : i32
    %c0_i32_1 = arith.constant 0 : i32
    return %c0_i32, %c0_i32_0 : i32, i32
  }
  func.func @transform_9(%arg0: i32) -> (i32, i32) {
    %c0_i32 = arith.constant 0 : i32
    %c0_i32_0 = arith.constant 0 : i32
    %c0_i32_1 = arith.constant 0 : i32
    return %c0_i32, %c0_i32_0 : i32, i32
  }
  func.func @transform_10(%arg0: i32) -> (i32, i32) {
    %c0_i32 = arith.constant 0 : i32
    %c0_i32_0 = arith.constant 0 : i32
    %c0_i32_1 = arith.constant 0 : i32
    return %c0_i32, %c0_i32_0 : i32, i32
  }
  func.func @transform_11(%arg0: i32) -> (i32, i32) {
    %c0_i32 = arith.constant 0 : i32
    %c0_i32_0 = arith.constant 0 : i32
    %c0_i32_1 = arith.constant 0 : i32
    return %c0_i32, %c0_i32_0 : i32, i32
  }
  func.func @transform_12(%arg0: i32) -> (i32, i32, i32) {
    %c0_i32 = arith.constant 0 : i32
    %c0_i32_0 = arith.constant 0 : i32
    %c0_i32_1 = arith.constant 0 : i32
    return %arg0, %c0_i32, %c0_i32_0 : i32, i32, i32
  }
}

</mosaic_0001>

<bundles_post_ra>
// kernel: _lambda_.5
= control target key start
LH: loop header
LB: loop body
LE: loop exit
PB: predicated region body
PF: predicated region fallthrough
CT: control target
= control target key end

     0   :  { %s792_s18 = smov 0   ;;  %s1036_s0 = inlined_call_operand.vmem [shape: f32[2,32,64], index: 0, kind: input, shape index: {}]   ;;  %s1037_s1 = inlined_call_operand.vmem [shape: f32[64,256], index: 1, kind: input, shape index: {}]   ;;  %s1038_s2 = inlined_call_operand.vmem [shape: f32[1,256], index: 2, kind: input, shape index: {}]   ;;  %s1039_s3 = inlined_call_operand.vmem [shape: f32[256,64], index: 3, kind: input, shape index: {}]   ;;  %s1040_s4 = inlined_call_operand.vmem [shape: f32[1,64], index: 4, kind: input, shape index: {}]   ;;  %s1041_s5 = inlined_call_operand.vmem [shape: f32[2,32,64], index: 5, kind: output, shape index: {}]  }
   0x1 LB: > { %s618_s19 = sadd.s32 4294967295, %s759_s18   ;;  %p622_p0 = scmp.ge.s32.totalorder %s759_s18, 1  ;;  %s759_s18 = sphi %s792_s18, %s15_s18  }
   0x2   : > { %p187_p1 = scmp.lt.s32.totalorder %s759_s18, 3 }
   0x4   : > { %p188_p2 = pnand %p622_p0, %p187_p1 }
   0x5   : > { %v230_v0 = vld [vmem:[%s1037_s1 + $0x8] sm:$0xff] (!%p188_p2)  ;;  %v232_v1 = vld [vmem:[%s1037_s1 + $0x18] sm:$0xff] (!%p188_p2)  ;;  %v229_v2 = vld [vmem:[%s1037_s1] sm:$0xff] (!%p188_p2)  ;;  %v761_v7 = vmov (!%p188_p2), 0.0   ;;  %p215_p3 = scmp.lt.s32.totalorder (!%p188_p2), %s618_s19, 1  ;;  %vm257_vm0 = vcmask (!%p188_p2), 523264  }
   0x6   : > { %191 = sbr.rel (%p188_p2) target bundleno = 497 (0x1f1), region = 40  ;;  %v680_v3 = vpack.c.bf16 (!%p188_p2), %v232_v1, %v230_v0  ;;  %v231_v4 = vld [vmem:[%s1037_s1 + $0x10] sm:$0xff] (!%p188_p2)  ;;  %v234_v5 = vld [vmem:[%s1037_s1 + $0x28] sm:$0xff] (!%p188_p2)  ;;  %v236_v6 = vld [vmem:[%s1037_s1 + $0x38] sm:$0xff] (!%p188_p2)  ;;  %334 = vmatprep.mubr.f32.mxu0 (!%p188_p2), %v761_v7 }
   0x7   : > { %v682_v8 = vpack.c.bf16 (!%p188_p2), %v231_v4, %v229_v2  ;;  %v684_v9 = vpack.c.bf16 (!%p188_p2), %v236_v6, %v234_v5  ;;  %v233_v10 = vld [vmem:[%s1037_s1 + $0x20] sm:$0xff] (!%p188_p2)  ;;  %v235_v11 = vld [vmem:[%s1037_s1 + $0x30] sm:$0xff] (!%p188_p2)  ;;  %v238_v12 = vld [vmem:[%s1037_s1 + $0x48] sm:$0xff] (!%p188_p2) }
   0x8   : > { %681 = vmatprep.subr.bf16.mxu0 (!%p188_p2), %v680_v3  ;;  %v240_v13 = vld [vmem:[%s1037_s1 + $0x58] sm:$0xff] (!%p188_p2)  ;;  %v686_v14 = vpack.c.bf16 (!%p188_p2), %v235_v11, %v233_v10  ;;  %v237_v15 = vld [vmem:[%s1037_s1 + $0x40] sm:$0xff] (!%p188_p2)  ;;  %v239_v17 = vld [vmem:[%s1037_s1 + $0x50] sm:$0xff] (!%p188_p2) }
   0x9   : > { %683 = vmatpush1.bf16.msra.mxu0 (!%p188_p2), %v682_v8  ;;  %v688_v16 = vpack.c.bf16 (!%p188_p2), %v240_v13, %v238_v12  ;;  %v447_v18 = vld [vmem:[%s1039_s3 + $0x80] sm:$0xff] (!%p188_p2)  ;;  %v448_v19 = vld [vmem:[%s1039_s3 + $0x88] sm:$0xff] (!%p188_p2)  ;;  %v244_v21 = vld [vmem:[%s1037_s1 + $0x78] sm:$0xff] (!%p188_p2)  ;;  %v690_v25 = vpack.c.bf16 (!%p188_p2), %v239_v17, %v237_v15  ;;  %v247_v13 = vlaneseq (!%p188_p2) }
   0xa   : > { %685 = vmatprep.subr.bf16.mxu0 (!%p188_p2), %v684_v9  ;;  %v242_v20 = vld [vmem:[%s1037_s1 + $0x68] sm:$0xff] (!%p188_p2)  ;;  %v696_v22 = vpack.c.bf16 (!%p188_p2), %v448_v19, %v447_v18  ;;  %v431_v23 = vld [vmem:[%s1039_s3] sm:$0xff] (!%p188_p2)  ;;  %v243_v29 = vld [vmem:[%s1037_s1 + $0x70] sm:$0xff] (!%p188_p2) }
   0xb   : > { %v432_v24 = vld [vmem:[%s1039_s3 + $0x8] sm:$0xff] (!%p188_p2)  ;;  %v692_v27 = vpack.c.bf16 (!%p188_p2), %v244_v21, %v242_v20  ;;  %v241_v28 = vld [vmem:[%s1037_s1 + $0x60] sm:$0xff] (!%p188_p2)  ;;  %v449_v35 = vld [vmem:[%s1039_s3 + $0x90] sm:$0xff] (!%p188_p2) }
   0xc   : > { %697 = vmatprep.subr.bf16.mxu1 (!%p188_p2), %v696_v22  ;;  %v698_v26 = vpack.c.bf16 (!%p188_p2), %v432_v24, %v431_v23  ;;  %v694_v30 = vpack.c.bf16 (!%p188_p2), %v243_v29, %v241_v28  ;;  %v450_v36 = vld [vmem:[%s1039_s3 + $0x98] sm:$0xff] (!%p188_p2)  ;;  %v433_v38 = vld [vmem:[%s1039_s3 + $0x10] sm:$0xff] (!%p188_p2)  ;;  %v451_v41 = vld [vmem:[%s1039_s3 + $0xa0] sm:$0xff] (!%p188_p2) }
   0xd   : > { %s1043_s19 = smov (!%p215_p3, %s618_s19), 1  ;;  %687 = vmatpush1.bf16.msra.mxu0 %v686_v14  ;;  %v700_v37 = vpack.c.bf16 %v450_v36, %v449_v35  ;;  %v434_v39 = vld [vmem:[%s1039_s3 + $0x18] sm:$0xff]  ;;  %v452_v42 = vld [vmem:[%s1039_s3 + $0xa8] sm:$0xff]  ;;  %v435_v44 = vld [vmem:[%s1039_s3 + $0x20] sm:$0xff]  ;;  %v248_v14 = vshrl.u32 %v247_v13, 7 }
   0xe   : > { %689 = vmatprep.subr.bf16.mxu0 %v688_v16  ;;  %s634_s12 = sshll.u32 %s1043_s19, 5  ;;  %699 = vmatpush3.bf16.msra.mxu1 %v698_v26  ;;  %v702_v40 = vpack.c.bf16 %v434_v39, %v433_v38  ;;  %v704_v43 = vpack.c.bf16 %v452_v42, %v451_v41  ;;  %v436_v45 = vld [vmem:[%s1039_s3 + $0x28] sm:$0xff]  ;;  %v453_v47 = vld [vmem:[%s1039_s3 + $0xb0] sm:$0xff]  ;;  %v454_v48 = vld [vmem:[%s1039_s3 + $0xb8] sm:$0xff] }
   0xf   : > { %s219_s15 = scalar_lea.vmem %s1036_s0, %s634_s12  ;;  %701 = vmatprep.subr.bf16.mxu1 %v700_v37  ;;  %v706_v46 = vpack.c.bf16 %v436_v45, %v435_v44  ;;  %v708_v49 = vpack.c.bf16 %v454_v48, %v453_v47  ;;  %v437_v50 = vld [vmem:[%s1039_s3 + $0x30] sm:$0xff]  ;;  %v438_v51 = vld [vmem:[%s1039_s3 + $0x38] sm:$0xff]  ;;  %v455_v53 = vld [vmem:[%s1039_s3 + $0xc0] sm:$0xff]  ;;  %v249_v15 = vsub.s32 0, %v248_v14  ;;  %v253_v17 = vsub.s32 1, %v248_v14  ;;  %s224_s11 = scalar_lea.vmem %s1041_s5, %s634_s12 }
  0x10   : > { %v872_v31 = vld [vmem:[%s219_s15] sm:$0xff]  ;;  %v876_v32 = vld [vmem:[%s219_s15 + $0x8] sm:$0xff]  ;;  %v880_v33 = vld [vmem:[%s219_s15 + $0x10] sm:$0xff]  ;;  %v710_v52 = vpack.c.bf16 %v438_v51, %v437_v50 }
  0x11   : > { %691 = vmatpush1.bf16.msra.mxu0 %v690_v25  ;;  %v884_v34 = vld [vmem:[%s219_s15 + $0x18] sm:$0xff]  ;;  %v456_v54 = vld [vmem:[%s1039_s3 + $0xc8] sm:$0xff]  ;;  %v439_v56 = vld [vmem:[%s1039_s3 + $0x40] sm:$0xff] }
  0x12   : > { %693 = vmatprep.subr.bf16.mxu0 %v692_v27  ;;  %703 = vmatpush3.bf16.msra.mxu1 %v702_v40  ;;  %v712_v55 = vpack.c.bf16 %v456_v54, %v455_v53  ;;  %v440_v57 = vld [vmem:[%s1039_s3 + $0x48] sm:$0xff]  ;;  %v457_v59 = vld [vmem:[%s1039_s3 + $0xd0] sm:$0xff]  ;;  %v458_v60 = vld [vmem:[%s1039_s3 + $0xd8] sm:$0xff] }
  0x13   : > { %705 = vmatprep.subr.bf16.mxu1 %v704_v43  ;;  %v714_v58 = vpack.c.bf16 %v440_v57, %v439_v56  ;;  %v716_v61 = vpack.c.bf16 %v458_v60, %v457_v59  ;;  %v441_v62 = vld [vmem:[%s1039_s3 + $0x50] sm:$0xff]  ;;  %v442_v63 = vld [vmem:[%s1039_s3 + $0x58] sm:$0xff]  ;;  %v459_v1 = vld [vmem:[%s1039_s3 + $0xe0] sm:$0xff] }
  0x14   : > { %v718_v0 = vpack.c.bf16 %v442_v63, %v441_v62  ;;  %v460_v2 = vld [vmem:[%s1039_s3 + $0xe8] sm:$0xff]  ;;  %v443_v3 = vld [vmem:[%s1039_s3 + $0x60] sm:$0xff]  ;;  %v461_v6 = vld [vmem:[%s1039_s3 + $0xf0] sm:$0xff] }
  0x15   : > { %695 = vmatpush1.bf16.msra.mxu0 %v694_v30  ;;  %v720_v4 = vpack.c.bf16 %v460_v2, %v459_v1  ;;  %v444_v5 = vld [vmem:[%s1039_s3 + $0x68] sm:$0xff]  ;;  %v445_v10 = vld [vmem:[%s1039_s3 + $0x70] sm:$0xff]  ;;  %v446_v11 = vld [vmem:[%s1039_s3 + $0x78] sm:$0xff] }
  0x16   : > { %707 = vmatpush3.bf16.msra.mxu1 %v706_v46  ;;  %v722_v8 = vpack.c.bf16 %v444_v5, %v443_v3  ;;  %v726_v12 = vpack.c.bf16 %v446_v11, %v445_v10  ;;  %v245_v16 = vld [vmem:[%s1038_s2] sm:$0x3] }
  0x17   : > { %709 = vmatprep.subr.bf16.mxu1 %v708_v49  ;;  %v250_v18 = vrot.slane %v245_v16, %v249_v15  ;;  %v254_v19 = vrot.slane %v245_v16, %v253_v17 }
  0x18   : > { %627 = vmatmul.mubr.msk.f32.vlgmr.msra.gmra.mrb[0].mxu0 %vm257_vm0, %v872_v31 }
  0x19   : > { %340 = vmatprep.mubr.f32.mxu0 %v761_v7 }
  0x1a   : > { %711 = vmatpush3.bf16.msra.mxu1 %v710_v52 }
  0x1b   : > { %713 = vmatprep.subr.bf16.mxu1 %v712_v55 }
  0x1c   : > { %628 = vmatmul.mubr.msk.f32.gmra.mrb[2].mxu0 %vm257_vm0, %v876_v32 }
  0x1d   : > { %346 = vmatprep.mubr.f32.mxu0 %v761_v7 }
  0x1e   : > { %715 = vmatpush3.bf16.msra.mxu1 %v714_v58 }
  0x1f   : > { %717 = vmatprep.subr.bf16.mxu1 %v716_v61 }
  0x20   : > { %629 = vmatmul.mubr.msk.f32.gmra.mrb[4].mxu0 %vm257_vm0, %v880_v33 }
  0x21   : > { %352 = vmatprep.mubr.f32.mxu0 %v761_v7  ;;  %v462_v7 = vld [vmem:[%s1039_s3 + $0xf8] sm:$0xff] }
  0x22   : > { %719 = vmatpush3.bf16.msra.mxu1 %v718_v0  ;;  %v724_v9 = vpack.c.bf16 %v462_v7, %v461_v6 }
  0x23   : > { %721 = vmatprep.subr.bf16.mxu1 %v720_v4 }
  0x24   : > { %630 = vmatmul.mubr.msk.f32.gmra.mrb[6].mxu0 %vm257_vm0, %v884_v34 }
  0x26   : > { %723 = vmatpush3.bf16.msra.mxu1 %v722_v8 }
  0x27   : > { %725 = vmatprep.subr.bf16.mxu1 %v724_v9 }
  0x2a   : > { %727 = vmatpush3.bf16.msra.mxu1 %v726_v12 }
  0xeb   : > { %v336_v20 = vpop.f32.mrb[0].mxu0 }
  0xec   : > { %v975_v21 = vadd.f32 %v336_v20, %v250_v18  ;;  %v338_v22 = vpop.f32.mrb[1].mxu0 }
  0xed   : > { %v339_v23 = vadd.f32 %v338_v22, %v254_v19 }
  0xee   : > { %v367_v24 = vmul.f32 0.044715, %v975_v21  ;;  %v359_v22 = vmul.f32 0.5, %v975_v21 }
  0xef   : > { %v342_v25 = vpop.f32.mrb[2].mxu0  ;;  %v368_v26 = vmul.f32 0.044715, %v339_v23 }
  0xf0   : > { %v375_v27 = vmul.f32 %v367_v24, %v975_v21  ;;  %v979_v28 = vadd.f32 %v342_v25, %v250_v18  ;;  %v344_v29 = vpop.f32.mrb[3].mxu0 }
  0xf1   : > { %v981_v30 = vadd.f32 %v344_v29, %v254_v19  ;;  %v376_v35 = vmul.f32 %v368_v26, %v339_v23 }
  0xf2   : > { %v369_v36 = vmul.f32 0.044715, %v979_v28  ;;  %v383_v37 = vmul.f32 %v375_v27, %v975_v21 }
  0xf3   : > { %v370_v38 = vmul.f32 0.044715, %v981_v30  ;;  %v348_v39 = vpop.f32.mrb[4].mxu0  ;;  %v384_v40 = vmul.f32 %v376_v35, %v339_v23  ;;  %v362_v35 = vmul.f32 0.5, %v981_v30 }
  0xf4   : > { %v377_v41 = vmul.f32 %v369_v36, %v979_v28  ;;  %v987_v42 = vadd.f32 %v348_v39, %v250_v18  ;;  %v350_v43 = vpop.f32.mrb[5].mxu0  ;;  %v391_v44 = vadd.f32 %v383_v37, %v975_v21  ;;  %v361_v37 = vmul.f32 0.5, %v979_v28 }
  0xf5   : > { %v378_v45 = vmul.f32 %v370_v38, %v981_v30  ;;  %v991_v46 = vadd.f32 %v350_v43, %v254_v19  ;;  %v392_v47 = vadd.f32 %v384_v40, %v339_v23 }
  0xf6   : > { %v371_v48 = vmul.f32 0.044715, %v987_v42  ;;  %v399_v49 = vmul.f32 0.7978846, %v391_v44  ;;  %v385_v50 = vmul.f32 %v377_v41, %v979_v28  ;;  %v363_v44 = vmul.f32 0.5, %v987_v42 }
  0xf7   : > { %v372_v51 = vmul.f32 0.044715, %v991_v46  ;;  %v354_v52 = vpop.f32.mrb[6].mxu0  ;;  %v400_v53 = vmul.f32 0.7978846, %v392_v47  ;;  %v386_v54 = vmul.f32 %v378_v45, %v981_v30  ;;  %v364_v21 = vmul.f32 0.5, %v991_v46 }
  0xf8   : > { %v379_v55 = vmul.f32 %v371_v48, %v987_v42  ;;  %v998_v56 = vadd.f32 %v354_v52, %v250_v18  ;;  %v356_v57 = vpop.f32.mrb[7].mxu0  ;;  %737 = vtanh.f32 %v399_v49  ;;  %v393_v58 = vadd.f32 %v385_v50, %v979_v28 }
  0xf9   : > { %v380_v59 = vmul.f32 %v372_v51, %v991_v46  ;;  %v357_v60 = vadd.f32 %v356_v57, %v254_v19  ;;  %739 = vtanh.f32 %v400_v53  ;;  %v394_v61 = vadd.f32 %v386_v54, %v981_v30 }
  0xfa   : > { %v373_v62 = vmul.f32 0.044715, %v998_v56  ;;  %v401_v63 = vmul.f32 0.7978846, %v393_v58  ;;  %v387_v0 = vmul.f32 %v379_v55, %v987_v42  ;;  %v360_v19 = vmul.f32 0.5, %v339_v23 }
  0xfb   : > { %v374_v1 = vmul.f32 0.044715, %v357_v60  ;;  %v402_v2 = vmul.f32 0.7978846, %v394_v61  ;;  %v388_v3 = vmul.f32 %v380_v59, %v991_v46  ;;  %v366_v28 = vmul.f32 0.5, %v357_v60 }
  0xfc   : > { %v381_v4 = vmul.f32 %v373_v62, %v998_v56  ;;  %741 = vtanh.f32 %v401_v63  ;;  %v395_v5 = vadd.f32 %v387_v0, %v987_v42  ;;  %v365_v51 = vmul.f32 0.5, %v998_v56  ;;  %v631_v42 = vld [vmem:[%s1040_s4] ss:$0 sm:$0xff] }
  0xfd   : > { %v382_v6 = vmul.f32 %v374_v1, %v357_v60  ;;  %743 = vtanh.f32 %v402_v2  ;;  %v396_v7 = vadd.f32 %v388_v3, %v991_v46 }
  0xfe   : > { %v403_v8 = vmul.f32 0.7978846, %v395_v5  ;;  %v389_v9 = vmul.f32 %v381_v4, %v998_v56 }
  0xff   : > { %v404_v10 = vmul.f32 0.7978846, %v396_v7  ;;  %v390_v11 = vmul.f32 %v382_v6, %v357_v60 }
 0x100   : > { %745 = vtanh.f32 %v403_v8  ;;  %v397_v12 = vadd.f32 %v389_v9, %v998_v56 }
 0x101   : > { %747 = vtanh.f32 %v404_v10  ;;  %v398_v13 = vadd.f32 %v390_v11, %v357_v60 }
 0x102   : > { %v738_v14 = vpop.eup %737  ;;  %v405_v15 = vmul.f32 0.7978846, %v397_v12 }
 0x103   : > { %v740_v16 = vpop.eup %739  ;;  %v415_v17 = vadd.f32 1.0, %v738_v14  ;;  %v406_v18 = vmul.f32 0.7978846, %v398_v13 }
 0x104   : > { %v416_v20 = vadd.f32 1.0, %v740_v16  ;;  %749 = vtanh.f32 %v405_v15 }
 0x105   : > { %751 = vtanh.f32 %v406_v18  ;;  %v423_v27 = vmul.f32 %v415_v17, %v359_v22 }
 0x106   : > { %v742_v24 = vpop.eup %741  ;;  %v424_v25 = vmul.f32 %v416_v20, %v360_v19 }
 0x107   : > { %v744_v26 = vpop.eup %743  ;;  %v417_v29 = vadd.f32 1.0, %v742_v24 }
 0x108   : > { %534 = vmatprep.mubr.f32.mxu1 %v424_v25  ;;  %v418_v36 = vadd.f32 1.0, %v744_v26 }
 0x109   : > { %535 = vmatmul.mubr.f32.vlgmr.msra.gmra.mrb[0].mxu1 %v423_v27  ;;  %v425_v40 = vmul.f32 %v417_v29, %v361_v37 }
 0x10a   : > { %v746_v38 = vpop.eup %745  ;;  %v426_v39 = vmul.f32 %v418_v36, %v362_v35 }
 0x10b   : > { %v748_v23 = vpop.eup %747  ;;  %v419_v41 = vadd.f32 1.0, %v746_v38 }
 0x10c   : > { %539 = vmatprep.mubr.f32.mxu1 %v426_v39  ;;  %v420_v43 = vadd.f32 1.0, %v748_v23 }
 0x10d   : > { %540 = vmatmul.mubr.f32.gmra.mrb[2].mxu1 %v425_v40  ;;  %v427_v30 = vmul.f32 %v419_v41, %v363_v44 }
 0x10e   : > { %v750_v45 = vpop.eup %749  ;;  %v428_v47 = vmul.f32 %v420_v43, %v364_v21 }
 0x10f   : > { %v752_v48 = vpop.eup %751  ;;  %v421_v49 = vadd.f32 1.0, %v750_v45 }
 0x110   : > { %544 = vmatprep.mubr.f32.mxu1 %v428_v47  ;;  %v422_v50 = vadd.f32 1.0, %v752_v48 }
 0x111   : > { %545 = vmatmul.mubr.f32.gmra.mrb[4].mxu1 %v427_v30  ;;  %v429_v53 = vmul.f32 %v421_v49, %v365_v51 }
 0x112   : > { %v430_v52 = vmul.f32 %v422_v50, %v366_v28 }
 0x114   : > { %549 = vmatprep.mubr.f32.mxu1 %v430_v52 }
 0x115   : > { %550 = vmatmul.mubr.f32.gmra.mrb[6].mxu1 %v429_v53 }
 0x1dc   : > { %v668_v46 = vpop.f32.mrb[0].mxu1 }
 0x1dd   : > { %v669_v54 = vpop.f32.mrb[1].mxu1 }
 0x1de   : > { %v670_v55 = vadd.f32 %v669_v54, %v668_v46 }
 0x1e0   : > { %v537_v57 = vadd.f32 %v670_v55, %v631_v42  ;;  %v671_v58 = vpop.f32.mrb[2].mxu1 }
 0x1e1   : > { %v672_v59 = vpop.f32.mrb[3].mxu1 }
 0x1e2   : > { %v555_v56 = vadd.f32 %v537_v57, %v872_v31  ;;  %v673_v60 = vadd.f32 %v672_v59, %v671_v58 }
 0x1e4   : > { %559 = vst.msk [vmem:[%s224_s11] sm:$0xff] %vm257_vm0, %v555_v56  ;;  %v542_v61 = vadd.f32 %v673_v60, %v631_v42  ;;  %v674_v62 = vpop.f32.mrb[4].mxu1 }
 0x1e5   : > { %v675_v63 = vpop.f32.mrb[5].mxu1 }
 0x1e6   : > { %v556_v0 = vadd.f32 %v542_v61, %v876_v32  ;;  %v676_v1 = vadd.f32 %v675_v63, %v674_v62 }
 0x1e8   : > { %560 = vst.msk [vmem:[%s224_s11 + $0x8] sm:$0xff] %vm257_vm0, %v556_v0  ;;  %v547_v2 = vadd.f32 %v676_v1, %v631_v42  ;;  %v677_v3 = vpop.f32.mrb[6].mxu1 }
 0x1e9   : > { %v678_v4 = vpop.f32.mrb[7].mxu1 }
 0x1ea   : > { %v557_v5 = vadd.f32 %v547_v2, %v880_v33  ;;  %v679_v6 = vadd.f32 %v678_v4, %v677_v3 }
 0x1ec   : > { %561 = vst.msk [vmem:[%s224_s11 + $0x10] sm:$0xff] %vm257_vm0, %v557_v5  ;;  %v552_v31 = vadd.f32 %v679_v6, %v631_v42 }
 0x1ee   : > { %v558_v7 = vadd.f32 %v552_v31, %v884_v34 }
 0x1f0   : > { %562 = vst.msk [vmem:[%s224_s11 + $0x18] sm:$0xff] %vm257_vm0, %v558_v7 }
 0x1f1 PF: > { %s15_s18 = sadd.s32 1, %s759_s18  }
 0x1f2   : > { %p12_p4 = scmp.ge.s32.totalorder %s15_s18, 4  }
 0x1f4   :  { %14 = sbr.rel (!%p12_p4) target bundleno = 1 (0x1), region = 70 }

// kernel: _lambda_.4
= control target key start
LH: loop header
LB: loop body
LE: loop exit
PB: predicated region body
PF: predicated region fallthrough
CT: control target
= control target key end

     0   :  { %s3913_s25 = smov 0   ;;  %s4675_s0 = inlined_call_operand.vmem [shape: f32[2,32,64], index: 0, kind: input, shape index: {}]   ;;  %s4676_s1 = inlined_call_operand.vmem [shape: f32[2,96,64], index: 1, kind: input, shape index: {}]   ;;  %s4677_s2 = inlined_call_operand.vmem [shape: f32[1,64], index: 2, kind: input, shape index: {}]   ;;  %s4678_s3 = inlined_call_operand.vmem [shape: f32[1,64], index: 3, kind: input, shape index: {}]   ;;  %s4679_s4 = inlined_call_operand.vmem [shape: f32[1,64], index: 4, kind: input, shape index: {}]   ;;  %s4680_s5 = inlined_call_operand.vmem [shape: f32[1,64], index: 5, kind: input, shape index: {}]   ;;  %s4681_s6 = inlined_call_operand.vmem [shape: f32[64,64], index: 6, kind: input, shape index: {}]   ;;  %s4682_s7 = inlined_call_operand.vmem [shape: f32[1,64], index: 7, kind: input, shape index: {}]   ;;  %s4683_s8 = inlined_call_operand.vmem [shape: f32[64,128], index: 8, kind: input, shape index: {}]   ;;  %s4684_s9 = inlined_call_operand.vmem [shape: f32[1,128], index: 9, kind: input, shape index: {}]   ;;  %s4685_s10 = inlined_call_operand.vmem [shape: f32[64,64], index: 10, kind: input, shape index: {}]   ;;  %s4686_s11 = inlined_call_operand.vmem [shape: f32[1,64], index: 11, kind: input, shape index: {}]   ;;  %s4687_s12 = inlined_call_operand.vmem [shape: f32[1,64], index: 12, kind: input, shape index: {}]   ;;  %s4688_s13 = inlined_call_operand.vmem [shape: f32[2,32,64], index: 13, kind: output, shape index: {}]  }
   0x1 LB: > { %s2594_s26 = sadd.s32 4294967295, %s3834_s25   ;;  %p2598_p0 = scmp.ge.s32.totalorder %s3834_s25, 1  ;;  %s3834_s25 = sphi %s3913_s25, %s23_s25  }
   0x2   : > { %p397_p1 = scmp.lt.s32.totalorder %s3834_s25, 3 }
   0x4   : > { %p398_p2 = pnand %p2598_p0, %p397_p1 }
   0x5   : > { %p446_p3 = scmp.lt.s32.totalorder (!%p398_p2), %s2594_s26, 1  ;;  %vm479_vm0 = vcmask (!%p398_p2), 523264   ;;  %vm1035_vm1 = vcmask (!%p398_p2), 130048   ;;  %s3836_s21 = smov (!%p398_p2), 64   ;;  %vm1169_vm3 = vcmask (!%p398_p2), 785408   ;;  %vm1693_vm4 = vcmask (!%p398_p2), 261248  }
   0x6   : > { %401 = sbr.rel (%p398_p2) target bundleno = 2883 (0xb43), region = 72  ;;  %vm4214_vm2 = vmpackc.low (!%p398_p2), %vm1035_vm1, %vm1035_vm1  ;;  %s3837_s22 = smov (!%p398_p2), 112   ;;  %vm2040_vm5 = vcmask (!%p398_p2), 392448   ;;  %vm2387_vm6 = vcmask (!%p398_p2), 523648  }
   0x7   : > { %s3839_s28 = smov (!%p398_p2), 96   ;;  %s3840_s29 = smov (!%p398_p2), 32  }
   0x8   : > { %s3842_s15 = smov (!%p398_p2), 16  }
   0xd   : > { %s4692_s26 = smov (!%p446_p3, %s2594_s26), 1 }
   0xe   : > { %s3502_s27 = smul.u32 96, %s4692_s26  ;;  %s2714_s14 = sshll.u32 %s4692_s26, 5 }
   0xf   : > { %s3973_s17 = scalar_lea.vmem %s4675_s0, %s2714_s14 }
  0x10   : > { %s3927_s30 = scalar_lea.vmem %s4676_s1, %s3502_s27  ;;  %v3980_v24 = vld [vmem:[%s3973_s17] sm:$0xff]  ;;  %v3983_v25 = vld [vmem:[%s3973_s17 + $0x8] sm:$0xff]  ;;  %v4008_v50 = vld [vmem:[%s3973_s17 + $0x10] sm:$0xff]  ;;  %s3838_s27 = smov 48  }
  0x11   : > { %v465_v0 = vld [vmem:[%s3927_s30] sm:$0xff]  ;;  %v467_v1 = vld [vmem:[%s3927_s30 + $0x10] sm:$0xff]  ;;  %v466_v2 = vld [vmem:[%s3927_s30 + $0x8] sm:$0xff]  ;;  %v480_v26 = vsel %vm479_vm0, %v3980_v24, 0.0  ;;  %v483_v27 = vsel %vm479_vm0, %v3983_v25, 0.0  ;;  %v486_v55 = vsel %vm479_vm0, %v4008_v50, 0.0 }
  0x12   : > { %v555_v3 = vsel %vm479_vm0, %v465_v0, 0.0  ;;  %v561_v4 = vsel %vm479_vm0, %v467_v1, 0.0  ;;  %v468_v5 = vld [vmem:[%s3927_s30 + $0x18] sm:$0xff]  ;;  %v558_v6 = vsel %vm479_vm0, %v466_v2, 0.0  ;;  %v469_v8 = vld [vmem:[%s3927_s30 + $0x20] sm:$0xff]  ;;  %v470_v9 = vld [vmem:[%s3927_s30 + $0x28] sm:$0xff] }
  0x13   : > { %556 = vadd.xlane.f32.xlu0 %v555_v3  ;;  %562 = vadd.xlane.f32.xlu1 %v561_v4  ;;  %v564_v7 = vsel %vm479_vm0, %v468_v5, 0.0  ;;  %v567_v10 = vsel %vm479_vm0, %v469_v8, 0.0  ;;  %v570_v11 = vsel %vm479_vm0, %v470_v9, 0.0  ;;  %v3942_v12 = vld [vmem:[%s3927_s30 + $0x30] sm:$0xff]  ;;  %v3945_v13 = vld [vmem:[%s3927_s30 + $0x38] sm:$0xff]  ;;  %v3952_v16 = vld [vmem:[%s3927_s30 + $0x40] sm:$0xff] }
  0x14   : > { %v573_v14 = vsel %vm479_vm0, %v3942_v12, 0.0  ;;  %v576_v15 = vsel %vm479_vm0, %v3945_v13, 0.0  ;;  %v3955_v17 = vld [vmem:[%s3927_s30 + $0x48] sm:$0xff]  ;;  %v579_v18 = vsel %vm479_vm0, %v3952_v16, 0.0  ;;  %v3963_v20 = vld [vmem:[%s3927_s30 + $0x50] sm:$0xff]  ;;  %v3966_v21 = vld [vmem:[%s3927_s30 + $0x58] sm:$0xff] }
  0x15   : > { %v582_v19 = vsel %vm479_vm0, %v3955_v17, 0.0  ;;  %v585_v22 = vsel %vm479_vm0, %v3963_v20, 0.0  ;;  %v588_v23 = vsel %vm479_vm0, %v3966_v21, 0.0  ;;  %v4019_v60 = vld [vmem:[%s3973_s17 + $0x18] sm:$0xff]  ;;  %s3841_s30 = smov 80  }
  0x17   : > { %559 = vadd.xlane.f32.xlu0 %v558_v6  ;;  %565 = vadd.xlane.f32.xlu1 %v564_v7 }
  0x1b   : > { %568 = vadd.xlane.f32.xlu0 %v567_v10  ;;  %571 = vadd.xlane.f32.xlu1 %v570_v11 }
  0x1f   : > { %574 = vadd.xlane.f32.xlu0 %v573_v14  ;;  %577 = vadd.xlane.f32.xlu1 %v576_v15 }
  0x23   : > { %580 = vadd.xlane.f32.xlu0 %v579_v18  ;;  %583 = vadd.xlane.f32.xlu1 %v582_v19 }
  0x27   : > { %586 = vadd.xlane.f32.xlu0 %v585_v22  ;;  %589 = vadd.xlane.f32.xlu1 %v588_v23 }
  0x2b   : > { %481 = vadd.xlane.f32.xlu0 %v480_v26  ;;  %484 = vadd.xlane.f32.xlu1 %v483_v27 }
  0xa0   : > { %v557_v28 = vpop.xlane.xlu0 %556  ;;  %v563_v29 = vpop.xlane.xlu1 %562 }
  0xa1   : > { %v591_v30 = vmul.f32 0.015625, %v557_v28  ;;  %v593_v31 = vmul.f32 0.015625, %v563_v29 }
  0xa3   : > { %v3989_v32 = vsub.f32 %v465_v0, %v591_v30  ;;  %v3991_v33 = vsub.f32 %v467_v1, %v593_v31  ;;  %v489_v1 = vsel %vm479_vm0, %v4019_v60, 0.0 }
  0xa4   : > { %v560_v34 = vpop.xlane.xlu0 %559  ;;  %v566_v35 = vpop.xlane.xlu1 %565 }
  0xa5   : > { %v592_v36 = vmul.f32 0.015625, %v560_v34  ;;  %v594_v37 = vmul.f32 0.015625, %v566_v35  ;;  %v615_v38 = vmul.f32 %v3989_v32, %v3989_v32  ;;  %v617_v39 = vmul.f32 %v3991_v33, %v3991_v33 }
  0xa7   : > { %v3997_v40 = vsub.f32 %v466_v2, %v592_v36  ;;  %v3999_v41 = vsub.f32 %v468_v5, %v594_v37  ;;  %v627_v42 = vsel %vm479_vm0, %v615_v38, 0.0  ;;  %v633_v44 = vsel %vm479_vm0, %v617_v39, 0.0  ;;  %v860_v38 = vld [vmem:[%s4683_s8 + $0x8] sm:$0xff] }
  0xa8   : > { %628 = vadd.xlane.f32.xlu0 %v627_v42  ;;  %v569_v43 = vpop.xlane.xlu0 %568  ;;  %v572_v45 = vpop.xlane.xlu1 %571 }
  0xa9   : > { %v595_v46 = vmul.f32 0.015625, %v569_v43  ;;  %v616_v47 = vmul.f32 %v3997_v40, %v3997_v40  ;;  %v596_v48 = vmul.f32 0.015625, %v572_v45  ;;  %v618_v49 = vmul.f32 %v3999_v41, %v3999_v41  ;;  %v862_v45 = vld [vmem:[%s4683_s8 + $0x18] sm:$0xff] }
  0xab   : > { %v4010_v51 = vsub.f32 %v469_v8, %v595_v46  ;;  %v630_v52 = vsel %vm479_vm0, %v616_v47, 0.0  ;;  %v4013_v53 = vsub.f32 %v470_v9, %v596_v48  ;;  %v636_v58 = vsel %vm479_vm0, %v618_v49, 0.0  ;;  %v863_v48 = vld [vmem:[%s4683_s8 + $0x20] sm:$0xff]  ;;  %v864_v49 = vld [vmem:[%s4683_s8 + $0x28] sm:$0xff] }
  0xac   : > { %631 = vadd.xlane.f32.xlu1 %v630_v52  ;;  %634 = vadd.xlane.f32.xlu0 %v633_v44  ;;  %v575_v54 = vpop.xlane.xlu0 %574  ;;  %v578_v56 = vpop.xlane.xlu1 %577  ;;  %v861_v44 = vld [vmem:[%s4683_s8 + $0x10] sm:$0xff]  ;;  %v3230_v52 = vpack.c.bf16 %v864_v49, %v863_v48 }
  0xad   : > { %v597_v57 = vmul.f32 0.015625, %v575_v54  ;;  %v598_v59 = vmul.f32 0.015625, %v578_v56  ;;  %v619_v61 = vmul.f32 %v4010_v51, %v4010_v51  ;;  %v620_v3 = vmul.f32 %v4013_v53, %v4013_v53  ;;  %v865_v54 = vld [vmem:[%s4683_s8 + $0x30] sm:$0xff] }
  0xae   : > { %v3226_v46 = vpack.c.bf16 %v862_v45, %v861_v44 }
  0xaf   : > { %v4024_v62 = vsub.f32 %v3942_v12, %v597_v57  ;;  %v4027_v63 = vsub.f32 %v3945_v13, %v598_v59  ;;  %v639_v5 = vsel %vm479_vm0, %v619_v61, 0.0  ;;  %v642_v11 = vsel %vm479_vm0, %v620_v3, 0.0  ;;  %v747_v57 = vld [vmem:[%s4681_s6] sm:$0xff]  ;;  %v749_v61 = vld [vmem:[%s4681_s6 + $0x10] sm:$0xff]  ;;  %v752_v3 = vld [vmem:[%s4681_s6 + $0x28] sm:$0xff] }
  0xb0   : > { %637 = vadd.xlane.f32.xlu1 %v636_v58  ;;  %487 = vadd.xlane.f32.xlu0 %v486_v55  ;;  %v581_v0 = vpop.xlane.xlu0 %580  ;;  %v584_v2 = vpop.xlane.xlu1 %583  ;;  %v866_v55 = vld [vmem:[%s4683_s8 + $0x38] sm:$0xff]  ;;  %v748_v58 = vld [vmem:[%s4681_s6 + $0x8] sm:$0xff] }
  0xb1   : > { %v599_v4 = vmul.f32 0.015625, %v581_v0  ;;  %v600_v6 = vmul.f32 0.015625, %v584_v2  ;;  %v621_v7 = vmul.f32 %v4024_v62, %v4024_v62  ;;  %v622_v13 = vmul.f32 %v4027_v63, %v4027_v63  ;;  %v750_v0 = vld [vmem:[%s4681_s6 + $0x18] sm:$0xff]  ;;  %v751_v2 = vld [vmem:[%s4681_s6 + $0x20] sm:$0xff] }
  0xb2   : > { %v3234_v56 = vpack.c.bf16 %v866_v55, %v865_v54  ;;  %v3206_v59 = vpack.c.bf16 %v748_v58, %v747_v57 }
  0xb3   : > { %v4037_v8 = vsub.f32 %v3952_v16, %v599_v4  ;;  %v4040_v9 = vsub.f32 %v3955_v17, %v600_v6  ;;  %v645_v15 = vsel %vm479_vm0, %v621_v7, 0.0  ;;  %v648_v22 = vsel %vm479_vm0, %v622_v13, 0.0  ;;  %v754_v6 = vld [vmem:[%s4681_s6 + $0x38] sm:$0xff] }
  0xb4   : > { %490 = vadd.xlane.f32.xlu1 %v489_v1  ;;  %640 = vadd.xlane.f32.xlu0 %v639_v5  ;;  %v587_v10 = vpop.xlane.xlu0 %586  ;;  %v590_v12 = vpop.xlane.xlu1 %589  ;;  %v3210_v1 = vpack.c.bf16 %v750_v0, %v749_v61  ;;  %v3214_v4 = vpack.c.bf16 %v752_v3, %v751_v2  ;;  %v753_v5 = vld [vmem:[%s4681_s6 + $0x30] sm:$0xff] }
  0xb5   : > { %v601_v14 = vmul.f32 0.015625, %v587_v10  ;;  %v602_v18 = vmul.f32 0.015625, %v590_v12  ;;  %v623_v16 = vmul.f32 %v4037_v8, %v4037_v8  ;;  %v624_v26 = vmul.f32 %v4040_v9, %v4040_v9  ;;  %3207 = vmatprep.subr.bf16.mxu0 %v3206_v59 }
  0xb6   : > { %3209 = vmatpush3.bf16.msra.mxu0 %v3206_v59  ;;  %v3218_v7 = vpack.c.bf16 %v754_v6, %v753_v5 }
  0xb7   : > { %v4049_v19 = vsub.f32 %v3963_v20, %v601_v14  ;;  %v4052_v17 = vsub.f32 %v3966_v21, %v602_v18  ;;  %v651_v28 = vsel %vm479_vm0, %v623_v16, 0.0  ;;  %v654_v21 = vsel %vm479_vm0, %v624_v26, 0.0  ;;  %3211 = vmatprep.subr.bf16.mxu0 %v3210_v1 }
  0xb8   : > { %643 = vadd.xlane.f32.xlu1 %v642_v11  ;;  %646 = vadd.xlane.f32.xlu0 %v645_v15  ;;  %v482_v23 = vpop.xlane.xlu0 %481  ;;  %v485_v27 = vpop.xlane.xlu1 %484 }
  0xb9   : > { %v493_v29 = vmul.f32 0.015625, %v482_v23  ;;  %v494_v30 = vmul.f32 0.015625, %v485_v27  ;;  %v625_v20 = vmul.f32 %v4049_v19, %v4049_v19  ;;  %v626_v36 = vmul.f32 %v4052_v17, %v4052_v17 }
  0xba   : > { %3213 = vmatpush3.bf16.msra.mxu0 %v3210_v1 }
  0xbb   : > { %v4061_v31 = vsub.f32 %v3980_v24, %v493_v29  ;;  %v4065_v34 = vsub.f32 %v3983_v25, %v494_v30  ;;  %v657_v35 = vsel %vm479_vm0, %v625_v20, 0.0  ;;  %v859_v24 = vld [vmem:[%s4683_s8] sm:$0xff]  ;;  %v660_v25 = vsel %vm479_vm0, %v626_v36, 0.0  ;;  %3215 = vmatprep.subr.bf16.mxu0 %v3214_v4 }
  0xbc   : > { %649 = vadd.xlane.f32.xlu1 %v648_v22  ;;  %652 = vadd.xlane.f32.xlu0 %v651_v28  ;;  %v3222_v39 = vpack.c.bf16 %v860_v38, %v859_v24 }
  0xbd   : > { %v501_v37 = vmul.f32 %v4061_v31, %v4061_v31  ;;  %v502_v43 = vmul.f32 %v4065_v34, %v4065_v34 }
  0xbe   : > { %3223 = vmatprep.subr.bf16.mxu1 %v3222_v39  ;;  %3217 = vmatpush3.bf16.msra.mxu0 %v3214_v4 }
  0xbf   : > { %v505_v42 = vsel %vm479_vm0, %v501_v37, 0.0  ;;  %3225 = vmatpush3.bf16.msra.mxu1 %v3222_v39  ;;  %v508_v47 = vsel %vm479_vm0, %v502_v43, 0.0  ;;  %3219 = vmatprep.subr.bf16.mxu0 %v3218_v7 }
  0xc0   : > { %655 = vadd.xlane.f32.xlu1 %v654_v21  ;;  %658 = vadd.xlane.f32.xlu0 %v657_v35 }
  0xc1   : > { %3227 = vmatprep.subr.bf16.mxu1 %v3226_v46 }
  0xc2   : > { %3221 = vmatpush3.bf16.msra.mxu0 %v3218_v7 }
  0xc3   : > { %3229 = vmatpush3.bf16.msra.mxu1 %v3226_v46 }
  0xc4   : > { %661 = vadd.xlane.f32.xlu1 %v660_v25  ;;  %506 = vadd.xlane.f32.xlu0 %v505_v42 }
  0xc5   : > { %3231 = vmatprep.subr.bf16.mxu1 %v3230_v52 }
  0xc7   : > { %3233 = vmatpush3.bf16.msra.mxu1 %v3230_v52 }
  0xc8   : > { %509 = vadd.xlane.f32.xlu1 %v508_v47  ;;  %3235 = vmatprep.subr.bf16.mxu1 %v3234_v56  ;;  %v4145_v47 = vld [vmem:[%s4680_s5] ss:$0 sm:$0xff] }
  0xcb   : > { %3237 = vmatpush3.bf16.msra.mxu1 %v3234_v56 }
 0x135   : > { %v629_v10 = vpop.xlane.xlu0 %628 }
 0x136   : > { %v663_v11 = vmul.f32 0.015625, %v629_v10 }
 0x138   : > { %v675_v12 = vadd.f32 1e-06, %v663_v11 }
 0x139   : > { %v632_v13 = vpop.xlane.xlu1 %631  ;;  %v635_v14 = vpop.xlane.xlu0 %634 }
 0x13a   : > { %3728 = vrsqrt.f32 %v675_v12  ;;  %v664_v15 = vmul.f32 0.015625, %v632_v13  ;;  %v665_v18 = vmul.f32 0.015625, %v635_v14 }
 0x13c   : > { %v676_v16 = vadd.f32 1e-06, %v664_v15  ;;  %v677_v22 = vadd.f32 1e-06, %v665_v18 }
 0x13d   : > { %v638_v23 = vpop.xlane.xlu1 %637  ;;  %v488_v26 = vpop.xlane.xlu0 %487 }
 0x13e   : > { %3730 = vrsqrt.f32 %v676_v16  ;;  %v666_v27 = vmul.f32 0.015625, %v638_v23  ;;  %v495_v28 = vmul.f32 0.015625, %v488_v26 }
 0x13f   : > { %3732 = vrsqrt.f32 %v677_v22 }
 0x140   : > { %v678_v29 = vadd.f32 1e-06, %v666_v27  ;;  %v4126_v30 = vsub.f32 %v4008_v50, %v495_v28  ;;  %v4137_v50 = vld [vmem:[%s4679_s4] ss:$0 sm:$0xff] }
 0x141   : > { %v491_v20 = vpop.xlane.xlu1 %490  ;;  %v641_v21 = vpop.xlane.xlu0 %640 }
 0x142   : > { %3734 = vrsqrt.f32 %v678_v29  ;;  %v496_v35 = vmul.f32 0.015625, %v491_v20  ;;  %v667_v36 = vmul.f32 0.015625, %v641_v21  ;;  %v503_v37 = vmul.f32 %v4126_v30, %v4126_v30 }
 0x144   : > { %v3729_v24 = vpop.eup %3728  ;;  %v4131_v38 = vsub.f32 %v4019_v60, %v496_v35  ;;  %v679_v39 = vadd.f32 1e-06, %v667_v36  ;;  %v511_v25 = vsel %vm479_vm0, %v503_v37, 0.0 }
 0x145   : > { %v644_v42 = vpop.xlane.xlu1 %643  ;;  %512 = vadd.xlane.f32.xlu0 %v511_v25  ;;  %v647_v43 = vpop.xlane.xlu0 %646  ;;  %v699_v44 = vmul.f32 %v3729_v24, %v3989_v32 }
 0x146   : > { %3736 = vrsqrt.f32 %v679_v39  ;;  %v668_v45 = vmul.f32 0.015625, %v644_v42  ;;  %v669_v46 = vmul.f32 0.015625, %v647_v43  ;;  %v504_v60 = vmul.f32 %v4131_v38, %v4131_v38 }
 0x147   : > { %v717_v48 = vmul.f32 %v4137_v50, %v699_v44 }
 0x148   : > { %v3731_v49 = vpop.eup %3730  ;;  %v680_v52 = vadd.f32 1e-06, %v668_v45  ;;  %v681_v54 = vadd.f32 1e-06, %v669_v46  ;;  %v514_v55 = vsel %vm479_vm0, %v504_v60, 0.0 }
 0x149   : > { %v3733_v56 = vpop.eup %3732  ;;  %515 = vadd.xlane.f32.xlu1 %v514_v55  ;;  %v650_v32 = vpop.xlane.xlu1 %649  ;;  %v735_v58 = vadd.f32 %v4145_v47, %v717_v48  ;;  %v700_v59 = vmul.f32 %v3731_v49, %v3997_v40 }
 0x14a   : > { %v653_v57 = vpop.xlane.xlu0 %652  ;;  %3738 = vrsqrt.f32 %v680_v52  ;;  %v670_v61 = vmul.f32 0.015625, %v650_v32  ;;  %v701_v1 = vmul.f32 %v3733_v56, %v3991_v33 }
 0x14b   : > { %v671_v0 = vmul.f32 0.015625, %v653_v57  ;;  %3740 = vrsqrt.f32 %v681_v54  ;;  %2926 = vmatprep.mubr.msk.f32.mxu1 %vm479_vm0, %v735_v58  ;;  %v718_v2 = vmul.f32 %v4137_v50, %v700_v59 }
 0x14c   : > { %v3735_v3 = vpop.eup %3734  ;;  %v682_v4 = vadd.f32 1e-06, %v670_v61  ;;  %v719_v6 = vmul.f32 %v4137_v50, %v701_v1 }
 0x14d   : > { %v683_v5 = vadd.f32 1e-06, %v671_v0  ;;  %v656_v7 = vpop.xlane.xlu1 %655  ;;  %v736_v11 = vadd.f32 %v4145_v47, %v718_v2  ;;  %v702_v40 = vmul.f32 %v3735_v3, %v3999_v41  ;;  %v2605_v3 = vld [vmem:[%s4678_s3] ss:$0 sm:$0xff] }
 0x14e   : > { %v659_v10 = vpop.xlane.xlu0 %658  ;;  %3742 = vrsqrt.f32 %v682_v4  ;;  %v672_v12 = vmul.f32 0.015625, %v656_v7  ;;  %v737_v33 = vadd.f32 %v4145_v47, %v719_v6 }
 0x14f   : > { %v673_v13 = vmul.f32 0.015625, %v659_v10  ;;  %3744 = vrsqrt.f32 %v683_v5  ;;  %2927 = vmatmul.mubr.msk.f32.vlgmr.msra.gmra.mrb[0].mxu1 %vm479_vm0, %v736_v11  ;;  %v720_v14 = vmul.f32 %v4137_v50, %v702_v40 }
 0x150   : > { %v3737_v15 = vpop.eup %3736  ;;  %v684_v18 = vadd.f32 1e-06, %v672_v12  ;;  %2929 = vmatprep.mubr.msk.f32.mxu1 %vm479_vm0, %v737_v33 }
 0x151   : > { %v685_v16 = vadd.f32 1e-06, %v673_v13  ;;  %v662_v22 = vpop.xlane.xlu1 %661  ;;  %v738_v26 = vadd.f32 %v4145_v47, %v720_v14  ;;  %v703_v41 = vmul.f32 %v3737_v15, %v4010_v51 }
 0x152   : > { %v507_v23 = vpop.xlane.xlu0 %506  ;;  %3746 = vrsqrt.f32 %v684_v18  ;;  %v674_v27 = vmul.f32 0.015625, %v662_v22 }
 0x153   : > { %v517_v28 = vmul.f32 0.015625, %v507_v23  ;;  %3748 = vrsqrt.f32 %v685_v16  ;;  %2930 = vmatmul.mubr.msk.f32.gmra.mrb[2].mxu1 %vm479_vm0, %v738_v26  ;;  %v721_v29 = vmul.f32 %v4137_v50, %v703_v41  ;;  %v2613_v41 = vld [vmem:[%s4684_s9] ss:$0 sm:$0xff] }
 0x154   : > { %v3739_v20 = vpop.eup %3738  ;;  %v686_v21 = vadd.f32 1e-06, %v674_v27 }
 0x155   : > { %v521_v35 = vadd.f32 1e-06, %v517_v28  ;;  %v3741_v36 = vpop.eup %3740  ;;  %v510_v37 = vpop.xlane.xlu1 %509  ;;  %v739_v24 = vadd.f32 %v4145_v47, %v721_v29  ;;  %v704_v39 = vmul.f32 %v3739_v20, %v4013_v53 }
 0x156   : > { %3750 = vrsqrt.f32 %v686_v21  ;;  %v518_v25 = vmul.f32 0.015625, %v510_v37  ;;  %v705_v51 = vmul.f32 %v3741_v36, %v4024_v62 }
 0x157   : > { %3752 = vrsqrt.f32 %v521_v35  ;;  %2932 = vmatprep.mubr.msk.f32.mxu1 %vm479_vm0, %v739_v24  ;;  %v722_v42 = vmul.f32 %v4137_v50, %v704_v39 }
 0x158   : > { %v3743_v43 = vpop.eup %3742  ;;  %v522_v44 = vadd.f32 1e-06, %v518_v25  ;;  %v723_v45 = vmul.f32 %v4137_v50, %v705_v51 }
 0x159   : > { %v3745_v46 = vpop.eup %3744  ;;  %v740_v60 = vadd.f32 %v4145_v47, %v722_v42  ;;  %v706_v48 = vmul.f32 %v3743_v43, %v4027_v63 }
 0x15a   : > { %3754 = vrsqrt.f32 %v522_v44  ;;  %v741_v53 = vadd.f32 %v4145_v47, %v723_v45  ;;  %v707_v49 = vmul.f32 %v3745_v46, %v4037_v8 }
 0x15b   : > { %2933 = vmatmul.mubr.msk.f32.gmra.mrb[4].mxu1 %vm479_vm0, %v740_v60  ;;  %v724_v62 = vmul.f32 %v4137_v50, %v706_v48 }
 0x15c   : > { %v3747_v52 = vpop.eup %3746  ;;  %2935 = vmatprep.mubr.msk.f32.mxu1 %vm479_vm0, %v741_v53  ;;  %v725_v54 = vmul.f32 %v4137_v50, %v707_v49 }
 0x15d   : > { %v3749_v55 = vpop.eup %3748  ;;  %v742_v56 = vadd.f32 %v4145_v47, %v724_v62  ;;  %v708_v32 = vmul.f32 %v3747_v52, %v4040_v9  ;;  %v2604_v9 = vld [vmem:[%s4677_s2] ss:$0 sm:$0xff] }
 0x15e   : > { %v743_v63 = vadd.f32 %v4145_v47, %v725_v54  ;;  %v709_v57 = vmul.f32 %v3749_v55, %v4049_v19 }
 0x15f   : > { %2936 = vmatmul.mubr.msk.f32.gmra.mrb[6].mxu1 %vm479_vm0, %v742_v56  ;;  %v726_v8 = vmul.f32 %v4137_v50, %v708_v32 }
 0x160   : > { %v3751_v58 = vpop.eup %3750  ;;  %2938 = vmatprep.mubr.msk.f32.mxu1 %vm479_vm0, %v743_v63  ;;  %v727_v59 = vmul.f32 %v4137_v50, %v709_v57 }
 0x161   : > { %v3753_v61 = vpop.eup %3752  ;;  %v744_v0 = vadd.f32 %v4145_v47, %v726_v8  ;;  %v710_v1 = vmul.f32 %v3751_v58, %v4052_v17 }
 0x162   : > { %v745_v19 = vadd.f32 %v4145_v47, %v727_v59  ;;  %v529_v2 = vmul.f32 %v3753_v61, %v4061_v31 }
 0x163   : > { %2939 = vmatmul.mubr.msk.f32.gmra.mrb[8].mxu1 %vm479_vm0, %v744_v0  ;;  %v728_v4 = vmul.f32 %v4137_v50, %v710_v1  ;;  %v2608_v0 = vld [vmem:[%s4682_s7] ss:$0 sm:$0xff] }
 0x164   : > { %v3755_v5 = vpop.eup %3754  ;;  %2941 = vmatprep.mubr.msk.f32.mxu1 %vm479_vm0, %v745_v19  ;;  %v539_v6 = vmul.f32 %v2604_v9, %v529_v2 }
 0x165   : > { %v746_v7 = vadd.f32 %v4145_v47, %v728_v4  ;;  %v530_v17 = vmul.f32 %v3755_v5, %v4065_v34 }
 0x166   : > { %v549_v10 = vadd.f32 %v2605_v3, %v539_v6 }
 0x167   : > { %2942 = vmatmul.mubr.msk.f32.gmra.mrb[10].mxu1 %vm479_vm0, %v746_v7  ;;  %v540_v31 = vmul.f32 %v2604_v9, %v530_v17 }
 0x168   : > { %2904 = vmatprep.mubr.msk.f32.mxu0 %vm479_vm0, %v549_v10 }
 0x169   : > { %v550_v11 = vadd.f32 %v2605_v3, %v540_v31 }
 0x16b   : > { %2905 = vmatmul.mubr.msk.f32.vlgmr.msra.gmra.mrb[0].mxu0 %vm479_vm0, %v550_v11 }
 0x1d2   : > { %v513_v40 = vpop.xlane.xlu0 %512 }
 0x1d3   : > { %v519_v12 = vmul.f32 0.015625, %v513_v40 }
 0x1d5   : > { %v523_v50 = vadd.f32 1e-06, %v519_v12 }
 0x1d6   : > { %v516_v13 = vpop.xlane.xlu1 %515 }
 0x1d7   : > { %3756 = vrsqrt.f32 %v523_v50  ;;  %v520_v33 = vmul.f32 0.015625, %v516_v13 }
 0x1d9   : > { %v524_v14 = vadd.f32 1e-06, %v520_v33 }
 0x1db   : > { %3758 = vrsqrt.f32 %v524_v14 }
 0x1e1   : > { %v3757_v47 = vpop.eup %3756 }
 0x1e2   : > { %v531_v34 = vmul.f32 %v3757_v47, %v4126_v30 }
 0x1e4   : > { %v541_v15 = vmul.f32 %v2604_v9, %v531_v34 }
 0x1e5   : > { %v3759_v18 = vpop.eup %3758 }
 0x1e6   : > { %v551_v16 = vadd.f32 %v2605_v3, %v541_v15  ;;  %v532_v22 = vmul.f32 %v3759_v18, %v4131_v38 }
 0x1e8   : > { %2907 = vmatprep.mubr.msk.f32.mxu0 %vm479_vm0, %v551_v16  ;;  %v542_v23 = vmul.f32 %v2604_v9, %v532_v22 }
 0x1ea   : > { %v552_v26 = vadd.f32 %v2605_v3, %v542_v23 }
 0x1ec   : > { %2908 = vmatmul.mubr.msk.f32.gmra.mrb[2].mxu0 %vm479_vm0, %v552_v26 }
 0x222   : > { %v2928_v27 = vpop.f32.mrb[0].mxu1 }
 0x223   : > { %v982_v28 = vadd.f32 %v2928_v27, %v2613_v41  ;;  %v976_v29 = vpop.f32.mrb[1].mxu1 }
 0x224   : > { %v977_v30 = vadd.f32 %v2613_v41, %v976_v29 }
 0x226   : > { %v2931_v38 = vpop.f32.mrb[2].mxu1  ;;  %v3238_v21 = vpack.c.bf16 %v982_v28, %v977_v30  ;;  %v4218_v35 = vpack.i.bf16 %v982_v28, %v977_v30 }
 0x227   : > { %v992_v36 = vadd.f32 %v2931_v38, %v2613_v41  ;;  %v986_v37 = vpop.f32.mrb[3].mxu1 }
 0x228   : > { %v987_v24 = vadd.f32 %v2613_v41, %v986_v37  ;;  %3240 = vmatprep.subr.msk.bf16.mxu0 %vm4214_vm2, %v3238_v21  ;;  %3519 = vrot.lane.b32.xlu0 %v4218_v35, %s3836_s21 }
 0x229   : > { %3243 = vmatpush3.bf16.xpose.msk.msra.mxu0 %vm4214_vm2, %v3238_v21 }
 0x22a   : > { %v4226_v39 = vpack.i.bf16 %v992_v36, %v987_v24  ;;  %v3244_v25 = vpack.c.bf16 %v992_v36, %v987_v24 }
 0x22c   : > { %3529 = vrot.lane.b32.xlu1 %v4226_v39, %s3836_s21  ;;  %3524 = vrot.lane.b32.xlu0 %v4218_v35, %s3837_s22 }
 0x22d   : > { %3246 = vmatprep.subr.msk.bf16.mxu0 %vm4214_vm2, %v3244_v25 }
 0x22e   : > { %v2934_v51 = vpop.f32.mrb[4].mxu1 }
 0x22f   : > { %v1002_v42 = vadd.f32 %v2934_v51, %v2613_v41  ;;  %v996_v43 = vpop.f32.mrb[5].mxu1 }
 0x230   : > { %v997_v44 = vadd.f32 %v2613_v41, %v996_v43  ;;  %3534 = vrot.lane.b32.xlu1 %v4226_v39, %s3837_s22 }
 0x231   : > { %3249 = vmatpush3.bf16.xpose.msk.msra.mxu0 %vm4214_vm2, %v3244_v25 }
 0x232   : > { %v2937_v45 = vpop.f32.mrb[6].mxu1  ;;  %v4238_v46 = vpack.i.bf16 %v1002_v42, %v997_v44  ;;  %v3250_v60 = vpack.c.bf16 %v1002_v42, %v997_v44 }
 0x233   : > { %v1012_v48 = vadd.f32 %v2937_v45, %v2613_v41  ;;  %v1006_v53 = vpop.f32.mrb[7].mxu1 }
 0x234   : > { %v1007_v49 = vadd.f32 %v2613_v41, %v1006_v53  ;;  %3544 = vrot.lane.b32.xlu1 %v4238_v46, %s3837_s22  ;;  %3539 = vrot.lane.b32.xlu0 %v4238_v46, %s3836_s21 }
 0x235   : > { %3252 = vmatprep.subr.msk.bf16.mxu0 %vm4214_vm2, %v3250_v60 }
 0x236   : > { %v2940_v62 = vpop.f32.mrb[8].mxu1  ;;  %v4246_v52 = vpack.i.bf16 %v1012_v48, %v1007_v49  ;;  %v3256_v54 = vpack.c.bf16 %v1012_v48, %v1007_v49 }
 0x237   : > { %v1022_v55 = vadd.f32 %v2940_v62, %v2613_v41  ;;  %v1016_v56 = vpop.f32.mrb[9].mxu1 }
 0x238   : > { %v1017_v32 = vadd.f32 %v2613_v41, %v1016_v56  ;;  %3554 = vrot.lane.b32.xlu0 %v4246_v52, %s3837_s22  ;;  %3549 = vrot.lane.b32.xlu1 %v4246_v52, %s3836_s21 }
 0x239   : > { %3255 = vmatpush3.bf16.xpose.msk.msra.mxu0 %vm4214_vm2, %v3250_v60 }
 0x23a   : > { %v2943_v63 = vpop.f32.mrb[10].mxu1  ;;  %3258 = vmatprep.subr.msk.bf16.mxu0 %vm4214_vm2, %v3256_v54  ;;  %v4256_v57 = vpack.i.bf16 %v1022_v55, %v1017_v32  ;;  %v3262_v8 = vpack.c.bf16 %v1022_v55, %v1017_v32 }
 0x23b   : > { %v1032_v58 = vadd.f32 %v2943_v63, %v2613_v41  ;;  %v1026_v59 = vpop.f32.mrb[11].mxu1 }
 0x23c   : > { %v1027_v61 = vadd.f32 %v2613_v41, %v1026_v59  ;;  %3559 = vrot.lane.b32.xlu0 %v4256_v57, %s3836_s21 }
 0x23e   : > { %v2906_v9 = vpop.f32.mrb[0].mxu0  ;;  %v4263_v1 = vpack.i.bf16 %v1032_v58, %v1027_v61  ;;  %v3268_v19 = vpack.c.bf16 %v1032_v58, %v1027_v61 }
 0x23f   : > { %v840_v2 = vpop.f32.mrb[1].mxu0  ;;  %v4281_v4 = vadd.f32 %v2906_v9, %v2608_v0 }
 0x240   : > { %v4265_v3 = vadd.f32 %v2608_v0, %v840_v2  ;;  %3564 = vrot.lane.b32.xlu1 %v4263_v1, %s3836_s21 }
 0x241   : > { %3261 = vmatpush3.bf16.xpose.msk.msra.mxu0 %vm4214_vm2, %v3256_v54 }
 0x242   : > { %3264 = vmatprep.subr.msk.bf16.mxu0 %vm4214_vm2, %v3262_v8  ;;  %2968 = vmatprep.mubr.msk.f32.mxu0 %vm1035_vm1, %v4265_v3 }
 0x249   : > { %3267 = vmatpush3.bf16.xpose.msk.msra.mxu0 %vm4214_vm2, %v3262_v8 }
 0x24a   : > { %3270 = vmatprep.subr.msk.bf16.mxu0 %vm4214_vm2, %v3268_v19 }
 0x251   : > { %3273 = vmatpush3.bf16.xpose.msk.msra.mxu0 %vm4214_vm2, %v3268_v19 }
 0x258   : > { %2969 = vmatmul.mubr.msk.f32.vlgmr.msra.gmra.mrb[4].mxu0 %vm1035_vm1, %v4281_v4 }
 0x29a   : > { %v3520_v5 = vpop.permute.xlu0 %3519 }
 0x29b   : > { %v3522_v6 = vunpack.i.h.bf16 %v3520_v5  ;;  %v3521_v7 = vunpack.i.l.bf16 %v3520_v5 }
 0x29d   : > { %v3274_v17 = vpack.c.bf16 %v3522_v6, %v3521_v7 }
 0x29e   : > { %v3530_v10 = vpop.permute.xlu1 %3529  ;;  %v3525_v12 = vpop.permute.xlu0 %3524 }
 0x29f   : > { %v3532_v31 = vunpack.i.h.bf16 %v3530_v10  ;;  %v3531_v11 = vunpack.i.l.bf16 %v3530_v10  ;;  %3275 = vmatprep.subr.bf16.mxu1 %v3274_v17  ;;  %v3527_v30 = vunpack.i.h.bf16 %v3525_v12  ;;  %v3526_v38 = vunpack.i.l.bf16 %v3525_v12 }
 0x2a0   : > { %3277 = vmatpush3.bf16.msra.mxu1 %v3274_v17 }
 0x2a1   : > { %v3278_v40 = vpack.c.bf16 %v3532_v31, %v3531_v11  ;;  %v3298_v24 = vpack.c.bf16 %v3527_v30, %v3526_v38 }
 0x2a2   : > { %v4285_v50 = vpop.permute.xlu1 %3534 }
 0x2a3   : > { %3279 = vmatprep.subr.bf16.mxu1 %v3278_v40  ;;  %v3537_v59 = vunpack.i.h.bf16 %v4285_v50  ;;  %v3536_v61 = vunpack.i.l.bf16 %v4285_v50 }
 0x2a4   : > { %3281 = vmatpush3.bf16.msra.mxu1 %v3278_v40 }
 0x2a5   : > { %v3304_v19 = vpack.c.bf16 %v3537_v59, %v3536_v61 }
 0x2a6   : > { %v4287_v13 = vpop.permute.xlu1 %3544  ;;  %v3540_v33 = vpop.permute.xlu0 %3539 }
 0x2a7   : > { %v3542_v14 = vunpack.i.h.bf16 %v3540_v33  ;;  %v3541_v47 = vunpack.i.l.bf16 %v3540_v33  ;;  %v3547_v2 = vunpack.i.h.bf16 %v4287_v13  ;;  %v3546_v5 = vunpack.i.l.bf16 %v4287_v13 }
 0x2a9   : > { %v3282_v34 = vpack.c.bf16 %v3542_v14, %v3541_v47  ;;  %v3310_v6 = vpack.c.bf16 %v3547_v2, %v3546_v5 }
 0x2aa   : > { %v3550_v15 = vpop.permute.xlu1 %3549  ;;  %v4289_v18 = vpop.permute.xlu0 %3554 }
 0x2ab   : > { %v3552_v16 = vunpack.i.h.bf16 %v3550_v15  ;;  %v3551_v22 = vunpack.i.l.bf16 %v3550_v15  ;;  %3283 = vmatprep.subr.bf16.mxu1 %v3282_v34  ;;  %v3557_v7 = vunpack.i.h.bf16 %v4289_v18  ;;  %v3556_v17 = vunpack.i.l.bf16 %v4289_v18 }
 0x2ac   : > { %3285 = vmatpush3.bf16.msra.mxu1 %v3282_v34 }
 0x2ad   : > { %v3286_v23 = vpack.c.bf16 %v3552_v16, %v3551_v22  ;;  %v3316_v10 = vpack.c.bf16 %v3557_v7, %v3556_v17 }
 0x2ae   : > { %v3560_v26 = vpop.permute.xlu0 %3559 }
 0x2af   : > { %v3562_v41 = vunpack.i.h.bf16 %v3560_v26  ;;  %v3561_v27 = vunpack.i.l.bf16 %v3560_v26  ;;  %3287 = vmatprep.subr.bf16.mxu1 %v3286_v23 }
 0x2b0   : > { %3289 = vmatpush3.bf16.msra.mxu1 %v3286_v23 }
 0x2b1   : > { %v3290_v28 = vpack.c.bf16 %v3562_v41, %v3561_v27 }
 0x2b2   : > { %v3565_v29 = vpop.permute.xlu1 %3564 }
 0x2b3   : > { %v3567_v21 = vunpack.i.h.bf16 %v3565_v29  ;;  %v3566_v36 = vunpack.i.l.bf16 %v3565_v29  ;;  %3291 = vmatprep.subr.bf16.mxu1 %v3290_v28 }
 0x2b4   : > { %3293 = vmatpush3.bf16.msra.mxu1 %v3290_v28 }
 0x2b5   : > { %v3294_v37 = vpack.c.bf16 %v3567_v21, %v3566_v36 }
 0x2b7   : > { %3295 = vmatprep.subr.bf16.mxu1 %v3294_v37 }
 0x2b8   : > { %3297 = vmatpush3.bf16.msra.mxu1 %v3294_v37 }
 0x2b9   : > { %3300 = vmatprep.subr.msk.bf16.mxu1 %vm4214_vm2, %v3298_v24 }
 0x2bf   : > { %v2909_v25 = vpop.f32.mrb[2].mxu0 }
 0x2c0   : > { %v850_v51 = vpop.f32.mrb[3].mxu0  ;;  %v4295_v43 = vadd.f32 %v2909_v25, %v2608_v0 }
 0x2c1   : > { %v4293_v42 = vadd.f32 %v2608_v0, %v850_v51 }
 0x2c3   : > { %2971 = vmatprep.mubr.msk.f32.mxu0 %vm1035_vm1, %v4293_v42 }
 0x2c4   : > { %2972 = vmatmul.mubr.msk.f32.gmra.mrb[6].mxu0 %vm1035_vm1, %v4295_v43 }
 0x32b   : > { %v2970_v44 = vpop.f32.mrb[4].mxu0 }
 0x32c   : > { %v1150_v45 = vpop.f32.mrb[5].mxu0  ;;  %v1173_v60 = vsel %vm1169_vm3, %v2970_v44, -inf }
 0x32d   : > { %1174 = vmax.xlane.f32.xlu1 %v1173_v60  ;;  %v1170_v48 = vsel %vm1169_vm3, %v1150_v45, -inf }
 0x331   : > { %1171 = vmax.xlane.f32.xlu1 %v1170_v48 }
 0x342   : > { %3569 = vrot.lane.b32.xlu1 %v4256_v57, %s3837_s22 }
 0x397   : > { %v2973_v53 = vpop.f32.mrb[6].mxu0 }
 0x398   : > { %v1160_v49 = vpop.f32.mrb[7].mxu0  ;;  %v1179_v62 = vsel %vm1169_vm3, %v2973_v53, -inf }
 0x399   : > { %1180 = vmax.xlane.f32.xlu1 %v1179_v62  ;;  %v1176_v54 = vsel %vm1169_vm3, %v1160_v49, -inf }
 0x39a   : > { %1177 = vmax.xlane.f32.xlu0 %v1176_v54 }
 0x3aa   : > { %1353 = vrot.lane.b32.xlu1 %v4281_v4, %s3837_s22 }
 0x3ae   : > { %1357 = vrot.lane.b32.xlu1 %v4295_v43, %s3837_s22 }
 0x3b0   : > { %3574 = vrot.lane.b32.xlu0 %v4263_v1, %s3837_s22 }
 0x3b2   : > { %3589 = vrot.lane.b32.xlu1 %v4238_v46, %s3838_s27 }
 0x3b4   : > { %1351 = vrot.lane.b32.xlu0 %v4265_v3, %s3837_s22 }
 0x3b6   : > { %3594 = vrot.lane.b32.xlu1 %v4246_v52, %s3838_s27 }
 0x3b8   : > { %1355 = vrot.lane.b32.xlu0 %v4293_v42, %s3837_s22 }
 0x3ba   : > { %v1175_v55 = vpop.xlane.xlu1 %1174  ;;  %3604 = vrot.lane.b32.xlu1 %v4263_v1, %s3838_s27 }
 0x3bb   : > { %v1183_v56 = vsub.f32 %v2970_v44, %v1175_v55 }
 0x3bc   : > { %3579 = vrot.lane.b32.xlu0 %v4218_v35, %s3838_s27 }
 0x3bd   : > { %v1188_v8 = vmul.f32 1.442695, %v1183_v56 }
 0x3be   : > { %v1172_v32 = vpop.xlane.xlu1 %1171  ;;  %3614 = vrot.lane.b32.xlu1 %v4226_v39, %s3839_s28 }
 0x3bf   : > { %v1182_v63 = vsub.f32 %v1150_v45, %v1172_v32 }
 0x3c0   : > { %3584 = vrot.lane.b32.xlu0 %v4226_v39, %s3838_s27 }
 0x3c1   : > { %v1186_v58 = vmul.f32 1.442695, %v1182_v63 }
 0x3c2   : > { %3619 = vrot.lane.b32.xlu1 %v4238_v46, %s3839_s28  ;;  %v3570_v31 = vpop.permute.xlu1 %3569 }
 0x3c3   : > { %3760 = vpow2.f32 %v1186_v58  ;;  %v3572_v11 = vunpack.i.h.bf16 %v3570_v31  ;;  %v3571_v40 = vunpack.i.l.bf16 %v3570_v31 }
 0x3c4   : > { %3762 = vpow2.f32 %v1188_v8  ;;  %3599 = vrot.lane.b32.xlu0 %v4256_v57, %s3838_s27 }
 0x3c5   : > { %v3322_v12 = vpack.c.bf16 %v3572_v11, %v3571_v40 }
 0x3c8   : > { %3609 = vrot.lane.b32.xlu0 %v4218_v35, %s3839_s28 }
 0x3cd   : > { %v4337_v0 = vpop.eup %3760 }
 0x3ce   : > { %v4339_v9 = vpop.eup %3762  ;;  %2998 = vmatprep.mubr.msk.f32.mxu1 %vm1169_vm3, %v4337_v0 }
 0x3cf   : > { %2999 = vmatmul.mubr.msk.f32.vlgmr.msra.gmra.mrb[12].mxu1 %vm1169_vm3, %v4339_v9 }
 0x3d0   : > { %3303 = vmatpush3.bf16.xpose.msk.msra.mxu1 %vm4214_vm2, %v3298_v24 }
 0x3d1   : > { %3306 = vmatprep.subr.msk.bf16.mxu1 %vm4214_vm2, %v3304_v19 }
 0x3d8   : > { %3309 = vmatpush3.bf16.xpose.msk.msra.mxu1 %vm4214_vm2, %v3304_v19 }
 0x3d9   : > { %3312 = vmatprep.subr.msk.bf16.mxu1 %vm4214_vm2, %v3310_v6 }
 0x3e0   : > { %3315 = vmatpush3.bf16.xpose.msk.msra.mxu1 %vm4214_vm2, %v3310_v6 }
 0x3e1   : > { %3318 = vmatprep.subr.msk.bf16.mxu1 %vm4214_vm2, %v3316_v10 }
 0x3e8   : > { %3321 = vmatpush3.bf16.xpose.msk.msra.mxu1 %vm4214_vm2, %v3316_v10 }
 0x3e9   : > { %3324 = vmatprep.subr.msk.bf16.mxu1 %vm4214_vm2, %v3322_v12 }
 0x3f0   : > { %3327 = vmatpush3.bf16.xpose.msk.msra.mxu1 %vm4214_vm2, %v3322_v12 }
 0x426   : > { %v1181_v50 = vpop.xlane.xlu1 %1180 }
 0x427   : > { %v1185_v13 = vsub.f32 %v2973_v53, %v1181_v50  ;;  %v1178_v33 = vpop.xlane.xlu0 %1177 }
 0x428   : > { %v1184_v14 = vsub.f32 %v1160_v49, %v1178_v33 }
 0x429   : > { %v1192_v47 = vmul.f32 1.442695, %v1185_v13 }
 0x42a   : > { %v1190_v34 = vmul.f32 1.442695, %v1184_v14  ;;  %v1354_v15 = vpop.permute.xlu1 %1353 }
 0x42b   : > { %v3575_v18 = vpop.permute.xlu0 %3574 }
 0x42c   : > { %3764 = vpow2.f32 %v1190_v34  ;;  %v3577_v16 = vunpack.i.h.bf16 %v3575_v18  ;;  %v3576_v22 = vunpack.i.l.bf16 %v3575_v18 }
 0x42d   : > { %3766 = vpow2.f32 %v1192_v47 }
 0x42e   : > { %v3328_v23 = vpack.c.bf16 %v3577_v16, %v3576_v22  ;;  %v1358_v41 = vpop.permute.xlu1 %1357 }
 0x42f   : > { %v1352_v26 = vpop.permute.xlu0 %1351 }
 0x430   : > { %3330 = vmatprep.subr.msk.bf16.mxu1 %vm4214_vm2, %v3328_v23 }
 0x431   : > { %3333 = vmatpush3.bf16.xpose.msk.msra.mxu1 %vm4214_vm2, %v3328_v23 }
 0x432   : > { %v3590_v30 = vpop.permute.xlu1 %3589 }
 0x433   : > { %v1356_v27 = vpop.permute.xlu0 %1355  ;;  %v3592_v25 = vunpack.i.h.bf16 %v3590_v30  ;;  %v3591_v51 = vunpack.i.l.bf16 %v3590_v30 }
 0x435   : > { %v3342_v53 = vpack.c.bf16 %v3592_v25, %v3591_v51 }
 0x436   : > { %v4371_v28 = vpop.eup %3764  ;;  %v3595_v60 = vpop.permute.xlu1 %3594 }
 0x437   : > { %v4373_v29 = vpop.eup %3766  ;;  %v3580_v38 = vpop.permute.xlu0 %3579  ;;  %3001 = vmatprep.mubr.msk.f32.mxu1 %vm1169_vm3, %v4371_v28  ;;  %v3597_v49 = vunpack.i.h.bf16 %v3595_v60  ;;  %v3596_v62 = vunpack.i.l.bf16 %v3595_v60 }
 0x438   : > { %v3582_v21 = vunpack.i.h.bf16 %v3580_v38  ;;  %v3581_v36 = vunpack.i.l.bf16 %v3580_v38  ;;  %3002 = vmatmul.mubr.msk.f32.gmra.mrb[14].mxu1 %vm1169_vm3, %v4373_v29 }
 0x439   : > { %3028 = vmatprep.mubr.msk.f32.mxu1 %vm1035_vm1, %v1352_v26  ;;  %v3346_v55 = vpack.c.bf16 %v3597_v49, %v3596_v62 }
 0x43a   : > { %v3334_v37 = vpack.c.bf16 %v3582_v21, %v3581_v36  ;;  %v3605_v63 = vpop.permute.xlu1 %3604 }
 0x43b   : > { %v3585_v24 = vpop.permute.xlu0 %3584  ;;  %v3607_v8 = vunpack.i.h.bf16 %v3605_v63  ;;  %v3606_v58 = vunpack.i.l.bf16 %v3605_v63 }
 0x43c   : > { %v3587_v44 = vunpack.i.h.bf16 %v3585_v24  ;;  %v3586_v45 = vunpack.i.l.bf16 %v3585_v24  ;;  %3029 = vmatmul.mubr.msk.f32.vlgmr.msra.gmra.mrb[16].mxu1 %vm1035_vm1, %v1354_v15  ;;  %3335 = vmatprep.subr.bf16.mxu0 %v3334_v37 }
 0x43d   : > { %3031 = vmatprep.mubr.msk.f32.mxu1 %vm1035_vm1, %v1356_v27  ;;  %3337 = vmatpush3.bf16.msra.mxu0 %v3334_v37  ;;  %v3354_v19 = vpack.c.bf16 %v3607_v8, %v3606_v58 }
 0x43e   : > { %v3338_v48 = vpack.c.bf16 %v3587_v44, %v3586_v45  ;;  %v3615_v34 = vpop.permute.xlu1 %3614 }
 0x43f   : > { %v3600_v54 = vpop.permute.xlu0 %3599  ;;  %v3617_v27 = vunpack.i.h.bf16 %v3615_v34  ;;  %v3616_v30 = vunpack.i.l.bf16 %v3615_v34 }
 0x440   : > { %3032 = vmatmul.mubr.msk.f32.gmra.mrb[18].mxu1 %vm1035_vm1, %v1358_v41  ;;  %3339 = vmatprep.subr.bf16.mxu0 %v3338_v48  ;;  %v3602_v56 = vunpack.i.h.bf16 %v3600_v54  ;;  %v3601_v32 = vunpack.i.l.bf16 %v3600_v54 }
 0x441   : > { %3341 = vmatpush3.bf16.msra.mxu0 %v3338_v48  ;;  %v3364_v36 = vpack.c.bf16 %v3617_v27, %v3616_v30 }
 0x442   : > { %3343 = vmatprep.subr.bf16.mxu0 %v3342_v53  ;;  %v3350_v59 = vpack.c.bf16 %v3602_v56, %v3601_v32  ;;  %v3620_v15 = vpop.permute.xlu1 %3619 }
 0x443   : > { %v3610_v61 = vpop.permute.xlu0 %3609  ;;  %v3622_v37 = vunpack.i.h.bf16 %v3620_v15  ;;  %v3621_v24 = vunpack.i.l.bf16 %v3620_v15 }
 0x444   : > { %v3612_v2 = vunpack.i.h.bf16 %v3610_v61  ;;  %v3611_v5 = vunpack.i.l.bf16 %v3610_v61 }
 0x445   : > { %3345 = vmatpush3.bf16.msra.mxu0 %v3342_v53  ;;  %v3370_v25 = vpack.c.bf16 %v3622_v37, %v3621_v24 }
 0x446   : > { %3347 = vmatprep.subr.bf16.mxu0 %v3346_v55  ;;  %v3358_v6 = vpack.c.bf16 %v3612_v2, %v3611_v5 }
 0x449   : > { %3349 = vmatpush3.bf16.msra.mxu0 %v3346_v55 }
 0x44a   : > { %3351 = vmatprep.subr.bf16.mxu0 %v3350_v59 }
 0x44d   : > { %3353 = vmatpush3.bf16.msra.mxu0 %v3350_v59 }
 0x44e   : > { %3355 = vmatprep.subr.bf16.mxu0 %v3354_v19 }
 0x451   : > { %3357 = vmatpush3.bf16.msra.mxu0 %v3354_v19 }
 0x452   : > { %3360 = vmatprep.subr.msk.bf16.mxu0 %vm4214_vm2, %v3358_v6 }
 0x4a2   : > { %v4385_v7 = vpop.f32.mrb[12].mxu1 }
 0x4a3   : > { %v4387_v17 = vpop.f32.mrb[13].mxu1 }
 0x50b   : > { %v4389_v10 = vpop.f32.mrb[14].mxu1 }
 0x50c   : > { %v4391_v31 = vpop.f32.mrb[15].mxu1 }
 0x50f   : > { %v3030_v11 = vpop.f32.mrb[16].mxu1 }
 0x510   : > { %v1481_v40 = vpop.f32.mrb[17].mxu1  ;;  %v1503_v12 = vsel %vm1169_vm3, %v3030_v11, -inf }
 0x511   : > { %1504 = vmax.xlane.f32.xlu0 %v1503_v12  ;;  %v1500_v50 = vsel %vm1169_vm3, %v1481_v40, -inf }
 0x512   : > { %1501 = vmax.xlane.f32.xlu1 %v1500_v50 }
 0x513   : > { %v4395_v13 = vpop.f32.mrb[18].mxu1 }
 0x514   : > { %v4397_v33 = vpop.f32.mrb[19].mxu1  ;;  %v1509_v47 = vsel %vm1169_vm3, %v4395_v13, -inf }
 0x515   : > { %v1506_v14 = vsel %vm1169_vm3, %v4397_v33, -inf }
 0x523   : > { %3629 = vrot.lane.b32.xlu1 %v4256_v57, %s3839_s28 }
 0x527   : > { %3624 = vrot.lane.b32.xlu0 %v4246_v52, %s3839_s28 }
 0x546   : > { %1507 = vmax.xlane.f32.xlu0 %v1506_v14 }
 0x547   : > { %1510 = vmax.xlane.f32.xlu1 %v1509_v47 }
 0x558   : > { %1700 = vrot.lane.b32.xlu1 %v4281_v4, %s3839_s28 }
 0x55c   : > { %1704 = vrot.lane.b32.xlu1 %v4295_v43, %s3839_s28  ;;  %3634 = vrot.lane.b32.xlu0 %v4263_v1, %s3839_s28 }
 0x560   : > { %3649 = vrot.lane.b32.xlu1 %v4238_v46, %s3840_s29  ;;  %1698 = vrot.lane.b32.xlu0 %v4265_v3, %s3839_s28 }
 0x564   : > { %3654 = vrot.lane.b32.xlu1 %v4246_v52, %s3840_s29  ;;  %1702 = vrot.lane.b32.xlu0 %v4293_v42, %s3839_s28 }
 0x568   : > { %3664 = vrot.lane.b32.xlu1 %v4263_v1, %s3840_s29  ;;  %3639 = vrot.lane.b32.xlu0 %v4218_v35, %s3840_s29 }
 0x56c   : > { %3674 = vrot.lane.b32.xlu1 %v4226_v39, %s3841_s30  ;;  %3644 = vrot.lane.b32.xlu0 %v4226_v39, %s3840_s29 }
 0x570   : > { %3679 = vrot.lane.b32.xlu1 %v4238_v46, %s3841_s30  ;;  %3659 = vrot.lane.b32.xlu0 %v4256_v57, %s3840_s29 }
 0x574   : > { %3669 = vrot.lane.b32.xlu0 %v4218_v35, %s3841_s30 }
 0x59e   : > { %v1505_v18 = vpop.xlane.xlu0 %1504 }
 0x59f   : > { %v1513_v16 = vsub.f32 %v3030_v11, %v1505_v18  ;;  %v1502_v22 = vpop.xlane.xlu1 %1501 }
 0x5a0   : > { %v1512_v23 = vsub.f32 %v1481_v40, %v1502_v22 }
 0x5a1   : > { %v1518_v26 = vmul.f32 1.442695, %v1513_v16 }
 0x5a2   : > { %v1516_v41 = vmul.f32 1.442695, %v1512_v23  ;;  %v3625_v51 = vpop.permute.xlu0 %3624 }
 0x5a3   : > { %v3627_v44 = vunpack.i.h.bf16 %v3625_v51  ;;  %v3626_v45 = vunpack.i.l.bf16 %v3625_v51  ;;  %v3630_v48 = vpop.permute.xlu1 %3629 }
 0x5a4   : > { %3768 = vpow2.f32 %v1516_v41  ;;  %v3632_v53 = vunpack.i.h.bf16 %v3630_v48  ;;  %v3631_v49 = vunpack.i.l.bf16 %v3630_v48 }
 0x5a5   : > { %3770 = vpow2.f32 %v1518_v26  ;;  %v3376_v60 = vpack.c.bf16 %v3627_v44, %v3626_v45 }
 0x5a6   : > { %v3382_v62 = vpack.c.bf16 %v3632_v53, %v3631_v49 }
 0x5ae   : > { %v4435_v38 = vpop.eup %3768 }
 0x5af   : > { %v4437_v21 = vpop.eup %3770  ;;  %3058 = vmatprep.mubr.msk.f32.mxu0 %vm1169_vm3, %v4435_v38 }
 0x5b0   : > { %3059 = vmatmul.mubr.msk.f32.vlgmr.msra.gmra.mrb[8].mxu0 %vm1169_vm3, %v4437_v21 }
 0x5b1   : > { %3363 = vmatpush3.bf16.xpose.msk.msra.mxu0 %vm4214_vm2, %v3358_v6 }
 0x5b2   : > { %3366 = vmatprep.subr.msk.bf16.mxu0 %vm4214_vm2, %v3364_v36 }
 0x5b9   : > { %3369 = vmatpush3.bf16.xpose.msk.msra.mxu0 %vm4214_vm2, %v3364_v36 }
 0x5ba   : > { %3372 = vmatprep.subr.msk.bf16.mxu0 %vm4214_vm2, %v3370_v25 }
 0x5c1   : > { %3375 = vmatpush3.bf16.xpose.msk.msra.mxu0 %vm4214_vm2, %v3370_v25 }
 0x5c2   : > { %3378 = vmatprep.subr.msk.bf16.mxu0 %vm4214_vm2, %v3376_v60 }
 0x5c9   : > { %3381 = vmatpush3.bf16.xpose.msk.msra.mxu0 %vm4214_vm2, %v3376_v60 }
 0x5ca   : > { %3384 = vmatprep.subr.msk.bf16.mxu0 %vm4214_vm2, %v3382_v62 }
 0x5d1   : > { %3387 = vmatpush3.bf16.xpose.msk.msra.mxu0 %vm4214_vm2, %v3382_v62 }
 0x5d3   : > { %v1508_v54 = vpop.xlane.xlu0 %1507 }
 0x5d4   : > { %v1514_v55 = vsub.f32 %v4397_v33, %v1508_v54  ;;  %v1511_v56 = vpop.xlane.xlu1 %1510 }
 0x5d5   : > { %v1515_v32 = vsub.f32 %v4395_v13, %v1511_v56 }
 0x5d6   : > { %v1520_v63 = vmul.f32 1.442695, %v1514_v55 }
 0x5d7   : > { %v1522_v8 = vmul.f32 1.442695, %v1515_v32  ;;  %v3635_v58 = vpop.permute.xlu0 %3634 }
 0x5d8   : > { %3772 = vpow2.f32 %v1520_v63  ;;  %v3637_v59 = vunpack.i.h.bf16 %v3635_v58  ;;  %v3636_v61 = vunpack.i.l.bf16 %v3635_v58  ;;  %v1701_v19 = vpop.permute.xlu1 %1700 }
 0x5d9   : > { %3774 = vpow2.f32 %v1522_v8 }
 0x5da   : > { %v3388_v2 = vpack.c.bf16 %v3637_v59, %v3636_v61 }
 0x5db   : > { %v1699_v5 = vpop.permute.xlu0 %1698 }
 0x5dc   : > { %3390 = vmatprep.subr.msk.bf16.mxu0 %vm4214_vm2, %v3388_v2  ;;  %v1705_v6 = vpop.permute.xlu1 %1704 }
 0x5dd   : > { %3393 = vmatpush3.bf16.xpose.msk.msra.mxu0 %vm4214_vm2, %v3388_v2 }
 0x5df   : > { %v1703_v11 = vpop.permute.xlu0 %1702 }
 0x5e0   : > { %v3650_v50 = vpop.permute.xlu1 %3649 }
 0x5e1   : > { %v3652_v15 = vunpack.i.h.bf16 %v3650_v50  ;;  %v3651_v18 = vunpack.i.l.bf16 %v3650_v50 }
 0x5e2   : > { %v4467_v40 = vpop.eup %3772 }
 0x5e3   : > { %v4469_v12 = vpop.eup %3774  ;;  %3061 = vmatprep.mubr.msk.f32.mxu0 %vm1169_vm3, %v4467_v40  ;;  %v3640_v13 = vpop.permute.xlu0 %3639  ;;  %v3402_v41 = vpack.c.bf16 %v3652_v15, %v3651_v18 }
 0x5e4   : > { %v3642_v33 = vunpack.i.h.bf16 %v3640_v13  ;;  %v3641_v14 = vunpack.i.l.bf16 %v3640_v13  ;;  %3062 = vmatmul.mubr.msk.f32.gmra.mrb[10].mxu0 %vm1169_vm3, %v4469_v12  ;;  %v3655_v23 = vpop.permute.xlu1 %3654 }
 0x5e5   : > { %3088 = vmatprep.mubr.msk.f32.mxu0 %vm1035_vm1, %v1699_v5  ;;  %v3657_v27 = vunpack.i.h.bf16 %v3655_v23  ;;  %v3656_v30 = vunpack.i.l.bf16 %v3655_v23 }
 0x5e6   : > { %v3394_v47 = vpack.c.bf16 %v3642_v33, %v3641_v14 }
 0x5e7   : > { %v3645_v34 = vpop.permute.xlu0 %3644  ;;  %v3406_v37 = vpack.c.bf16 %v3657_v27, %v3656_v30 }
 0x5e8   : > { %v3647_v16 = vunpack.i.h.bf16 %v3645_v34  ;;  %v3646_v22 = vunpack.i.l.bf16 %v3645_v34  ;;  %3089 = vmatmul.mubr.msk.f32.vlgmr.msra.gmra.mrb[12].mxu0 %vm1035_vm1, %v1701_v19  ;;  %3395 = vmatprep.subr.bf16.mxu1 %v3394_v47  ;;  %v3665_v51 = vpop.permute.xlu1 %3664 }
 0x5e9   : > { %3091 = vmatprep.mubr.msk.f32.mxu0 %vm1035_vm1, %v1703_v11  ;;  %3397 = vmatpush3.bf16.msra.mxu1 %v3394_v47  ;;  %v3667_v44 = vunpack.i.h.bf16 %v3665_v51  ;;  %v3666_v45 = vunpack.i.l.bf16 %v3665_v51 }
 0x5ea   : > { %v3398_v26 = vpack.c.bf16 %v3647_v16, %v3646_v22 }
 0x5eb   : > { %v3660_v36 = vpop.permute.xlu0 %3659  ;;  %v3414_v53 = vpack.c.bf16 %v3667_v44, %v3666_v45 }
 0x5ec   : > { %3092 = vmatmul.mubr.msk.f32.gmra.mrb[14].mxu0 %vm1035_vm1, %v1705_v6  ;;  %3399 = vmatprep.subr.bf16.mxu1 %v3398_v26  ;;  %v3662_v24 = vunpack.i.h.bf16 %v3660_v36  ;;  %v3661_v25 = vunpack.i.l.bf16 %v3660_v36 }
 0x5ed   : > { %3401 = vmatpush3.bf16.msra.mxu1 %v3398_v26 }
 0x5ee   : > { %3403 = vmatprep.subr.bf16.mxu1 %v3402_v41  ;;  %v3410_v60 = vpack.c.bf16 %v3662_v24, %v3661_v25 }
 0x5ef   : > { %v3670_v48 = vpop.permute.xlu0 %3669 }
 0x5f0   : > { %v3672_v49 = vunpack.i.h.bf16 %v3670_v48  ;;  %v3671_v62 = vunpack.i.l.bf16 %v3670_v48 }
 0x5f1   : > { %3405 = vmatpush3.bf16.msra.mxu1 %v3402_v41 }
 0x5f2   : > { %3407 = vmatprep.subr.bf16.mxu1 %v3406_v37  ;;  %v3418_v54 = vpack.c.bf16 %v3672_v49, %v3671_v62 }
 0x5f5   : > { %3409 = vmatpush3.bf16.msra.mxu1 %v3406_v37 }
 0x5f6   : > { %3411 = vmatprep.subr.bf16.mxu1 %v3410_v60 }
 0x5f9   : > { %3413 = vmatpush3.bf16.msra.mxu1 %v3410_v60 }
 0x5fa   : > { %3415 = vmatprep.subr.bf16.mxu1 %v3414_v53 }
 0x5fd   : > { %3417 = vmatpush3.bf16.msra.mxu1 %v3414_v53 }
 0x5fe   : > { %3420 = vmatprep.subr.msk.bf16.mxu1 %vm4214_vm2, %v3418_v54 }
 0x683   : > { %v4481_v55 = vpop.f32.mrb[8].mxu0 }
 0x684   : > { %v4483_v56 = vpop.f32.mrb[9].mxu0 }
 0x6b7   : > { %v4485_v32 = vpop.f32.mrb[10].mxu0 }
 0x6b8   : > { %v4487_v63 = vpop.f32.mrb[11].mxu0 }
 0x6bb   : > { %v3090_v8 = vpop.f32.mrb[12].mxu0 }
 0x6bc   : > { %v1828_v58 = vpop.f32.mrb[13].mxu0  ;;  %v1850_v59 = vsel %vm1169_vm3, %v3090_v8, -inf }
 0x6bd   : > { %1851 = vmax.xlane.f32.xlu0 %v1850_v59  ;;  %v1847_v61 = vsel %vm1169_vm3, %v1828_v58, -inf }
 0x6be   : > { %1848 = vmax.xlane.f32.xlu1 %v1847_v61 }
 0x6bf   : > { %v3093_v19 = vpop.f32.mrb[14].mxu0 }
 0x6c0   : > { %v1838_v2 = vpop.f32.mrb[15].mxu0  ;;  %v1856_v6 = vsel %vm1169_vm3, %v3093_v19, -inf }
 0x6c1   : > { %v1853_v5 = vsel %vm1169_vm3, %v1838_v2, -inf }
 0x6cf   : > { %3689 = vrot.lane.b32.xlu1 %v4256_v57, %s3841_s30 }
 0x6d3   : > { %3684 = vrot.lane.b32.xlu0 %v4246_v52, %s3841_s30 }
 0x6f2   : > { %1854 = vmax.xlane.f32.xlu0 %v1853_v5 }
 0x6f3   : > { %1857 = vmax.xlane.f32.xlu1 %v1856_v6 }
 0x704   : > { %2047 = vrot.lane.b32.xlu1 %v4281_v4, %s3841_s30  ;;  %v3675_v4 = vpop.permute.xlu1 %3674 }
 0x705   : > { %v3676_v14 = vunpack.i.l.bf16 %v3675_v4 }
 0x708   : > { %2051 = vrot.lane.b32.xlu1 %v4295_v43, %s3841_s30  ;;  %3694 = vrot.lane.b32.xlu0 %v4263_v1, %s3841_s30  ;;  %v3680_v43 = vpop.permute.xlu1 %3679 }
 0x709   : > { %v3681_v34 = vunpack.i.l.bf16 %v3680_v43 }
 0x70c   : > { %3704 = vrot.lane.b32.xlu1 %v4226_v39, %s3842_s15  ;;  %2045 = vrot.lane.b32.xlu0 %v4265_v3, %s3841_s30 }
 0x710   : > { %3714 = vrot.lane.b32.xlu1 %v4246_v52, %s3842_s15  ;;  %2049 = vrot.lane.b32.xlu0 %v4293_v42, %s3841_s30  ;;  %v3677_v52 = vunpack.i.h.bf16 %v3675_v4 }
 0x714   : > { %3699 = vrot.lane.b32.xlu0 %v4218_v35, %s3842_s15  ;;  %v3424_v35 = vpack.c.bf16 %v3677_v52, %v3676_v14 }
 0x718   : > { %3709 = vrot.lane.b32.xlu0 %v4238_v46, %s3842_s15  ;;  %v3682_v46 = vunpack.i.h.bf16 %v3680_v43 }
 0x71a   : > { %v3430_v15 = vpack.c.bf16 %v3682_v46, %v3681_v34 }
 0x74a   : > { %v1852_v11 = vpop.xlane.xlu0 %1851 }
 0x74b   : > { %v1860_v50 = vsub.f32 %v3090_v8, %v1852_v11  ;;  %v1849_v39 = vpop.xlane.xlu1 %1848 }
 0x74c   : > { %v1859_v13 = vsub.f32 %v1828_v58, %v1849_v39 }
 0x74d   : > { %v1865_v33 = vmul.f32 1.442695, %v1860_v50 }
 0x74e   : > { %v1863_v3 = vmul.f32 1.442695, %v1859_v13  ;;  %v3685_v18 = vpop.permute.xlu0 %3684 }
 0x74f   : > { %v3687_v16 = vunpack.i.h.bf16 %v3685_v18  ;;  %v3686_v22 = vunpack.i.l.bf16 %v3685_v18  ;;  %v3690_v26 = vpop.permute.xlu1 %3689 }
 0x750   : > { %3776 = vpow2.f32 %v1863_v3  ;;  %v3692_v41 = vunpack.i.h.bf16 %v3690_v26  ;;  %v3691_v27 = vunpack.i.l.bf16 %v3690_v26 }
 0x751   : > { %3778 = vpow2.f32 %v1865_v33  ;;  %v3436_v23 = vpack.c.bf16 %v3687_v16, %v3686_v22 }
 0x752   : > { %v3442_v30 = vpack.c.bf16 %v3692_v41, %v3691_v27 }
 0x75a   : > { %v4515_v47 = vpop.eup %3776 }
 0x75b   : > { %v4517_v42 = vpop.eup %3778  ;;  %3118 = vmatprep.mubr.msk.f32.mxu1 %vm1169_vm3, %v4515_v47 }
 0x75c   : > { %3119 = vmatmul.mubr.msk.f32.vlgmr.msra.gmra.mrb[20].mxu1 %vm1169_vm3, %v4517_v42 }
 0x75d   : > { %3423 = vmatpush3.bf16.xpose.msk.msra.mxu1 %vm4214_vm2, %v3418_v54 }
 0x75e   : > { %3426 = vmatprep.subr.msk.bf16.mxu1 %vm4214_vm2, %v3424_v35 }
 0x765   : > { %3429 = vmatpush3.bf16.xpose.msk.msra.mxu1 %vm4214_vm2, %v3424_v35 }
 0x766   : > { %3432 = vmatprep.subr.msk.bf16.mxu1 %vm4214_vm2, %v3430_v15 }
 0x76d   : > { %3435 = vmatpush3.bf16.xpose.msk.msra.mxu1 %vm4214_vm2, %v3430_v15 }
 0x76e   : > { %3438 = vmatprep.subr.msk.bf16.mxu1 %vm4214_vm2, %v3436_v23 }
 0x775   : > { %3441 = vmatpush3.bf16.xpose.msk.msra.mxu1 %vm4214_vm2, %v3436_v23 }
 0x776   : > { %3444 = vmatprep.subr.msk.bf16.mxu1 %vm4214_vm2, %v3442_v30 }
 0x77d   : > { %3447 = vmatpush3.bf16.xpose.msk.msra.mxu1 %vm4214_vm2, %v3442_v30 }
 0x77f   : > { %v1855_v36 = vpop.xlane.xlu0 %1854 }
 0x780   : > { %v1861_v37 = vsub.f32 %v1838_v2, %v1855_v36  ;;  %v1858_v24 = vpop.xlane.xlu1 %1857  ;;  %v1530_v36 = vsel %vm1169_vm3, %v4467_v40, 0.0  ;;  %v1871_v40 = vsel %vm1169_vm3, %v4515_v47, 0.0 }
 0x781   : > { %v1862_v25 = vsub.f32 %v3093_v19, %v1858_v24 }
 0x782   : > { %v1867_v51 = vmul.f32 1.442695, %v1861_v37  ;;  %v1524_v37 = vsel %vm1169_vm3, %v4435_v38, 0.0  ;;  %v1874_v38 = vsel %vm1169_vm3, %v4517_v42, 0.0 }
 0x783   : > { %v1869_v44 = vmul.f32 1.442695, %v1862_v25  ;;  %v3695_v45 = vpop.permute.xlu0 %3694  ;;  %v1527_v25 = vsel %vm1169_vm3, %v4437_v21, 0.0 }
 0x784   : > { %3780 = vpow2.f32 %v1867_v51  ;;  %v3697_v60 = vunpack.i.h.bf16 %v3695_v45  ;;  %v3696_v48 = vunpack.i.l.bf16 %v3695_v45  ;;  %v2048_v53 = vpop.permute.xlu1 %2047 }
 0x785   : > { %3782 = vpow2.f32 %v1869_v44 }
 0x786   : > { %v3448_v49 = vpack.c.bf16 %v3697_v60, %v3696_v48 }
 0x787   : > { %v2046_v62 = vpop.permute.xlu0 %2045 }
 0x788   : > { %v2052_v54 = vpop.permute.xlu1 %2051  ;;  %3450 = vmatprep.subr.msk.bf16.mxu1 %vm4214_vm2, %v3448_v49 }
 0x789   : > { %3453 = vmatpush3.bf16.xpose.msk.msra.mxu1 %vm4214_vm2, %v3448_v49 }
 0x78b   : > { %v2050_v8 = vpop.permute.xlu0 %2049 }
 0x78c   : > { %v3705_v58 = vpop.permute.xlu1 %3704 }
 0x78d   : > { %v3707_v2 = vunpack.i.h.bf16 %v3705_v58  ;;  %v3706_v5 = vunpack.i.l.bf16 %v3705_v58 }
 0x78e   : > { %v3781_v59 = vpop.eup %3780 }
 0x78f   : > { %v3783_v61 = vpop.eup %3782  ;;  %3121 = vmatprep.mubr.msk.f32.mxu1 %vm1169_vm3, %v3781_v59  ;;  %v3700_v19 = vpop.permute.xlu0 %3699  ;;  %v3458_v50 = vpack.c.bf16 %v3707_v2, %v3706_v5  ;;  %v1877_v24 = vsel %vm1169_vm3, %v3781_v59, 0.0 }
 0x790   : > { %v3702_v6 = vunpack.i.h.bf16 %v3700_v19  ;;  %v3701_v4 = vunpack.i.l.bf16 %v3700_v19  ;;  %3122 = vmatmul.mubr.msk.f32.gmra.mrb[22].mxu1 %vm1169_vm3, %v3783_v61  ;;  %v3715_v13 = vpop.permute.xlu1 %3714 }
 0x791   : > { %3148 = vmatprep.mubr.msk.f32.mxu1 %vm1035_vm1, %v2046_v62  ;;  %v3717_v33 = vunpack.i.h.bf16 %v3715_v13  ;;  %v3716_v3 = vunpack.i.l.bf16 %v3715_v13  ;;  %v1194_v13 = vsel %vm1169_vm3, %v4337_v0, 0.0 }
 0x792   : > { %v3454_v43 = vpack.c.bf16 %v3702_v6, %v3701_v4 }
 0x793   : > { %v3710_v11 = vpop.permute.xlu0 %3709  ;;  %v3466_v14 = vpack.c.bf16 %v3717_v33, %v3716_v3  ;;  %v1197_v3 = vsel %vm1169_vm3, %v4339_v9, 0.0 }
 0x794   : > { %v3712_v20 = vunpack.i.h.bf16 %v3710_v11  ;;  %v3711_v39 = vunpack.i.l.bf16 %v3710_v11  ;;  %3149 = vmatmul.mubr.msk.f32.vlgmr.msra.gmra.mrb[24].mxu1 %vm1035_vm1, %v2048_v53  ;;  %3455 = vmatprep.subr.bf16.mxu0 %v3454_v43 }
 0x795   : > { %3151 = vmatprep.mubr.msk.f32.mxu1 %vm1035_vm1, %v2050_v8  ;;  %3457 = vmatpush3.bf16.msra.mxu0 %v3454_v43 }
 0x796   : > { %3459 = vmatprep.subr.bf16.mxu0 %v3458_v50  ;;  %v3462_v52 = vpack.c.bf16 %v3712_v20, %v3711_v39 }
 0x798   : > { %3152 = vmatmul.mubr.msk.f32.gmra.mrb[26].mxu1 %vm1035_vm1, %v2052_v54 }
 0x799   : > { %3461 = vmatpush3.bf16.msra.mxu0 %v3458_v50 }
 0x79a   : > { %3463 = vmatprep.subr.bf16.mxu0 %v3462_v52 }
 0x79d   : > { %3465 = vmatpush3.bf16.msra.mxu0 %v3462_v52  ;;  %v1200_v52 = vsel %vm1169_vm3, %v4371_v28, 0.0 }
 0x79e   : > { %3467 = vmatprep.subr.bf16.mxu0 %v3466_v14 }
 0x7a1   : > { %3469 = vmatpush3.bf16.msra.mxu0 %v3466_v14  ;;  %v1203_v14 = vsel %vm1169_vm3, %v4373_v29, 0.0 }
 0x82f   : > { %v4551_v35 = vpop.f32.mrb[20].mxu1 }
 0x830   : > { %v4553_v46 = vpop.f32.mrb[21].mxu1 }
 0x863   : > { %v4555_v34 = vpop.f32.mrb[22].mxu1 }
 0x864   : > { %v4557_v15 = vpop.f32.mrb[23].mxu1 }
 0x867   : > { %v3150_v18 = vpop.f32.mrb[24].mxu1 }
 0x868   : > { %v2175_v16 = vpop.f32.mrb[25].mxu1  ;;  %v2197_v22 = vsel %vm1169_vm3, %v3150_v18, -inf }
 0x869   : > { %2198 = vmax.xlane.f32.xlu1 %v2197_v22  ;;  %v2194_v23 = vsel %vm1169_vm3, %v2175_v16, -inf }
 0x86a   : > { %2195 = vmax.xlane.f32.xlu0 %v2194_v23 }
 0x86b   : > { %v3153_v26 = vpop.f32.mrb[26].mxu1 }
 0x86c   : > { %v2185_v41 = vpop.f32.mrb[27].mxu1  ;;  %v2203_v27 = vsel %vm1169_vm3, %v3153_v26, -inf }
 0x86d   : > { %2204 = vmax.xlane.f32.xlu1 %v2203_v27  ;;  %v2200_v30 = vsel %vm1169_vm3, %v2185_v41, -inf }
 0x86e   : > { %2201 = vmax.xlane.f32.xlu0 %v2200_v30 }
 0x87e   : > { %3724 = vrot.lane.b32.xlu1 %v4263_v1, %s3842_s15  ;;  %v1880_v1 = vsel %vm1169_vm3, %v3783_v61, 0.0 }
 0x884   : > { %3719 = vrot.lane.b32.xlu0 %v4256_v57, %s3842_s15  ;;  %v1533_v57 = vsel %vm1169_vm3, %v4469_v12, 0.0 }
 0x8a2   : > { %1531 = vadd.xlane.f32.xlu1 %v1530_v36 }
 0x8a3   : > { %1525 = vadd.xlane.f32.xlu0 %v1524_v37 }
 0x8a6   : > { %1878 = vadd.xlane.f32.xlu1 %v1877_v24 }
 0x8a7   : > { %1528 = vadd.xlane.f32.xlu0 %v1527_v25 }
 0x8aa   : > { %1881 = vadd.xlane.f32.xlu1 %v1880_v1 }
 0x8ab   : > { %1534 = vadd.xlane.f32.xlu0 %v1533_v57 }
 0x8af   : > { %1872 = vadd.xlane.f32.xlu0 %v1871_v40 }
 0x8b3   : > { %1875 = vadd.xlane.f32.xlu0 %v1874_v38 }
 0x8f6   : > { %v2199_v51 = vpop.xlane.xlu1 %2198 }
 0x8f7   : > { %v2207_v44 = vsub.f32 %v3150_v18, %v2199_v51  ;;  %v2196_v45 = vpop.xlane.xlu0 %2195 }
 0x8f8   : > { %v2206_v21 = vsub.f32 %v2175_v16, %v2196_v45 }
 0x8f9   : > { %v2212_v60 = vmul.f32 1.442695, %v2207_v44 }
 0x8fa   : > { %v2210_v48 = vmul.f32 1.442695, %v2206_v21  ;;  %v2205_v53 = vpop.xlane.xlu1 %2204 }
 0x8fb   : > { %v2209_v49 = vsub.f32 %v3153_v26, %v2205_v53  ;;  %v2202_v62 = vpop.xlane.xlu0 %2201 }
 0x8fc   : > { %3784 = vpow2.f32 %v2210_v48  ;;  %v2208_v12 = vsub.f32 %v2185_v41, %v2202_v62 }
 0x8fd   : > { %3786 = vpow2.f32 %v2212_v60  ;;  %v2216_v54 = vmul.f32 1.442695, %v2209_v49 }
 0x8fe   : > { %v2214_v8 = vmul.f32 1.442695, %v2208_v12  ;;  %v3725_v47 = vpop.permute.xlu1 %3724 }
 0x8ff   : > { %v3727_v58 = vunpack.i.h.bf16 %v3725_v47  ;;  %v3720_v59 = vpop.permute.xlu0 %3719  ;;  %v3726_v42 = vunpack.i.l.bf16 %v3725_v47 }
 0x900   : > { %3788 = vpow2.f32 %v2214_v8  ;;  %v3722_v61 = vunpack.i.h.bf16 %v3720_v59  ;;  %v3721_v19 = vunpack.i.l.bf16 %v3720_v59 }
 0x901   : > { %3790 = vpow2.f32 %v2216_v54  ;;  %v3474_v5 = vpack.c.bf16 %v3727_v58, %v3726_v42 }
 0x902   : > { %v3470_v2 = vpack.c.bf16 %v3722_v61, %v3721_v19 }
 0x904   : > { %3471 = vmatprep.subr.bf16.mxu0 %v3470_v2 }
 0x905   : > { %3473 = vmatpush3.bf16.msra.mxu0 %v3470_v2 }
 0x906   : > { %v3785_v6 = vpop.eup %3784  ;;  %3475 = vmatprep.subr.bf16.mxu0 %v3474_v5 }
 0x907   : > { %3178 = vmatprep.mubr.msk.f32.mxu0 %vm1169_vm3, %v3785_v6  ;;  %v2218_v4 = vsel %vm1169_vm3, %v3785_v6, 0.0  ;;  %v3787_v43 = vpop.eup %3786  ;;  %v2398_v6 = vld [vmem:[%s4685_s10 + $0x10] sm:$0xff] }
 0x908   : > { %2219 = vadd.xlane.f32.xlu0 %v2218_v4  ;;  %v2221_v50 = vsel %vm1169_vm3, %v3787_v43, 0.0 }
 0x909   : > { %3477 = vmatpush3.bf16.msra.mxu0 %v3474_v5 }
 0x90a   : > { %v3789_v11 = vpop.eup %3788 }
 0x90b   : > { %v2224_v20 = vsel %vm1169_vm3, %v3789_v11, 0.0  ;;  %v3791_v39 = vpop.eup %3790 }
 0x90c   : > { %2222 = vadd.xlane.f32.xlu0 %v2221_v50  ;;  %2225 = vadd.xlane.f32.xlu1 %v2224_v20  ;;  %v2227_v33 = vsel %vm1169_vm3, %v3791_v39, 0.0  ;;  %v2402_v20 = vld [vmem:[%s4685_s10 + $0x30] sm:$0xff] }
 0x90d   : > { %3179 = vmatmul.mubr.msk.f32.vlgmr.msra.gmra.mrb[16].mxu0 %vm1169_vm3, %v3787_v43  ;;  %v2400_v43 = vld [vmem:[%s4685_s10 + $0x20] sm:$0xff] }
 0x90e   : > { %3181 = vmatprep.mubr.msk.f32.mxu0 %vm1169_vm3, %v3789_v11  ;;  %v2401_v11 = vld [vmem:[%s4685_s10 + $0x28] sm:$0xff] }
 0x90f   : > { %v3486_v50 = vpack.c.bf16 %v2401_v11, %v2400_v43 }
 0x910   : > { %1195 = vadd.xlane.f32.xlu0 %v1194_v13  ;;  %2228 = vadd.xlane.f32.xlu1 %v2227_v33 }
 0x911   : > { %3182 = vmatmul.mubr.msk.f32.gmra.mrb[18].mxu0 %vm1169_vm3, %v3791_v39  ;;  %v2403_v39 = vld [vmem:[%s4685_s10 + $0x38] sm:$0xff] }
 0x912   : > { %v3490_v13 = vpack.c.bf16 %v2403_v39, %v2402_v20 }
 0x914   : > { %1198 = vadd.xlane.f32.xlu0 %v1197_v3  ;;  %1201 = vadd.xlane.f32.xlu1 %v1200_v52 }
 0x918   : > { %1204 = vadd.xlane.f32.xlu1 %v1203_v14 }
 0x92f   : > { %v1532_v18 = vpop.xlane.xlu1 %1531 }
 0x930   : > { %3792 = vrcp.f32 %v1532_v18  ;;  %v1526_v0 = vpop.xlane.xlu0 %1525 }
 0x931   : > { %3794 = vrcp.f32 %v1526_v0 }
 0x933   : > { %v1879_v22 = vpop.xlane.xlu1 %1878 }
 0x934   : > { %v1529_v16 = vpop.xlane.xlu0 %1528 }
 0x935   : > { %3796 = vrcp.f32 %v1529_v16 }
 0x937   : > { %v1882_v41 = vpop.xlane.xlu1 %1881 }
 0x938   : > { %v1535_v23 = vpop.xlane.xlu0 %1534 }
 0x939   : > { %3798 = vrcp.f32 %v1535_v23 }
 0x93a   : > { %v3793_v26 = vpop.eup %3792  ;;  %3800 = vrcp.f32 %v1879_v22 }
 0x93b   : > { %v3795_v9 = vpop.eup %3794  ;;  %v1675_v28 = vmul.f32 %v3793_v26, %v4487_v63 }
 0x93c   : > { %v1873_v27 = vpop.xlane.xlu0 %1872  ;;  %v1673_v30 = vmul.f32 %v3795_v9, %v4483_v56 }
 0x93d   : > { %3802 = vrcp.f32 %v1873_v27  ;;  %1685 = vrot.lane.b32.xlu1 %v1675_v28, %s3842_s15 }
 0x93e   : > { %1681 = vrot.lane.b32.xlu0 %v1673_v30, %s3842_s15  ;;  %3804 = vrcp.f32 %v1882_v41 }
 0x93f   : > { %v3797_v29 = vpop.eup %3796 }
 0x940   : > { %v1876_v36 = vpop.xlane.xlu0 %1875  ;;  %v1674_v37 = vmul.f32 %v3797_v29, %v4481_v55 }
 0x941   : > { %3806 = vrcp.f32 %v1876_v36 }
 0x942   : > { %1683 = vrot.lane.b32.xlu1 %v1674_v37, %s3842_s15 }
 0x943   : > { %v3799_v24 = vpop.eup %3798 }
 0x944   : > { %v1676_v63 = vmul.f32 %v3799_v24, %v4485_v32  ;;  %v3801_v25 = vpop.eup %3800  ;;  %v2396_v32 = vld [vmem:[%s4685_s10] sm:$0xff] }
 0x945   : > { %v2022_v1 = vmul.f32 %v3801_v25, %v4557_v15  ;;  %v2706_v25 = vld [vmem:[%s4686_s11] ss:$0 sm:$0xff] }
 0x946   : > { %1687 = vrot.lane.b32.xlu1 %v1676_v63, %s3842_s15 }
 0x947   : > { %v3803_v56 = vpop.eup %3802 }
 0x948   : > { %v2020_v57 = vmul.f32 %v3803_v56, %v4553_v46  ;;  %v3805_v40 = vpop.eup %3804  ;;  %v2397_v46 = vld [vmem:[%s4685_s10 + $0x8] sm:$0xff] }
 0x949   : > { %v2023_v38 = vmul.f32 %v3805_v40, %v4555_v34  ;;  %v3478_v15 = vpack.c.bf16 %v2397_v46, %v2396_v32  ;;  %v3824_v46 = vld [vmem:[%s3973_s17 + $0x8] sm:$0xff] }
 0x94a   : > { %2032 = vrot.lane.b32.xlu1 %v2022_v1, %s3840_s29  ;;  %2028 = vrot.lane.b32.xlu0 %v2020_v57, %s3840_s29  ;;  %v2711_v1 = vld [vmem:[%s4687_s12] ss:$0 sm:$0xff] }
 0x94b   : > { %v3807_v55 = vpop.eup %3806  ;;  %3479 = vmatprep.subr.bf16.mxu0 %v3478_v15  ;;  %3494 = vmatprep.subr.bf16.mxu1 %v3478_v15 }
 0x94c   : > { %v2021_v51 = vmul.f32 %v3807_v55, %v4551_v35  ;;  %3481 = vmatpush3.bf16.msra.mxu0 %v3478_v15  ;;  %3498 = vmatpush3.bf16.msra.mxu1 %v3478_v15 }
 0x94e   : > { %2034 = vrot.lane.b32.xlu1 %v2023_v38, %s3840_s29  ;;  %2030 = vrot.lane.b32.xlu0 %v2021_v51, %s3840_s29  ;;  %s460_s29 = scalar_lea.vmem %s4688_s13, %s2714_s14 }
 0x995   : > { %v2220_v34 = vpop.xlane.xlu0 %2219 }
 0x999   : > { %v2226_v44 = vpop.xlane.xlu1 %2225  ;;  %v2223_v35 = vpop.xlane.xlu0 %2222 }
 0x99d   : > { %v2229_v45 = vpop.xlane.xlu1 %2228  ;;  %v1196_v21 = vpop.xlane.xlu0 %1195 }
 0x99e   : > { %3808 = vrcp.f32 %v1196_v21 }
 0x9a1   : > { %v1202_v60 = vpop.xlane.xlu1 %1201  ;;  %v1199_v48 = vpop.xlane.xlu0 %1198 }
 0x9a2   : > { %3810 = vrcp.f32 %v1202_v60 }
 0x9a3   : > { %3812 = vrcp.f32 %v1199_v48 }
 0x9a5   : > { %v1205_v53 = vpop.xlane.xlu1 %1204 }
 0x9a6   : > { %3814 = vrcp.f32 %v1205_v53  ;;  %v3826_v53 = vld [vmem:[%s3973_s17 + $0x18] sm:$0xff] }
 0x9a7   : > { %3816 = vrcp.f32 %v2223_v35  ;;  %v3825_v35 = vld [vmem:[%s3973_s17] sm:$0xff] }
 0x9a8   : > { %v3809_v49 = vpop.eup %3808  ;;  %3818 = vrcp.f32 %v2220_v34 }
 0x9a9   : > { %v1343_v62 = vmul.f32 %v3809_v49, %v4387_v17  ;;  %3820 = vrcp.f32 %v2229_v45 }
 0x9aa   : > { %3822 = vrcp.f32 %v2226_v44 }
 0x9ab   : > { %1347 = vst.msk [vmem:[#allocation2] sm:$0xff] %vm1035_vm1, %v1343_v62  ;;  %v3827_v62 = vld [vmem:[%s3973_s17 + $0x10] sm:$0xff] }
 0x9ac   : > { %v3811_v12 = vpop.eup %3810 }
 0x9ad   : > { %v3813_v54 = vpop.eup %3812  ;;  %v1345_v8 = vmul.f32 %v3811_v12, %v4391_v31 }
 0x9ae   : > { %v1344_v47 = vmul.f32 %v3813_v54, %v4385_v7 }
 0x9af   : > { %1349 = vst.msk [vmem:[#allocation2 + $0x10] sm:$0xff] %vm1035_vm1, %v1345_v8  ;;  %v1686_v58 = vpop.permute.xlu1 %1685 }
 0x9b0   : > { %v3815_v59 = vpop.eup %3814  ;;  %1696 = vst.msk [vmem:[#allocation2 + $0x10] sm:$0xff] %vm1693_vm4, %v1686_v58  ;;  %v1682_v42 = vpop.permute.xlu0 %1681 }
 0x9b1   : > { %1348 = vst.msk [vmem:[#allocation2 + $0x8] sm:$0xff] %vm1035_vm1, %v1344_v47  ;;  %v1346_v17 = vmul.f32 %v3815_v59, %v4389_v10  ;;  %v2399_v10 = vld [vmem:[%s4685_s10 + $0x18] sm:$0xff]  ;;  %v3817_v33 = vpop.eup %3816 }
 0x9b2   : > { %1694 = vst.msk [vmem:[#allocation2] sm:$0xff] %vm1693_vm4, %v1682_v42  ;;  %v3482_v4 = vpack.c.bf16 %v2399_v10, %v2398_v6  ;;  %v3819_v52 = vpop.eup %3818 }
 0x9b3   : > { %1350 = vst.msk [vmem:[#allocation2 + $0x18] sm:$0xff] %vm1035_vm1, %v1346_v17  ;;  %v3821_v16 = vpop.eup %3820 }
 0x9b4   : > { %v1684_v61 = vpop.permute.xlu1 %1683  ;;  %3483 = vmatprep.subr.bf16.mxu0 %v3482_v4  ;;  %3495 = vmatprep.subr.bf16.mxu1 %v3482_v4  ;;  %v3823_v23 = vpop.eup %3822 }
 0x9b5   : > { %1695 = vst.msk [vmem:[#allocation2 + $0x8] sm:$0xff] %vm1693_vm4, %v1684_v61  ;;  %3485 = vmatpush3.bf16.msra.mxu0 %v3482_v4  ;;  %3499 = vmatpush3.bf16.msra.mxu1 %v3482_v4 }
 0x9b6   : > { %3487 = vmatprep.subr.bf16.mxu0 %v3486_v50  ;;  %3496 = vmatprep.subr.bf16.mxu1 %v3486_v50 }
 0x9b8   : > { %v1688_v19 = vpop.permute.xlu1 %1687 }
 0x9b9   : > { %1697 = vst.msk [vmem:[#allocation2 + $0x18] sm:$0xff] %vm1693_vm4, %v1688_v19  ;;  %3489 = vmatpush3.bf16.msra.mxu0 %v3486_v50  ;;  %3500 = vmatpush3.bf16.msra.mxu1 %v3486_v50 }
 0x9ba   : > { %3491 = vmatprep.subr.bf16.mxu0 %v3490_v13  ;;  %3497 = vmatprep.subr.bf16.mxu1 %v3490_v13 }
 0x9bc   : > { %v2033_v31 = vpop.permute.xlu1 %2032  ;;  %v2029_v7 = vpop.permute.xlu0 %2028 }
 0x9bd   : > { %2043 = vst.msk [vmem:[#allocation2 + $0x10] sm:$0xff] %vm2040_vm5, %v2033_v31  ;;  %2041 = vst.msk [vmem:[#allocation2] sm:$0xff] %vm2040_vm5, %v2029_v7  ;;  %3493 = vmatpush3.bf16.msra.mxu0 %v3490_v13  ;;  %3501 = vmatpush3.bf16.msra.mxu1 %v3490_v13 }
 0x9c0   : > { %v2035_v2 = vpop.permute.xlu1 %2034  ;;  %v2031_v5 = vpop.permute.xlu0 %2030 }
 0x9c1   : > { %2044 = vst.msk [vmem:[#allocation2 + $0x18] sm:$0xff] %vm2040_vm5, %v2035_v2  ;;  %2042 = vst.msk [vmem:[#allocation2 + $0x8] sm:$0xff] %vm2040_vm5, %v2031_v5 }
 0x9e0   : > { %v3180_v3 = vpop.f32.mrb[16].mxu0 }
 0x9e1   : > { %v2368_v14 = vmul.f32 %v3817_v33, %v3180_v3  ;;  %v2344_v18 = vpop.f32.mrb[17].mxu0 }
 0x9e2   : > { %v2367_v0 = vmul.f32 %v3819_v52, %v2344_v18 }
 0x9e4   : > { %2375 = vrot.lane.b32.xlu0 %v2367_v0, %s3838_s27  ;;  %v3183_v22 = vpop.f32.mrb[18].mxu0 }
 0x9e5   : > { %v2370_v26 = vmul.f32 %v3821_v16, %v3183_v22  ;;  %v2354_v9 = vpop.f32.mrb[19].mxu0 }
 0x9e6   : > { %v2369_v28 = vmul.f32 %v3823_v23, %v2354_v9 }
 0x9e8   : > { %2377 = vrot.lane.b32.xlu0 %v2368_v14, %s3838_s27  ;;  %2379 = vrot.lane.b32.xlu1 %v2369_v28, %s3838_s27 }
 0x9ec   : > { %2381 = vrot.lane.b32.xlu1 %v2370_v26, %s3838_s27 }
 0xa56   : > { %v2376_v41 = vpop.permute.xlu0 %2375 }
 0xa57   : > { %2388 = vst.msk [vmem:[#allocation2] sm:$0xff] %vm2387_vm6, %v2376_v41 }
 0xa5a   : > { %v2378_v27 = vpop.permute.xlu0 %2377  ;;  %v2380_v30 = vpop.permute.xlu1 %2379 }
 0xa5b   : > { %2389 = vst.msk [vmem:[#allocation2 + $0x8] sm:$0xff] %vm2387_vm6, %v2378_v27  ;;  %2390 = vst.msk [vmem:[#allocation2 + $0x10] sm:$0xff] %vm2387_vm6, %v2380_v30 }
 0xa5e   : > { %v2382_v29 = vpop.permute.xlu1 %2381  ;;  %v2392_v36 = vld [vmem:[#allocation2] sm:$0xff] }
 0xa5f   : > { %2391 = vst.msk [vmem:[#allocation2 + $0x18] sm:$0xff] %vm2387_vm6, %v2382_v29  ;;  %3200 = vmatprep.mubr.msk.f32.mxu0 %vm479_vm0, %v2392_v36 }
 0xa62   : > { %v2393_v37 = vld [vmem:[#allocation2 + $0x8] sm:$0xff]  ;;  %v2394_v24 = vld [vmem:[#allocation2 + $0x10] sm:$0xff] }
 0xa63   : > { %3201 = vmatmul.mubr.msk.f32.vlgmr.msra.gmra.mrb[20].mxu0 %vm479_vm0, %v2393_v37  ;;  %3203 = vmatprep.mubr.msk.f32.mxu1 %vm479_vm0, %v2394_v24 }
 0xa66   : > { %v2395_v63 = vld [vmem:[#allocation2 + $0x18] sm:$0xff] }
 0xa67   : > { %3204 = vmatmul.mubr.msk.f32.vlgmr.msra.gmra.mrb[28].mxu1 %vm479_vm0, %v2395_v63 }
 0xb36   : > { %v3202_v56 = vpop.f32.mrb[20].mxu0 }
 0xb37   : > { %v2495_v57 = vadd.f32 %v3202_v56, %v2706_v25  ;;  %v2489_v40 = vpop.f32.mrb[21].mxu0 }
 0xb38   : > { %v2490_v55 = vadd.f32 %v2706_v25, %v2489_v40 }
 0xb39   : > { %v2516_v38 = vmul.f32 %v2711_v1, %v2495_v57 }
 0xb3a   : > { %v2515_v51 = vmul.f32 %v2711_v1, %v2490_v55  ;;  %v3205_v32 = vpop.f32.mrb[28].mxu1 }
 0xb3b   : > { %v2520_v15 = vadd.f32 %v3824_v46, %v2516_v38  ;;  %v2505_v34 = vadd.f32 %v3205_v32, %v2706_v25  ;;  %v2499_v44 = vpop.f32.mrb[29].mxu1 }
 0xb3c   : > { %v2519_v45 = vadd.f32 %v3825_v35, %v2515_v51  ;;  %v2500_v21 = vadd.f32 %v2706_v25, %v2499_v44 }
 0xb3d   : > { %2524 = vst.msk [vmem:[%s460_s29 + $0x8] sm:$0xff] %vm479_vm0, %v2520_v15  ;;  %v2518_v60 = vmul.f32 %v2711_v1, %v2505_v34 }
 0xb3e   : > { %2523 = vst.msk [vmem:[%s460_s29] sm:$0xff] %vm479_vm0, %v2519_v45  ;;  %v2517_v48 = vmul.f32 %v2711_v1, %v2500_v21 }
 0xb3f   : > { %v2522_v49 = vadd.f32 %v3826_v53, %v2518_v60 }
 0xb40   : > { %v2521_v12 = vadd.f32 %v3827_v62, %v2517_v48 }
 0xb41   : > { %2526 = vst.msk [vmem:[%s460_s29 + $0x18] sm:$0xff] %vm479_vm0, %v2522_v49 }
 0xb42   : > { %2525 = vst.msk [vmem:[%s460_s29 + $0x10] sm:$0xff] %vm479_vm0, %v2521_v12 }
 0xb43 PF: > { %s23_s25 = sadd.s32 1, %s3834_s25  }
 0xb44   : > { %p20_p4 = scmp.ge.s32.totalorder %s23_s25, 4  }
 0xb46   :  { %22 = sbr.rel (!%p20_p4) target bundleno = 1 (0x1), region = 105 }

// kernel: _lambda_.7
= control target key start
LH: loop header
LB: loop body
LE: loop exit
PB: predicated region body
PF: predicated region fallthrough
CT: control target
= control target key end

     0   :  { %s4611_s21 = smov 0   ;;  %s5622_s0 = inlined_call_operand.vmem [shape: f32[2,96,64], index: 0, kind: input, shape index: {}]   ;;  %s5623_s1 = inlined_call_operand.vmem [shape: f32[2,32,64], index: 1, kind: input, shape index: {}]   ;;  %s5624_s2 = inlined_call_operand.vmem [shape: f32[1,64], index: 2, kind: input, shape index: {}]   ;;  %s5625_s3 = inlined_call_operand.vmem [shape: f32[1,64], index: 3, kind: input, shape index: {}]   ;;  %s5626_s4 = inlined_call_operand.vmem [shape: f32[1,64], index: 4, kind: input, shape index: {}]   ;;  %s5627_s5 = inlined_call_operand.vmem [shape: f32[1,64], index: 5, kind: input, shape index: {}]   ;;  %s5628_s6 = inlined_call_operand.vmem [shape: f32[64,64], index: 6, kind: input, shape index: {}]   ;;  %s5629_s7 = inlined_call_operand.vmem [shape: f32[1,64], index: 7, kind: input, shape index: {}]   ;;  %s5630_s8 = inlined_call_operand.vmem [shape: f32[64,128], index: 8, kind: input, shape index: {}]   ;;  %s5631_s9 = inlined_call_operand.vmem [shape: f32[1,128], index: 9, kind: input, shape index: {}]   ;;  %s5632_s10 = inlined_call_operand.vmem [shape: f32[64,64], index: 10, kind: input, shape index: {}]   ;;  %s5633_s11 = inlined_call_operand.vmem [shape: f32[1,64], index: 11, kind: input, shape index: {}]   ;;  %s5634_s12 = inlined_call_operand.vmem [shape: f32[2,96,64], index: 12, kind: output, shape index: {}]  }
   0x1 LB: > { %s3444_s22 = sadd.s32 4294967295, %s4537_s21   ;;  %p3448_p0 = scmp.ge.s32.totalorder %s4537_s21, 1  ;;  %s4537_s21 = sphi %s4611_s21, %s22_s21  }
   0x2   : > { %p372_p1 = scmp.lt.s32.totalorder %s4537_s21, 3 }
   0x4   : > { %p373_p2 = pnand %p3448_p0, %p372_p1 }
   0x5   : > { %p419_p3 = scmp.lt.s32.totalorder (!%p373_p2), %s3444_s22, 1  ;;  %vm452_vm0 = vcmask (!%p373_p2), 523264   ;;  %vm1008_vm1 = vcmask (!%p373_p2), 130048   ;;  %s4539_s13 = smov (!%p373_p2), 112   ;;  %vm1182_vm3 = vcmask (!%p373_p2), 261120   ;;  %vm2042_vm4 = vcmask (!%p373_p2), 261248  }
   0x6   : > { %376 = sbr.rel (%p373_p2) target bundleno = 1729 (0x6c1), region = 68  ;;  %vm4930_vm2 = vmpackc.low (!%p373_p2), %vm1008_vm1, %vm1008_vm1  ;;  %s4540_s16 = smov (!%p373_p2), 96   ;;  %vm2597_vm5 = vcmask (!%p373_p2), 392448   ;;  %vm3152_vm6 = vcmask (!%p373_p2), 523648  }
   0x7   : > { %s4541_s17 = smov (!%p373_p2), 80   ;;  %s4542_s18 = smov (!%p373_p2), 64  }
   0x8   : > { %s4543_s19 = smov (!%p373_p2), 48   ;;  %s4544_s20 = smov (!%p373_p2), 32  }
   0x9   : > { %s4545_s24 = smov (!%p373_p2), 16  }
   0xd   : > { %s5638_s22 = smov (!%p419_p3, %s3444_s22), 1 }
   0xe   : > { %s4209_s23 = smul.u32 96, %s5638_s22  ;;  %s3602_s27 = sshll.u32 %s5638_s22, 5 }
   0xf   : > { %s428_s30 = scalar_lea.vmem %s5623_s1, %s3602_s27 }
  0x10   : > { %s4627_s26 = scalar_lea.vmem %s5622_s0, %s4209_s23  ;;  %v4681_v24 = vld [vmem:[%s428_s30] sm:$0xff]  ;;  %v4683_v25 = vld [vmem:[%s428_s30 + $0x8] sm:$0xff]  ;;  %v4689_v28 = vld [vmem:[%s428_s30 + $0x10] sm:$0xff]  ;;  %s5581_s14 = scalar_lea.vmem %s5634_s12, %s4209_s23 }
  0x11   : > { %v434_v0 = vld [vmem:[%s4627_s26] sm:$0xff]  ;;  %v436_v1 = vld [vmem:[%s4627_s26 + $0x10] sm:$0xff]  ;;  %v435_v2 = vld [vmem:[%s4627_s26 + $0x8] sm:$0xff]  ;;  %v648_v26 = vsel %vm452_vm0, %v4681_v24, 0.0  ;;  %v651_v27 = vsel %vm452_vm0, %v4683_v25, 0.0  ;;  %v654_v30 = vsel %vm452_vm0, %v4689_v28, 0.0 }
  0x12   : > { %v453_v3 = vsel %vm452_vm0, %v434_v0, 0.0  ;;  %v459_v4 = vsel %vm452_vm0, %v436_v1, 0.0  ;;  %v437_v5 = vld [vmem:[%s4627_s26 + $0x18] sm:$0xff]  ;;  %v456_v6 = vsel %vm452_vm0, %v435_v2, 0.0  ;;  %v4638_v8 = vld [vmem:[%s4627_s26 + $0x20] sm:$0xff]  ;;  %v4641_v9 = vld [vmem:[%s4627_s26 + $0x28] sm:$0xff] }
  0x13   : > { %454 = vadd.xlane.f32.xlu0 %v453_v3  ;;  %460 = vadd.xlane.f32.xlu1 %v459_v4  ;;  %v462_v7 = vsel %vm452_vm0, %v437_v5, 0.0  ;;  %v465_v10 = vsel %vm452_vm0, %v4638_v8, 0.0  ;;  %v468_v11 = vsel %vm452_vm0, %v4641_v9, 0.0  ;;  %v4648_v12 = vld [vmem:[%s4627_s26 + $0x30] sm:$0xff]  ;;  %v4651_v13 = vld [vmem:[%s4627_s26 + $0x38] sm:$0xff]  ;;  %v4658_v16 = vld [vmem:[%s4627_s26 + $0x40] sm:$0xff] }
  0x14   : > { %v471_v14 = vsel %vm452_vm0, %v4648_v12, 0.0  ;;  %v474_v15 = vsel %vm452_vm0, %v4651_v13, 0.0  ;;  %v4661_v17 = vld [vmem:[%s4627_s26 + $0x48] sm:$0xff]  ;;  %v477_v18 = vsel %vm452_vm0, %v4658_v16, 0.0  ;;  %v4669_v20 = vld [vmem:[%s4627_s26 + $0x50] sm:$0xff]  ;;  %v4672_v21 = vld [vmem:[%s4627_s26 + $0x58] sm:$0xff] }
  0x15   : > { %v480_v19 = vsel %vm452_vm0, %v4661_v17, 0.0  ;;  %v483_v22 = vsel %vm452_vm0, %v4669_v20, 0.0  ;;  %v486_v23 = vsel %vm452_vm0, %v4672_v21, 0.0  ;;  %v4691_v29 = vld [vmem:[%s428_s30 + $0x18] sm:$0xff] }
  0x16   : > { %v657_v31 = vsel %vm452_vm0, %v4691_v29, 0.0 }
  0x17   : > { %457 = vadd.xlane.f32.xlu0 %v456_v6  ;;  %463 = vadd.xlane.f32.xlu1 %v462_v7 }
  0x1b   : > { %466 = vadd.xlane.f32.xlu0 %v465_v10  ;;  %469 = vadd.xlane.f32.xlu1 %v468_v11 }
  0x1f   : > { %472 = vadd.xlane.f32.xlu0 %v471_v14  ;;  %475 = vadd.xlane.f32.xlu1 %v474_v15 }
  0x23   : > { %478 = vadd.xlane.f32.xlu0 %v477_v18  ;;  %481 = vadd.xlane.f32.xlu1 %v480_v19 }
  0x27   : > { %484 = vadd.xlane.f32.xlu0 %v483_v22  ;;  %487 = vadd.xlane.f32.xlu1 %v486_v23 }
  0x2b   : > { %649 = vadd.xlane.f32.xlu0 %v648_v26  ;;  %652 = vadd.xlane.f32.xlu1 %v651_v27 }
  0x2f   : > { %655 = vadd.xlane.f32.xlu0 %v654_v30  ;;  %658 = vadd.xlane.f32.xlu1 %v657_v31 }
  0xa0   : > { %v455_v32 = vpop.xlane.xlu0 %454  ;;  %v461_v33 = vpop.xlane.xlu1 %460 }
  0xa1   : > { %v490_v34 = vmul.f32 0.015625, %v455_v32  ;;  %v492_v35 = vmul.f32 0.015625, %v461_v33 }
  0xa3   : > { %v4697_v36 = vsub.f32 %v434_v0, %v490_v34  ;;  %v4699_v37 = vsub.f32 %v436_v1, %v492_v35 }
  0xa4   : > { %v458_v38 = vpop.xlane.xlu0 %457  ;;  %v464_v39 = vpop.xlane.xlu1 %463 }
  0xa5   : > { %v491_v40 = vmul.f32 0.015625, %v458_v38  ;;  %v493_v41 = vmul.f32 0.015625, %v464_v39  ;;  %v514_v42 = vmul.f32 %v4697_v36, %v4697_v36  ;;  %v516_v43 = vmul.f32 %v4699_v37, %v4699_v37 }
  0xa7   : > { %v4705_v44 = vsub.f32 %v435_v2, %v491_v40  ;;  %v4707_v45 = vsub.f32 %v437_v5, %v493_v41  ;;  %v526_v46 = vsel %vm452_vm0, %v514_v42, 0.0  ;;  %v532_v49 = vsel %vm452_vm0, %v516_v43, 0.0 }
  0xa8   : > { %527 = vadd.xlane.f32.xlu0 %v526_v46  ;;  %v467_v47 = vpop.xlane.xlu0 %466  ;;  %v470_v48 = vpop.xlane.xlu1 %469 }
  0xa9   : > { %v494_v50 = vmul.f32 0.015625, %v467_v47  ;;  %v495_v51 = vmul.f32 0.015625, %v470_v48  ;;  %v515_v52 = vmul.f32 %v4705_v44, %v4705_v44  ;;  %v517_v53 = vmul.f32 %v4707_v45, %v4707_v45  ;;  %v721_v47 = vld [vmem:[%s5628_s6 + $0x8] sm:$0xff] }
  0xab   : > { %v4716_v54 = vsub.f32 %v4638_v8, %v494_v50  ;;  %v4719_v55 = vsub.f32 %v4641_v9, %v495_v51  ;;  %v529_v56 = vsel %vm452_vm0, %v515_v52, 0.0  ;;  %v535_v59 = vsel %vm452_vm0, %v517_v53, 0.0 }
  0xac   : > { %533 = vadd.xlane.f32.xlu0 %v532_v49  ;;  %530 = vadd.xlane.f32.xlu1 %v529_v56  ;;  %v473_v57 = vpop.xlane.xlu0 %472  ;;  %v476_v58 = vpop.xlane.xlu1 %475 }
  0xad   : > { %v496_v60 = vmul.f32 0.015625, %v473_v57  ;;  %v497_v61 = vmul.f32 0.015625, %v476_v58  ;;  %v518_v62 = vmul.f32 %v4716_v54, %v4716_v54  ;;  %v519_v63 = vmul.f32 %v4719_v55, %v4719_v55 }
  0xaf   : > { %v4728_v0 = vsub.f32 %v4648_v12, %v496_v60  ;;  %v4731_v1 = vsub.f32 %v4651_v13, %v497_v61  ;;  %v538_v2 = vsel %vm452_vm0, %v518_v62, 0.0  ;;  %v541_v5 = vsel %vm452_vm0, %v519_v63, 0.0  ;;  %v724_v60 = vld [vmem:[%s5628_s6 + $0x20] sm:$0xff]  ;;  %v725_v61 = vld [vmem:[%s5628_s6 + $0x28] sm:$0xff]  ;;  %v726_v63 = vld [vmem:[%s5628_s6 + $0x30] sm:$0xff] }
  0xb0   : > { %536 = vadd.xlane.f32.xlu1 %v535_v59  ;;  %539 = vadd.xlane.f32.xlu0 %v538_v2  ;;  %v479_v3 = vpop.xlane.xlu0 %478  ;;  %v482_v4 = vpop.xlane.xlu1 %481  ;;  %v4089_v62 = vpack.c.bf16 %v725_v61, %v724_v60  ;;  %v727_v2 = vld [vmem:[%s5628_s6 + $0x38] sm:$0xff]  ;;  %v898_v61 = vld [vmem:[%s5630_s8 + $0x10] sm:$0xff] }
  0xb1   : > { %v498_v6 = vmul.f32 0.015625, %v479_v3  ;;  %v499_v7 = vmul.f32 0.015625, %v482_v4  ;;  %v520_v8 = vmul.f32 %v4728_v0, %v4728_v0  ;;  %v521_v9 = vmul.f32 %v4731_v1, %v4731_v1  ;;  %v896_v4 = vld [vmem:[%s5630_s8] sm:$0xff] }
  0xb2   : > { %v4093_v3 = vpack.c.bf16 %v727_v2, %v726_v63 }
  0xb3   : > { %v4740_v10 = vsub.f32 %v4658_v16, %v498_v6  ;;  %v4743_v11 = vsub.f32 %v4661_v17, %v499_v7  ;;  %v544_v12 = vsel %vm452_vm0, %v520_v8, 0.0  ;;  %v547_v15 = vsel %vm452_vm0, %v521_v9, 0.0 }
  0xb4   : > { %542 = vadd.xlane.f32.xlu1 %v541_v5  ;;  %545 = vadd.xlane.f32.xlu0 %v544_v12  ;;  %v485_v13 = vpop.xlane.xlu0 %484  ;;  %v488_v14 = vpop.xlane.xlu1 %487  ;;  %v897_v5 = vld [vmem:[%s5630_s8 + $0x8] sm:$0xff] }
  0xb5   : > { %v500_v18 = vmul.f32 0.015625, %v485_v13  ;;  %v501_v19 = vmul.f32 0.015625, %v488_v14  ;;  %v522_v22 = vmul.f32 %v4740_v10, %v4740_v10  ;;  %v523_v16 = vmul.f32 %v4743_v11, %v4743_v11 }
  0xb6   : > { %v4819_v6 = vpack.c.bf16 %v897_v5, %v896_v4 }
  0xb7   : > { %v4752_v23 = vsub.f32 %v4669_v20, %v500_v18  ;;  %v4755_v17 = vsub.f32 %v4672_v21, %v501_v19  ;;  %v550_v26 = vsel %vm452_vm0, %v522_v22, 0.0  ;;  %v553_v31 = vsel %vm452_vm0, %v523_v16, 0.0 }
  0xb8   : > { %548 = vadd.xlane.f32.xlu1 %v547_v15  ;;  %551 = vadd.xlane.f32.xlu0 %v550_v26  ;;  %v650_v27 = vpop.xlane.xlu0 %649  ;;  %v653_v30 = vpop.xlane.xlu1 %652 }
  0xb9   : > { %v660_v32 = vmul.f32 0.015625, %v650_v27  ;;  %v661_v33 = vmul.f32 0.015625, %v653_v30  ;;  %v524_v34 = vmul.f32 %v4752_v23, %v4752_v23  ;;  %v525_v20 = vmul.f32 %v4755_v17, %v4755_v17 }
  0xbb   : > { %v4764_v35 = vsub.f32 %v4681_v24, %v660_v32  ;;  %v4767_v21 = vsub.f32 %v4683_v25, %v661_v33  ;;  %v556_v38 = vsel %vm452_vm0, %v524_v34, 0.0  ;;  %v559_v41 = vsel %vm452_vm0, %v525_v20, 0.0  ;;  %v720_v25 = vld [vmem:[%s5628_s6] sm:$0xff] }
  0xbc   : > { %554 = vadd.xlane.f32.xlu1 %v553_v31  ;;  %557 = vadd.xlane.f32.xlu0 %v556_v38  ;;  %v656_v39 = vpop.xlane.xlu0 %655  ;;  %v659_v40 = vpop.xlane.xlu1 %658  ;;  %v4081_v48 = vpack.c.bf16 %v721_v47, %v720_v25  ;;  %v4831_v47 = vld [vmem:[%s5625_s3] ss:$0 sm:$0xff] }
  0xbd   : > { %v662_v42 = vmul.f32 0.015625, %v656_v39  ;;  %v663_v43 = vmul.f32 0.015625, %v659_v40  ;;  %v668_v46 = vmul.f32 %v4764_v35, %v4764_v35  ;;  %v669_v24 = vmul.f32 %v4767_v21, %v4767_v21 }
  0xbe   : > { %4082 = vmatprep.subr.bf16.mxu0 %v4081_v48 }
  0xbf   : > { %v4782_v49 = vsub.f32 %v4689_v28, %v662_v42  ;;  %v4785_v50 = vsub.f32 %v4691_v29, %v663_v43  ;;  %v672_v51 = vsel %vm452_vm0, %v668_v46, 0.0  ;;  %v675_v52 = vsel %vm452_vm0, %v669_v24, 0.0  ;;  %v722_v28 = vld [vmem:[%s5628_s6 + $0x10] sm:$0xff]  ;;  %v723_v29 = vld [vmem:[%s5628_s6 + $0x18] sm:$0xff]  ;;  %4084 = vmatpush3.bf16.msra.mxu0 %v4081_v48 }
  0xc0   : > { %560 = vadd.xlane.f32.xlu1 %v559_v41  ;;  %673 = vadd.xlane.f32.xlu0 %v672_v51  ;;  %v4085_v57 = vpack.c.bf16 %v723_v29, %v722_v28  ;;  %v4825_v41 = vld [vmem:[%s5624_s2] ss:$0 sm:$0xff] }
  0xc1   : > { %v670_v53 = vmul.f32 %v4782_v49, %v4782_v49  ;;  %v671_v56 = vmul.f32 %v4785_v50, %v4785_v50 }
  0xc2   : > { %4086 = vmatprep.subr.bf16.mxu0 %v4085_v57 }
  0xc3   : > { %v678_v58 = vsel %vm452_vm0, %v670_v53, 0.0  ;;  %v681_v59 = vsel %vm452_vm0, %v671_v56, 0.0  ;;  %4088 = vmatpush3.bf16.msra.mxu0 %v4085_v57 }
  0xc4   : > { %676 = vadd.xlane.f32.xlu1 %v675_v52  ;;  %679 = vadd.xlane.f32.xlu0 %v678_v58 }
  0xc5   : > { %4090 = vmatprep.subr.bf16.mxu0 %v4089_v62 }
  0xc7   : > { %4092 = vmatpush3.bf16.msra.mxu0 %v4089_v62  ;;  %v899_v62 = vld [vmem:[%s5630_s8 + $0x18] sm:$0xff] }
  0xc8   : > { %682 = vadd.xlane.f32.xlu1 %v681_v59  ;;  %4094 = vmatprep.subr.bf16.mxu0 %v4093_v3 }
  0xcb   : > { %4096 = vmatpush3.bf16.msra.mxu0 %v4093_v3 }
  0xcc   : > { %4098 = vmatprep.subr.bf16.mxu0 %v4819_v6 }
 0x135   : > { %v528_v7 = vpop.xlane.xlu0 %527 }
 0x136   : > { %v562_v8 = vmul.f32 0.015625, %v528_v7 }
 0x138   : > { %v574_v9 = vadd.f32 1e-06, %v562_v8 }
 0x139   : > { %v531_v12 = vpop.xlane.xlu1 %530  ;;  %v534_v13 = vpop.xlane.xlu0 %533 }
 0x13a   : > { %4295 = vrsqrt.f32 %v574_v9  ;;  %v563_v14 = vmul.f32 0.015625, %v531_v12  ;;  %v564_v15 = vmul.f32 0.015625, %v534_v13  ;;  %v4101_v12 = vpack.c.bf16 %v899_v62, %v898_v61 }
 0x13c   : > { %v575_v18 = vadd.f32 1e-06, %v563_v14  ;;  %v576_v19 = vadd.f32 1e-06, %v564_v15 }
 0x13d   : > { %v537_v22 = vpop.xlane.xlu1 %536  ;;  %v540_v16 = vpop.xlane.xlu0 %539 }
 0x13e   : > { %4297 = vrsqrt.f32 %v575_v18  ;;  %v565_v26 = vmul.f32 0.015625, %v537_v22  ;;  %v566_v27 = vmul.f32 0.015625, %v540_v16  ;;  %v900_v18 = vld [vmem:[%s5630_s8 + $0x20] sm:$0xff] }
 0x13f   : > { %4299 = vrsqrt.f32 %v576_v19  ;;  %v901_v19 = vld [vmem:[%s5630_s8 + $0x28] sm:$0xff] }
 0x140   : > { %v577_v30 = vadd.f32 1e-06, %v565_v26  ;;  %v578_v31 = vadd.f32 1e-06, %v566_v27 }
 0x141   : > { %v543_v32 = vpop.xlane.xlu1 %542  ;;  %v546_v33 = vpop.xlane.xlu0 %545 }
 0x142   : > { %4301 = vrsqrt.f32 %v577_v30  ;;  %v567_v34 = vmul.f32 0.015625, %v543_v32  ;;  %v568_v20 = vmul.f32 0.015625, %v546_v33 }
 0x143   : > { %4303 = vrsqrt.f32 %v578_v31 }
 0x144   : > { %v4296_v38 = vpop.eup %4295  ;;  %v579_v39 = vadd.f32 1e-06, %v567_v34  ;;  %v580_v40 = vadd.f32 1e-06, %v568_v20 }
 0x145   : > { %v549_v42 = vpop.xlane.xlu1 %548  ;;  %v552_v43 = vpop.xlane.xlu0 %551  ;;  %v598_v46 = vmul.f32 %v4296_v38, %v4697_v36  ;;  %v4105_v38 = vpack.c.bf16 %v901_v19, %v900_v18 }
 0x146   : > { %4305 = vrsqrt.f32 %v579_v39  ;;  %v569_v24 = vmul.f32 0.015625, %v549_v42  ;;  %v570_v25 = vmul.f32 0.015625, %v552_v43  ;;  %v903_v42 = vld [vmem:[%s5630_s8 + $0x38] sm:$0xff] }
 0x147   : > { %4307 = vrsqrt.f32 %v580_v40  ;;  %v616_v48 = vmul.f32 %v4825_v41, %v598_v46 }
 0x148   : > { %v4298_v51 = vpop.eup %4297  ;;  %v581_v52 = vadd.f32 1e-06, %v569_v24  ;;  %v582_v53 = vadd.f32 1e-06, %v570_v25 }
 0x149   : > { %v4300_v56 = vpop.eup %4299  ;;  %v555_v28 = vpop.xlane.xlu1 %554  ;;  %v634_v57 = vadd.f32 %v4831_v47, %v616_v48  ;;  %v599_v36 = vmul.f32 %v4298_v51, %v4705_v44 }
 0x14a   : > { %v558_v29 = vpop.xlane.xlu0 %557  ;;  %4309 = vrsqrt.f32 %v581_v52  ;;  %v571_v58 = vmul.f32 0.015625, %v555_v28  ;;  %v600_v60 = vmul.f32 %v4300_v56, %v4699_v37 }
 0x14b   : > { %v572_v59 = vmul.f32 0.015625, %v558_v29  ;;  %4311 = vrsqrt.f32 %v582_v53  ;;  %3799 = vmatprep.mubr.msk.f32.mxu0 %vm452_vm0, %v634_v57  ;;  %v617_v63 = vmul.f32 %v4825_v41, %v599_v36 }
 0x14c   : > { %v4302_v2 = vpop.eup %4301  ;;  %v583_v44 = vadd.f32 1e-06, %v571_v58  ;;  %v618_v4 = vmul.f32 %v4825_v41, %v600_v60 }
 0x14d   : > { %v584_v3 = vadd.f32 1e-06, %v572_v59  ;;  %v4304_v5 = vpop.eup %4303  ;;  %v561_v37 = vpop.xlane.xlu1 %560  ;;  %v635_v8 = vadd.f32 %v4831_v47, %v617_v63  ;;  %v601_v9 = vmul.f32 %v4302_v2, %v4707_v45 }
 0x14e   : > { %v674_v7 = vpop.xlane.xlu0 %673  ;;  %4313 = vrsqrt.f32 %v583_v44  ;;  %v573_v13 = vmul.f32 0.015625, %v561_v37  ;;  %v636_v15 = vadd.f32 %v4831_v47, %v618_v4  ;;  %v602_v45 = vmul.f32 %v4304_v5, %v4716_v54  ;;  %v3455_v37 = vld [vmem:[%s5626_s4] ss:$0 sm:$0xff] }
 0x14f   : > { %v684_v14 = vmul.f32 0.015625, %v674_v7  ;;  %4315 = vrsqrt.f32 %v584_v3  ;;  %3800 = vmatmul.mubr.msk.f32.vlgmr.msra.gmra.mrb[0].mxu0 %vm452_vm0, %v635_v8  ;;  %v619_v22 = vmul.f32 %v4825_v41, %v601_v9  ;;  %v3456_v9 = vld [vmem:[%s5627_s5] ss:$0 sm:$0xff] }
 0x150   : > { %v4306_v16 = vpop.eup %4305  ;;  %v585_v26 = vadd.f32 1e-06, %v573_v13  ;;  %3802 = vmatprep.mubr.msk.f32.mxu0 %vm452_vm0, %v636_v15  ;;  %4100 = vmatpush3.bf16.msra.mxu0 %v4819_v6  ;;  %v620_v34 = vmul.f32 %v4825_v41, %v602_v45  ;;  %v902_v6 = vld [vmem:[%s5630_s8 + $0x30] sm:$0xff] }
 0x151   : > { %v688_v27 = vadd.f32 1e-06, %v684_v14  ;;  %v4308_v30 = vpop.eup %4307  ;;  %v677_v31 = vpop.xlane.xlu1 %676  ;;  %v637_v33 = vadd.f32 %v4831_v47, %v619_v22  ;;  %v603_v20 = vmul.f32 %v4306_v16, %v4719_v55  ;;  %4102 = vmatprep.subr.bf16.mxu0 %v4101_v12  ;;  %v4109_v56 = vpack.c.bf16 %v903_v42, %v902_v6  ;;  %v3470_v42 = vld [vmem:[%s5631_s9] ss:$0 sm:$0xff] }
 0x152   : > { %v680_v32 = vpop.xlane.xlu0 %679  ;;  %4317 = vrsqrt.f32 %v585_v26  ;;  %v685_v54 = vmul.f32 0.015625, %v677_v31  ;;  %v604_v40 = vmul.f32 %v4308_v30, %v4728_v0  ;;  %v638_v55 = vadd.f32 %v4831_v47, %v620_v34 }
 0x153   : > { %v686_v39 = vmul.f32 0.015625, %v680_v32  ;;  %4319 = vrsqrt.f32 %v688_v27  ;;  %3803 = vmatmul.mubr.msk.f32.gmra.mrb[2].mxu0 %vm452_vm0, %v637_v33  ;;  %v621_v43 = vmul.f32 %v4825_v41, %v603_v20 }
 0x154   : > { %v4310_v46 = vpop.eup %4309  ;;  %v689_v24 = vadd.f32 1e-06, %v685_v54  ;;  %v622_v0 = vmul.f32 %v4825_v41, %v604_v40  ;;  %4104 = vmatpush3.bf16.msra.mxu0 %v4101_v12  ;;  %3805 = vmatprep.mubr.msk.f32.mxu0 %vm452_vm0, %v638_v55 }
 0x155   : > { %v690_v25 = vadd.f32 1e-06, %v686_v39  ;;  %v4312_v48 = vpop.eup %4311  ;;  %v683_v51 = vpop.xlane.xlu1 %682  ;;  %v639_v52 = vadd.f32 %v4831_v47, %v621_v43  ;;  %v605_v53 = vmul.f32 %v4310_v46, %v4731_v1  ;;  %4106 = vmatprep.subr.bf16.mxu0 %v4105_v38 }
 0x156   : > { %4321 = vrsqrt.f32 %v689_v24  ;;  %v687_v28 = vmul.f32 0.015625, %v683_v51  ;;  %v640_v29 = vadd.f32 %v4831_v47, %v622_v0  ;;  %v606_v57 = vmul.f32 %v4312_v48, %v4740_v10 }
 0x157   : > { %4323 = vrsqrt.f32 %v690_v25  ;;  %3806 = vmatmul.mubr.msk.f32.gmra.mrb[4].mxu0 %vm452_vm0, %v639_v52  ;;  %v623_v36 = vmul.f32 %v4825_v41, %v605_v53 }
 0x158   : > { %v4314_v58 = vpop.eup %4313  ;;  %v691_v59 = vadd.f32 1e-06, %v687_v28  ;;  %3808 = vmatprep.mubr.msk.f32.mxu0 %vm452_vm0, %v640_v29  ;;  %v624_v60 = vmul.f32 %v4825_v41, %v606_v57  ;;  %4108 = vmatpush3.bf16.msra.mxu0 %v4105_v38 }
 0x159   : > { %v4316_v1 = vpop.eup %4315  ;;  %v641_v61 = vadd.f32 %v4831_v47, %v623_v36  ;;  %v607_v62 = vmul.f32 %v4314_v58, %v4743_v11  ;;  %4110 = vmatprep.subr.bf16.mxu0 %v4109_v56 }
 0x15a   : > { %4325 = vrsqrt.f32 %v691_v59  ;;  %v642_v10 = vadd.f32 %v4831_v47, %v624_v60  ;;  %v608_v63 = vmul.f32 %v4316_v1, %v4752_v23 }
 0x15b   : > { %3809 = vmatmul.mubr.msk.f32.gmra.mrb[6].mxu0 %vm452_vm0, %v641_v61  ;;  %v625_v2 = vmul.f32 %v4825_v41, %v607_v62 }
 0x15c   : > { %v4318_v44 = vpop.eup %4317  ;;  %3811 = vmatprep.mubr.msk.f32.mxu0 %vm452_vm0, %v642_v10  ;;  %v626_v3 = vmul.f32 %v4825_v41, %v608_v63  ;;  %4112 = vmatpush3.bf16.msra.mxu0 %v4109_v56 }
 0x15d   : > { %v4320_v4 = vpop.eup %4319  ;;  %v643_v5 = vadd.f32 %v4831_v47, %v625_v2  ;;  %v609_v11 = vmul.f32 %v4318_v44, %v4755_v17 }
 0x15e   : > { %v644_v23 = vadd.f32 %v4831_v47, %v626_v3  ;;  %v696_v7 = vmul.f32 %v4320_v4, %v4764_v35 }
 0x15f   : > { %3812 = vmatmul.mubr.msk.f32.gmra.mrb[8].mxu0 %vm452_vm0, %v643_v5  ;;  %v627_v8 = vmul.f32 %v4825_v41, %v609_v11 }
 0x160   : > { %v4322_v12 = vpop.eup %4321  ;;  %3814 = vmatprep.mubr.msk.f32.mxu0 %vm452_vm0, %v644_v23  ;;  %v706_v17 = vmul.f32 %v3455_v37, %v696_v7 }
 0x161   : > { %v4324_v13 = vpop.eup %4323  ;;  %v697_v14 = vmul.f32 %v4322_v12, %v4767_v21  ;;  %v645_v15 = vadd.f32 %v4831_v47, %v627_v8 }
 0x162   : > { %v716_v18 = vadd.f32 %v3456_v9, %v706_v17  ;;  %v698_v35 = vmul.f32 %v4324_v13, %v4782_v49  ;;  %v4916_v49 = vld [vmem:[%s5629_s7] ss:$0 sm:$0xff] }
 0x163   : > { %3815 = vmatmul.mubr.msk.f32.gmra.mrb[10].mxu0 %vm452_vm0, %v645_v15  ;;  %v707_v19 = vmul.f32 %v3455_v37, %v697_v14 }
 0x164   : > { %v4326_v41 = vpop.eup %4325  ;;  %3833 = vmatprep.mubr.msk.f32.mxu0 %vm452_vm0, %v716_v18  ;;  %v708_v22 = vmul.f32 %v3455_v37, %v698_v35 }
 0x165   : > { %v717_v45 = vadd.f32 %v3456_v9, %v707_v19  ;;  %v699_v16 = vmul.f32 %v4326_v41, %v4785_v50 }
 0x166   : > { %v718_v26 = vadd.f32 %v3456_v9, %v708_v22 }
 0x167   : > { %3834 = vmatmul.mubr.msk.f32.vlgmr.msra.gmra.mrb[12].mxu0 %vm452_vm0, %v717_v45  ;;  %v709_v27 = vmul.f32 %v3455_v37, %v699_v16 }
 0x168   : > { %3836 = vmatprep.mubr.msk.f32.mxu0 %vm452_vm0, %v718_v26 }
 0x169   : > { %v719_v21 = vadd.f32 %v3456_v9, %v709_v27 }
 0x16b   : > { %3837 = vmatmul.mubr.msk.f32.gmra.mrb[14].mxu0 %vm452_vm0, %v719_v21 }
 0x222   : > { %v3801_v47 = vpop.f32.mrb[0].mxu0 }
 0x223   : > { %v837_v30 = vpop.f32.mrb[1].mxu0  ;;  %v843_v36 = vadd.f32 %v3801_v47, %v4916_v49 }
 0x224   : > { %v4919_v31 = vadd.f32 %v4916_v49, %v837_v30 }
 0x226   : > { %1500 = vrot.lane.b32.xlu1 %v4919_v31, %s4539_s13  ;;  %v3804_v50 = vpop.f32.mrb[2].mxu0  ;;  %3847 = vmatprep.mubr.msk.f32.mxu1 %vm1008_vm1, %v4919_v31 }
 0x227   : > { %v847_v32 = vpop.f32.mrb[3].mxu0  ;;  %v853_v58 = vadd.f32 %v3804_v50, %v4916_v49 }
 0x228   : > { %v848_v28 = vadd.f32 %v4916_v49, %v847_v32 }
 0x22a   : > { %v3807_v33 = vpop.f32.mrb[4].mxu0 }
 0x22b   : > { %v857_v34 = vpop.f32.mrb[5].mxu0  ;;  %v863_v59 = vadd.f32 %v3807_v33, %v4916_v49 }
 0x22c   : > { %v858_v60 = vadd.f32 %v4916_v49, %v857_v34 }
 0x22e   : > { %v3810_v20 = vpop.f32.mrb[6].mxu0 }
 0x22f   : > { %v867_v38 = vpop.f32.mrb[7].mxu0  ;;  %v873_v1 = vadd.f32 %v3810_v20, %v4916_v49 }
 0x230   : > { %v868_v61 = vadd.f32 %v4916_v49, %v867_v38 }
 0x232   : > { %v3813_v54 = vpop.f32.mrb[8].mxu0 }
 0x233   : > { %v877_v39 = vpop.f32.mrb[9].mxu0  ;;  %v883_v10 = vadd.f32 %v3813_v54, %v4916_v49 }
 0x234   : > { %v878_v62 = vadd.f32 %v4916_v49, %v877_v39 }
 0x236   : > { %v3816_v40 = vpop.f32.mrb[10].mxu0 }
 0x237   : > { %v887_v6 = vpop.f32.mrb[11].mxu0  ;;  %v893_v2 = vadd.f32 %v3816_v40, %v4916_v49 }
 0x238   : > { %v888_v63 = vadd.f32 %v4916_v49, %v887_v6 }
 0x23a   : > { %v3835_v55 = vpop.f32.mrb[12].mxu0 }
 0x23b   : > { %v995_v43 = vadd.f32 %v3835_v55, %v3470_v42  ;;  %v989_v46 = vpop.f32.mrb[13].mxu0 }
 0x23c   : > { %v990_v24 = vadd.f32 %v3470_v42, %v989_v46 }
 0x23e   : > { %v3838_v0 = vpop.f32.mrb[14].mxu0  ;;  %v4934_v48 = vpack.i.bf16 %v995_v43, %v990_v24  ;;  %v4113_v51 = vpack.c.bf16 %v995_v43, %v990_v24 }
 0x23f   : > { %v1005_v52 = vadd.f32 %v3838_v0, %v3470_v42  ;;  %v999_v53 = vpop.f32.mrb[15].mxu0 }
 0x240   : > { %v1000_v56 = vadd.f32 %v3470_v42, %v999_v53  ;;  %4226 = vrot.lane.b32.xlu0 %v4934_v48, %s4539_s13  ;;  %4115 = vmatprep.subr.msk.bf16.mxu1 %vm4930_vm2, %v4113_v51 }
 0x241   : > { %4118 = vmatpush3.bf16.xpose.msk.msra.mxu1 %vm4930_vm2, %v4113_v51 }
 0x242   : > { %v4943_v29 = vpack.i.bf16 %v1005_v52, %v1000_v56  ;;  %v4119_v57 = vpack.c.bf16 %v1005_v52, %v1000_v56 }
 0x244   : > { %1504 = vrot.lane.b32.xlu0 %v848_v28, %s4539_s13  ;;  %4231 = vrot.lane.b32.xlu1 %v4943_v29, %s4539_s13 }
 0x245   : > { %4121 = vmatprep.subr.msk.bf16.mxu1 %vm4930_vm2, %v4119_v57 }
 0x248   : > { %4236 = vrot.lane.b32.xlu0 %v4934_v48, %s4540_s16  ;;  %1502 = vrot.lane.b32.xlu1 %v843_v36, %s4539_s13 }
 0x249   : > { %4124 = vmatpush3.bf16.xpose.msk.msra.mxu1 %vm4930_vm2, %v4119_v57 }
 0x24c   : > { %1510 = vrot.lane.b32.xlu0 %v863_v59, %s4539_s13  ;;  %1506 = vrot.lane.b32.xlu1 %v853_v58, %s4539_s13 }
 0x250   : > { %1514 = vrot.lane.b32.xlu0 %v873_v1, %s4539_s13  ;;  %1508 = vrot.lane.b32.xlu1 %v858_v60, %s4539_s13 }
 0x251   : > { %3848 = vmatmul.mubr.msk.f32.vlgmr.msra.gmra.mrb[0].mxu1 %vm1008_vm1, %v843_v36 }
 0x252   : > { %3850 = vmatprep.mubr.msk.f32.mxu1 %vm1008_vm1, %v848_v28 }
 0x254   : > { %1516 = vrot.lane.b32.xlu0 %v878_v62, %s4539_s13  ;;  %1512 = vrot.lane.b32.xlu1 %v868_v61, %s4539_s13 }
 0x255   : > { %3851 = vmatmul.mubr.msk.f32.gmra.mrb[2].mxu1 %vm1008_vm1, %v853_v58 }
 0x256   : > { %3853 = vmatprep.mubr.msk.f32.mxu1 %vm1008_vm1, %v858_v60 }
 0x258   : > { %1520 = vrot.lane.b32.xlu0 %v888_v63, %s4539_s13  ;;  %1518 = vrot.lane.b32.xlu1 %v883_v10, %s4539_s13 }
 0x259   : > { %3854 = vmatmul.mubr.msk.f32.gmra.mrb[4].mxu1 %vm1008_vm1, %v863_v59 }
 0x25a   : > { %3856 = vmatprep.mubr.msk.f32.mxu1 %vm1008_vm1, %v868_v61 }
 0x25c   : > { %2055 = vrot.lane.b32.xlu0 %v4919_v31, %s4540_s16  ;;  %4241 = vrot.lane.b32.xlu1 %v4943_v29, %s4540_s16 }
 0x25d   : > { %3857 = vmatmul.mubr.msk.f32.gmra.mrb[6].mxu1 %vm1008_vm1, %v873_v1 }
 0x25e   : > { %3859 = vmatprep.mubr.msk.f32.mxu1 %vm1008_vm1, %v878_v62 }
 0x260   : > { %2059 = vrot.lane.b32.xlu0 %v848_v28, %s4540_s16  ;;  %1522 = vrot.lane.b32.xlu1 %v893_v2, %s4539_s13 }
 0x261   : > { %3860 = vmatmul.mubr.msk.f32.gmra.mrb[8].mxu1 %vm1008_vm1, %v883_v10 }
 0x262   : > { %3862 = vmatprep.mubr.msk.f32.mxu1 %vm1008_vm1, %v888_v63 }
 0x264   : > { %4246 = vrot.lane.b32.xlu0 %v4934_v48, %s4541_s17  ;;  %2057 = vrot.lane.b32.xlu1 %v843_v36, %s4540_s16 }
 0x265   : > { %3863 = vmatmul.mubr.msk.f32.gmra.mrb[10].mxu1 %vm1008_vm1, %v893_v2 }
 0x268   : > { %2065 = vrot.lane.b32.xlu0 %v863_v59, %s4540_s16  ;;  %2061 = vrot.lane.b32.xlu1 %v853_v58, %s4540_s16 }
 0x26c   : > { %2069 = vrot.lane.b32.xlu0 %v873_v1, %s4540_s16  ;;  %2063 = vrot.lane.b32.xlu1 %v858_v60, %s4540_s16 }
 0x270   : > { %2071 = vrot.lane.b32.xlu0 %v878_v62, %s4540_s16  ;;  %2067 = vrot.lane.b32.xlu1 %v868_v61, %s4540_s16 }
 0x274   : > { %2075 = vrot.lane.b32.xlu0 %v888_v63, %s4540_s16  ;;  %4251 = vrot.lane.b32.xlu1 %v4943_v29, %s4541_s17 }
 0x278   : > { %2610 = vrot.lane.b32.xlu0 %v4919_v31, %s4541_s17  ;;  %2073 = vrot.lane.b32.xlu1 %v883_v10, %s4540_s16 }
 0x27c   : > { %2614 = vrot.lane.b32.xlu0 %v848_v28, %s4541_s17  ;;  %2077 = vrot.lane.b32.xlu1 %v893_v2, %s4540_s16 }
 0x280   : > { %2618 = vrot.lane.b32.xlu0 %v858_v60, %s4541_s17  ;;  %2612 = vrot.lane.b32.xlu1 %v843_v36, %s4541_s17 }
 0x284   : > { %2622 = vrot.lane.b32.xlu0 %v868_v61, %s4541_s17  ;;  %2616 = vrot.lane.b32.xlu1 %v853_v58, %s4541_s17 }
 0x288   : > { %2626 = vrot.lane.b32.xlu0 %v878_v62, %s4541_s17  ;;  %2620 = vrot.lane.b32.xlu1 %v863_v59, %s4541_s17 }
 0x28c   : > { %2630 = vrot.lane.b32.xlu0 %v888_v63, %s4541_s17  ;;  %2624 = vrot.lane.b32.xlu1 %v873_v1, %s4541_s17 }
 0x290   : > { %4271 = vrot.lane.b32.xlu0 %v4943_v29, %s4542_s18  ;;  %2628 = vrot.lane.b32.xlu1 %v883_v10, %s4541_s17 }
 0x294   : > { %4276 = vrot.lane.b32.xlu0 %v4943_v29, %s4543_s19  ;;  %2632 = vrot.lane.b32.xlu1 %v893_v2, %s4541_s17 }
 0x298   : > { %v1501_v44 = vpop.permute.xlu1 %1500  ;;  %4281 = vrot.lane.b32.xlu0 %v4943_v29, %s4544_s20  ;;  %4256 = vrot.lane.b32.xlu1 %v4934_v48, %s4542_s18 }
 0x299   : > { %3899 = vmatprep.mubr.msk.f32.mxu1 %vm1008_vm1, %v1501_v44 }
 0x29c   : > { %4261 = vrot.lane.b32.xlu1 %v4934_v48, %s4543_s19 }
 0x2a0   : > { %4266 = vrot.lane.b32.xlu1 %v4934_v48, %s4544_s20 }
 0x2b2   : > { %v4227_v3 = vpop.permute.xlu0 %4226 }
 0x2b3   : > { %v4229_v4 = vunpack.i.h.bf16 %v4227_v3  ;;  %v4228_v5 = vunpack.i.l.bf16 %v4227_v3 }
 0x2b5   : > { %v4133_v11 = vpack.c.bf16 %v4229_v4, %v4228_v5 }
 0x2b6   : > { %v4232_v37 = vpop.permute.xlu1 %4231  ;;  %v1505_v23 = vpop.permute.xlu0 %1504 }
 0x2b7   : > { %v4234_v7 = vunpack.i.h.bf16 %v4232_v37  ;;  %v4233_v8 = vunpack.i.l.bf16 %v4232_v37  ;;  %4135 = vmatprep.subr.msk.bf16.mxu1 %vm4930_vm2, %v4133_v11 }
 0x2b8   : > { %4138 = vmatpush3.bf16.xpose.msk.msra.mxu1 %vm4930_vm2, %v4133_v11 }
 0x2b9   : > { %v4139_v9 = vpack.c.bf16 %v4234_v7, %v4233_v8 }
 0x2ba   : > { %v1503_v12 = vpop.permute.xlu1 %1502  ;;  %v4237_v17 = vpop.permute.xlu0 %4236 }
 0x2bb   : > { %v4239_v13 = vunpack.i.h.bf16 %v4237_v17  ;;  %v4238_v14 = vunpack.i.l.bf16 %v4237_v17  ;;  %4141 = vmatprep.subr.msk.bf16.mxu1 %vm4930_vm2, %v4139_v9 }
 0x2bd   : > { %v4153_v35 = vpack.c.bf16 %v4239_v13, %v4238_v14 }
 0x2be   : > { %v1507_v15 = vpop.permute.xlu1 %1506  ;;  %v1511_v18 = vpop.permute.xlu0 %1510 }
 0x2c0   : > { %4144 = vmatpush3.bf16.xpose.msk.msra.mxu1 %vm4930_vm2, %v4139_v9 }
 0x2c1   : > { %4155 = vmatprep.subr.msk.bf16.mxu1 %vm4930_vm2, %v4153_v35 }
 0x2c2   : > { %v1509_v19 = vpop.permute.xlu1 %1508  ;;  %v1515_v41 = vpop.permute.xlu0 %1514 }
 0x2c6   : > { %v1513_v22 = vpop.permute.xlu1 %1512  ;;  %v1517_v45 = vpop.permute.xlu0 %1516 }
 0x2c7   : > { %3900 = vmatmul.mubr.msk.f32.vlgmr.msra.gmra.mrb[12].mxu1 %vm1008_vm1, %v1503_v12 }
 0x2c8   : > { %3902 = vmatprep.mubr.msk.f32.mxu1 %vm1008_vm1, %v1505_v23  ;;  %4158 = vmatpush3.bf16.xpose.msk.msra.mxu1 %vm4930_vm2, %v4153_v35 }
 0x2ca   : > { %v1519_v16 = vpop.permute.xlu1 %1518  ;;  %v1521_v26 = vpop.permute.xlu0 %1520 }
 0x2cb   : > { %3903 = vmatmul.mubr.msk.f32.gmra.mrb[14].mxu1 %vm1008_vm1, %v1507_v15 }
 0x2cc   : > { %3905 = vmatprep.mubr.msk.f32.mxu1 %vm1008_vm1, %v1509_v19 }
 0x2ce   : > { %v4242_v27 = vpop.permute.xlu1 %4241  ;;  %v2056_v21 = vpop.permute.xlu0 %2055 }
 0x2cf   : > { %v4244_v49 = vunpack.i.h.bf16 %v4242_v27  ;;  %v4243_v47 = vunpack.i.l.bf16 %v4242_v27  ;;  %3906 = vmatmul.mubr.msk.f32.gmra.mrb[16].mxu1 %vm1008_vm1, %v1511_v18 }
 0x2d0   : > { %3908 = vmatprep.mubr.msk.f32.mxu1 %vm1008_vm1, %v1513_v22 }
 0x2d1   : > { %v4159_v30 = vpack.c.bf16 %v4244_v49, %v4243_v47 }
 0x2d2   : > { %v1523_v31 = vpop.permute.xlu1 %1522  ;;  %v2060_v50 = vpop.permute.xlu0 %2059 }
 0x2d3   : > { %3909 = vmatmul.mubr.msk.f32.gmra.mrb[18].mxu1 %vm1008_vm1, %v1515_v41  ;;  %4161 = vmatprep.subr.msk.bf16.mxu1 %vm4930_vm2, %v4159_v30 }
 0x2d4   : > { %3911 = vmatprep.mubr.msk.f32.mxu1 %vm1008_vm1, %v1517_v45  ;;  %4164 = vmatpush3.bf16.xpose.msk.msra.mxu1 %vm4930_vm2, %v4159_v30 }
 0x2d6   : > { %v2058_v32 = vpop.permute.xlu1 %2057  ;;  %v4247_v33 = vpop.permute.xlu0 %4246 }
 0x2d7   : > { %v4249_v34 = vunpack.i.h.bf16 %v4247_v33  ;;  %v4248_v20 = vunpack.i.l.bf16 %v4247_v33  ;;  %3912 = vmatmul.mubr.msk.f32.gmra.mrb[20].mxu1 %vm1008_vm1, %v1519_v16 }
 0x2d8   : > { %3914 = vmatprep.mubr.msk.f32.mxu1 %vm1008_vm1, %v1521_v26 }
 0x2d9   : > { %v4173_v38 = vpack.c.bf16 %v4249_v34, %v4248_v20 }
 0x2da   : > { %v2062_v54 = vpop.permute.xlu1 %2061  ;;  %v2066_v39 = vpop.permute.xlu0 %2065 }
 0x2db   : > { %3915 = vmatmul.mubr.msk.f32.gmra.mrb[22].mxu1 %vm1008_vm1, %v1523_v31  ;;  %4175 = vmatprep.subr.msk.bf16.mxu1 %vm4930_vm2, %v4173_v38 }
 0x2dc   : > { %3951 = vmatprep.mubr.msk.f32.mxu1 %vm1008_vm1, %v2056_v21 }
 0x2de   : > { %v2064_v40 = vpop.permute.xlu1 %2063  ;;  %v2070_v6 = vpop.permute.xlu0 %2069 }
 0x2df   : > { %3952 = vmatmul.mubr.msk.f32.vlgmr.msra.gmra.mrb[24].mxu1 %vm1008_vm1, %v2058_v32 }
 0x2e0   : > { %4178 = vmatpush3.bf16.xpose.msk.msra.mxu1 %vm4930_vm2, %v4173_v38  ;;  %3954 = vmatprep.mubr.msk.f32.mxu1 %vm1008_vm1, %v2060_v50 }
 0x2e2   : > { %v2068_v42 = vpop.permute.xlu1 %2067  ;;  %v2072_v55 = vpop.permute.xlu0 %2071 }
 0x2e3   : > { %3955 = vmatmul.mubr.msk.f32.gmra.mrb[26].mxu1 %vm1008_vm1, %v2062_v54 }
 0x2e4   : > { %3957 = vmatprep.mubr.msk.f32.mxu1 %vm1008_vm1, %v2064_v40 }
 0x2e6   : > { %v4252_v43 = vpop.permute.xlu1 %4251  ;;  %v2076_v46 = vpop.permute.xlu0 %2075 }
 0x2e7   : > { %v4254_v24 = vunpack.i.h.bf16 %v4252_v43  ;;  %v4253_v0 = vunpack.i.l.bf16 %v4252_v43  ;;  %3958 = vmatmul.mubr.msk.f32.gmra.mrb[28].mxu1 %vm1008_vm1, %v2066_v39 }
 0x2e8   : > { %3960 = vmatprep.mubr.msk.f32.mxu1 %vm1008_vm1, %v2068_v42 }
 0x2e9   : > { %v4179_v51 = vpack.c.bf16 %v4254_v24, %v4253_v0 }
 0x2ea   : > { %v2074_v52 = vpop.permute.xlu1 %2073  ;;  %v2611_v53 = vpop.permute.xlu0 %2610 }
 0x2eb   : > { %3961 = vmatmul.mubr.msk.f32.gmra.mrb[30].mxu1 %vm1008_vm1, %v2070_v6  ;;  %4181 = vmatprep.subr.msk.bf16.mxu1 %vm4930_vm2, %v4179_v51 }
 0x2ec   : > { %3963 = vmatprep.mubr.msk.f32.mxu1 %vm1008_vm1, %v2072_v55  ;;  %4184 = vmatpush3.bf16.xpose.msk.msra.mxu1 %vm4930_vm2, %v4179_v51 }
 0x2ee   : > { %v2078_v56 = vpop.permute.xlu1 %2077  ;;  %v2615_v28 = vpop.permute.xlu0 %2614 }
 0x2ef   : > { %3964 = vmatmul.mubr.msk.f32.gmra.mrb[32].mxu1 %vm1008_vm1, %v2074_v52 }
 0x2f0   : > { %3966 = vmatprep.mubr.msk.f32.mxu1 %vm1008_vm1, %v2076_v46 }
 0x2f2   : > { %v2613_v57 = vpop.permute.xlu1 %2612  ;;  %v2619_v36 = vpop.permute.xlu0 %2618 }
 0x2f3   : > { %3967 = vmatmul.mubr.msk.f32.gmra.mrb[34].mxu1 %vm1008_vm1, %v2078_v56 }
 0x2f4   : > { %4003 = vmatprep.mubr.msk.f32.mxu1 %vm1008_vm1, %v2611_v53 }
 0x2f6   : > { %v2617_v58 = vpop.permute.xlu1 %2616  ;;  %v2623_v59 = vpop.permute.xlu0 %2622 }
 0x2f7   : > { %4004 = vmatmul.mubr.msk.f32.vlgmr.msra.gmra.mrb[36].mxu1 %vm1008_vm1, %v2613_v57 }
 0x2f8   : > { %4006 = vmatprep.mubr.msk.f32.mxu1 %vm1008_vm1, %v2615_v28 }
 0x2fa   : > { %v2621_v25 = vpop.permute.xlu1 %2620  ;;  %v2627_v60 = vpop.permute.xlu0 %2626 }
 0x2fb   : > { %4007 = vmatmul.mubr.msk.f32.gmra.mrb[38].mxu1 %vm1008_vm1, %v2617_v58 }
 0x2fc   : > { %4009 = vmatprep.mubr.msk.f32.mxu1 %vm1008_vm1, %v2619_v36 }
 0x2fe   : > { %v2625_v1 = vpop.permute.xlu1 %2624  ;;  %v2631_v61 = vpop.permute.xlu0 %2630 }
 0x2ff   : > { %4010 = vmatmul.mubr.msk.f32.gmra.mrb[40].mxu1 %vm1008_vm1, %v2621_v25 }
 0x300   : > { %4012 = vmatprep.mubr.msk.f32.mxu1 %vm1008_vm1, %v2623_v59 }
 0x302   : > { %v2629_v62 = vpop.permute.xlu1 %2628  ;;  %v4272_v63 = vpop.permute.xlu0 %4271 }
 0x303   : > { %4013 = vmatmul.mubr.msk.f32.gmra.mrb[42].mxu1 %vm1008_vm1, %v2625_v1  ;;  %v4274_v44 = vunpack.i.h.bf16 %v4272_v63  ;;  %v4273_v3 = vunpack.i.l.bf16 %v4272_v63 }
 0x304   : > { %4015 = vmatprep.mubr.msk.f32.mxu1 %vm1008_vm1, %v2627_v60 }
 0x305   : > { %v4129_v8 = vpack.c.bf16 %v4274_v44, %v4273_v3 }
 0x306   : > { %v2633_v10 = vpop.permute.xlu1 %2632  ;;  %v5154_v28 = vpop.permute.xlu0 %4276 }
 0x307   : > { %4016 = vmatmul.mubr.msk.f32.gmra.mrb[44].mxu1 %vm1008_vm1, %v2629_v62 }
 0x308   : > { %4018 = vmatprep.mubr.msk.f32.mxu1 %vm1008_vm1, %v2631_v61 }
 0x30a   : > { %v4257_v2 = vpop.permute.xlu1 %4256  ;;  %v5172_v62 = vpop.permute.xlu0 %4281 }
 0x30b   : > { %v4259_v4 = vunpack.i.h.bf16 %v4257_v2  ;;  %v4258_v5 = vunpack.i.l.bf16 %v4257_v2  ;;  %4019 = vmatmul.mubr.msk.f32.gmra.mrb[46].mxu1 %vm1008_vm1, %v2633_v10 }
 0x30d   : > { %v4125_v11 = vpack.c.bf16 %v4259_v4, %v4258_v5 }
 0x30e   : > { %v4262_v37 = vpop.permute.xlu1 %4261 }
 0x30f   : > { %v4264_v23 = vunpack.i.h.bf16 %v4262_v37  ;;  %v4263_v7 = vunpack.i.l.bf16 %v4262_v37  ;;  %4126 = vmatprep.subr.bf16.mxu0 %v4125_v11 }
 0x310   : > { %4128 = vmatpush3.bf16.msra.mxu0 %v4125_v11 }
 0x311   : > { %4130 = vmatprep.subr.bf16.mxu0 %v4129_v8  ;;  %v5073_v9 = vpack.c.bf16 %v4264_v23, %v4263_v7 }
 0x312   : > { %v5166_v60 = vpop.permute.xlu1 %4266 }
 0x314   : > { %4132 = vmatpush3.bf16.msra.mxu0 %v4129_v8 }
 0x315   : > { %4146 = vmatprep.subr.bf16.mxu0 %v5073_v9 }
 0x324   : > { %v5076_v12 = vpop.f32.mrb[0].mxu1 }
 0x325   : > { %v5078_v17 = vpop.f32.mrb[1].mxu1  ;;  %v1186_v13 = vsel %vm1182_vm3, %v5076_v12, -inf }
 0x326   : > { %1187 = vmax.xlane.f32.xlu1 %v1186_v13  ;;  %v1183_v14 = vsel %vm1182_vm3, %v5078_v17, -inf }
 0x327   : > { %1184 = vmax.xlane.f32.xlu0 %v1183_v14 }
 0x328   : > { %v5084_v15 = vpop.f32.mrb[2].mxu1 }
 0x329   : > { %v5086_v18 = vpop.f32.mrb[3].mxu1  ;;  %v1192_v35 = vsel %vm1182_vm3, %v5084_v15, -inf }
 0x32a   : > { %v1189_v45 = vsel %vm1182_vm3, %v5086_v18, -inf }
 0x32b   : > { %1193 = vmax.xlane.f32.xlu0 %v1192_v35 }
 0x32c   : > { %v5090_v19 = vpop.f32.mrb[4].mxu1 }
 0x32d   : > { %v5092_v41 = vpop.f32.mrb[5].mxu1  ;;  %v1198_v22 = vsel %vm1182_vm3, %v5090_v19, -inf }
 0x32e   : > { %1199 = vmax.xlane.f32.xlu1 %v1198_v22  ;;  %v1195_v21 = vsel %vm1182_vm3, %v5092_v41, -inf }
 0x32f   : > { %1190 = vmax.xlane.f32.xlu0 %v1189_v45 }
 0x330   : > { %v5098_v16 = vpop.f32.mrb[6].mxu1 }
 0x331   : > { %v5100_v26 = vpop.f32.mrb[7].mxu1  ;;  %v1204_v27 = vsel %vm1182_vm3, %v5098_v16, -inf }
 0x332   : > { %1205 = vmax.xlane.f32.xlu1 %v1204_v27  ;;  %v1201_v31 = vsel %vm1182_vm3, %v5100_v26, -inf }
 0x333   : > { %1196 = vmax.xlane.f32.xlu0 %v1195_v21 }
 0x334   : > { %v5106_v49 = vpop.f32.mrb[8].mxu1 }
 0x335   : > { %v5108_v47 = vpop.f32.mrb[9].mxu1  ;;  %v1210_v30 = vsel %vm1182_vm3, %v5106_v49, -inf }
 0x336   : > { %1211 = vmax.xlane.f32.xlu1 %v1210_v30  ;;  %v1207_v33 = vsel %vm1182_vm3, %v5108_v47, -inf }
 0x337   : > { %1202 = vmax.xlane.f32.xlu0 %v1201_v31 }
 0x338   : > { %v5114_v50 = vpop.f32.mrb[10].mxu1 }
 0x339   : > { %v5116_v32 = vpop.f32.mrb[11].mxu1  ;;  %v1216_v34 = vsel %vm1182_vm3, %v5114_v50, -inf }
 0x33a   : > { %v1213_v20 = vsel %vm1182_vm3, %v5116_v32, -inf }
 0x33b   : > { %1208 = vmax.xlane.f32.xlu0 %v1207_v33 }
 0x33f   : > { %1217 = vmax.xlane.f32.xlu0 %v1216_v34 }
 0x343   : > { %1214 = vmax.xlane.f32.xlu0 %v1213_v20 }
 0x39a   : > { %v5124_v38 = vpop.f32.mrb[12].mxu1 }
 0x39b   : > { %v5126_v54 = vpop.f32.mrb[13].mxu1  ;;  %v1692_v39 = vsel %vm1182_vm3, %v5124_v38, -inf }
 0x39c   : > { %1693 = vmax.xlane.f32.xlu0 %v1692_v39  ;;  %v1689_v40 = vsel %vm1182_vm3, %v5126_v54, -inf }
 0x39d   : > { %1690 = vmax.xlane.f32.xlu1 %v1689_v40 }
 0x39e   : > { %v5132_v6 = vpop.f32.mrb[14].mxu1 }
 0x39f   : > { %v5134_v42 = vpop.f32.mrb[15].mxu1  ;;  %v1698_v55 = vsel %vm1182_vm3, %v5132_v6, -inf }
 0x3a0   : > { %v1695_v24 = vsel %vm1182_vm3, %v5134_v42, -inf }
 0x3a1   : > { %1699 = vmax.xlane.f32.xlu1 %v1698_v55 }
 0x3a2   : > { %v5138_v43 = vpop.f32.mrb[16].mxu1 }
 0x3a3   : > { %v5140_v46 = vpop.f32.mrb[17].mxu1  ;;  %v1704_v53 = vsel %vm1182_vm3, %v5138_v43, -inf }
 0x3a4   : > { %v1701_v0 = vsel %vm1182_vm3, %v5140_v46, -inf }
 0x3a5   : > { %1696 = vmax.xlane.f32.xlu1 %v1695_v24  ;;  %1702 = vmax.xlane.f32.xlu0 %v1701_v0  ;;  %v4279_v24 = vunpack.i.h.bf16 %v5154_v28  ;;  %v4278_v0 = vunpack.i.l.bf16 %v5154_v28 }
 0x3a6   : > { %v5146_v51 = vpop.f32.mrb[18].mxu1 }
 0x3a7   : > { %v5148_v52 = vpop.f32.mrb[19].mxu1  ;;  %v1710_v58 = vsel %vm1182_vm3, %v5146_v51, -inf }
 0x3a8   : > { %v1707_v56 = vsel %vm1182_vm3, %v5148_v52, -inf }
 0x3a9   : > { %1705 = vmax.xlane.f32.xlu1 %v1704_v53  ;;  %1708 = vmax.xlane.f32.xlu0 %v1707_v56 }
 0x3aa   : > { %v5156_v57 = vpop.f32.mrb[20].mxu1 }
 0x3ab   : > { %v5158_v36 = vpop.f32.mrb[21].mxu1  ;;  %v1716_v10 = vsel %vm1182_vm3, %v5156_v57, -inf }
 0x3ac   : > { %v1713_v59 = vsel %vm1182_vm3, %v5158_v36, -inf }
 0x3ad   : > { %1711 = vmax.xlane.f32.xlu1 %v1710_v58  ;;  %1714 = vmax.xlane.f32.xlu0 %v1713_v59 }
 0x3ae   : > { %v5164_v25 = vpop.f32.mrb[22].mxu1 }
 0x3af   : > { %v5168_v1 = vpop.f32.mrb[23].mxu1  ;;  %v1722_v61 = vsel %vm1182_vm3, %v5164_v25, -inf }
 0x3b0   : > { %v1719_v11 = vsel %vm1182_vm3, %v5168_v1, -inf }
 0x3b1   : > { %1717 = vmax.xlane.f32.xlu1 %v1716_v10  ;;  %1723 = vmax.xlane.f32.xlu0 %v1722_v61 }
 0x3b2   : > { %v5176_v63 = vpop.f32.mrb[24].mxu1 }
 0x3b3   : > { %v1188_v2 = vpop.xlane.xlu1 %1187  ;;  %v5178_v44 = vpop.f32.mrb[25].mxu1  ;;  %v2247_v35 = vsel %vm1182_vm3, %v5176_v63, -inf }
 0x3b4   : > { %v1220_v3 = vsub.f32 %v5076_v12, %v1188_v2  ;;  %v1185_v4 = vpop.xlane.xlu0 %1184  ;;  %v2244_v5 = vsel %vm1182_vm3, %v5178_v44, -inf }
 0x3b5   : > { %v1219_v37 = vsub.f32 %v5078_v17, %v1185_v4  ;;  %2245 = vmax.xlane.f32.xlu1 %v2244_v5  ;;  %1720 = vmax.xlane.f32.xlu0 %v1719_v11  ;;  %v4149_v5 = vpack.c.bf16 %v4279_v24, %v4278_v0 }
 0x3b6   : > { %v1233_v23 = vmul.f32 1.442695, %v1220_v3  ;;  %v5186_v7 = vpop.f32.mrb[26].mxu1 }
 0x3b7   : > { %v1231_v8 = vmul.f32 1.442695, %v1219_v37  ;;  %v5188_v13 = vpop.f32.mrb[27].mxu1  ;;  %v2253_v12 = vsel %vm1182_vm3, %v5186_v7, -inf  ;;  %v4269_v37 = vunpack.i.h.bf16 %v5166_v60 }
 0x3b8   : > { %v1194_v14 = vpop.xlane.xlu0 %1193  ;;  %v2250_v30 = vsel %vm1182_vm3, %v5188_v13, -inf }
 0x3b9   : > { %4327 = vpow2.f32 %v1231_v8  ;;  %2254 = vmax.xlane.f32.xlu1 %v2253_v12  ;;  %2248 = vmax.xlane.f32.xlu0 %v2247_v35  ;;  %v1222_v17 = vsub.f32 %v5084_v15, %v1194_v14 }
 0x3ba   : > { %4329 = vpow2.f32 %v1233_v23  ;;  %v5195_v22 = vpop.f32.mrb[28].mxu1  ;;  %v4268_v23 = vunpack.i.l.bf16 %v5166_v60 }
 0x3bb   : > { %v1200_v45 = vpop.xlane.xlu1 %1199  ;;  %v5197_v27 = vpop.f32.mrb[29].mxu1  ;;  %v1237_v34 = vmul.f32 1.442695, %v1222_v17  ;;  %v2259_v56 = vsel %vm1182_vm3, %v5195_v22, -inf }
 0x3bc   : > { %v1191_v21 = vpop.xlane.xlu0 %1190  ;;  %v2256_v31 = vsel %vm1182_vm3, %v5197_v27, -inf  ;;  %v1224_v20 = vsub.f32 %v5090_v19, %v1200_v45 }
 0x3bd   : > { %v1221_v33 = vsub.f32 %v5086_v18, %v1191_v21  ;;  %2251 = vmax.xlane.f32.xlu1 %v2250_v30  ;;  %2257 = vmax.xlane.f32.xlu0 %v2256_v31 }
 0x3be   : > { %v5205_v15 = vpop.f32.mrb[30].mxu1  ;;  %v1241_v58 = vmul.f32 1.442695, %v1224_v20 }
 0x3bf   : > { %v1235_v39 = vmul.f32 1.442695, %v1221_v33  ;;  %v1206_v40 = vpop.xlane.xlu1 %1205  ;;  %v5207_v55 = vpop.f32.mrb[31].mxu1  ;;  %v2265_v11 = vsel %vm1182_vm3, %v5205_v15, -inf }
 0x3c0   : > { %v1197_v53 = vpop.xlane.xlu0 %1196  ;;  %v2262_v18 = vsel %vm1182_vm3, %v5207_v55, -inf  ;;  %v1226_v59 = vsub.f32 %v5098_v16, %v1206_v40 }
 0x3c1   : > { %4331 = vpow2.f32 %v1235_v39  ;;  %v1223_v19 = vsub.f32 %v5092_v41, %v1197_v53  ;;  %2260 = vmax.xlane.f32.xlu1 %v2259_v56  ;;  %2263 = vmax.xlane.f32.xlu0 %v2262_v18 }
 0x3c2   : > { %4333 = vpow2.f32 %v1237_v34  ;;  %v5217_v61 = vpop.f32.mrb[32].mxu1  ;;  %v1245_v12 = vmul.f32 1.442695, %v1226_v59 }
 0x3c3   : > { %v5219_v10 = vpop.eup %4327  ;;  %v1239_v28 = vmul.f32 1.442695, %v1223_v19  ;;  %v1212_v2 = vpop.xlane.xlu1 %1211  ;;  %v2271_v21 = vsel %vm1182_vm3, %v5217_v61, -inf }
 0x3c4   : > { %v5221_v3 = vpop.f32.mrb[33].mxu1  ;;  %v5223_v4 = vpop.eup %4329  ;;  %3873 = vmatprep.mubr.msk.f32.mxu0 %vm1182_vm3, %v5219_v10  ;;  %v1228_v14 = vsub.f32 %v5106_v49, %v1212_v2  ;;  %v5247_v49 = vpack.c.bf16 %v4269_v37, %v4268_v23 }
 0x3c5   : > { %v1203_v41 = vpop.xlane.xlu0 %1202  ;;  %v2268_v16 = vsel %vm1182_vm3, %v5221_v3, -inf  ;;  %4335 = vpow2.f32 %v1239_v28  ;;  %3874 = vmatmul.mubr.msk.f32.vlgmr.msra.gmra.mrb[16].mxu0 %vm1182_vm3, %v5223_v4  ;;  %2266 = vmax.xlane.f32.xlu1 %v2265_v11 }
 0x3c6   : > { %v1225_v8 = vsub.f32 %v5100_v26, %v1203_v41  ;;  %4337 = vpow2.f32 %v1241_v58  ;;  %4148 = vmatpush3.bf16.msra.mxu0 %v5073_v9  ;;  %2269 = vmax.xlane.f32.xlu0 %v2268_v16  ;;  %v5238_v35 = vpop.f32.mrb[34].mxu1  ;;  %v1249_v9 = vmul.f32 1.442695, %v1228_v14 }
 0x3c7   : > { %4150 = vmatprep.subr.bf16.mxu0 %v4149_v5  ;;  %v5240_v45 = vpop.f32.mrb[35].mxu1  ;;  %v2277_v26 = vsel %vm1182_vm3, %v5238_v35, -inf }
 0x3c8   : > { %v1243_v17 = vmul.f32 1.442695, %v1225_v8  ;;  %v2274_v24 = vsel %vm1182_vm3, %v5240_v45, -inf }
 0x3c9   : > { %v1209_v60 = vpop.xlane.xlu0 %1208  ;;  %2272 = vmax.xlane.f32.xlu1 %v2271_v21 }
 0x3ca   : > { %4339 = vpow2.f32 %v1243_v17  ;;  %v1227_v30 = vsub.f32 %v5108_v47, %v1209_v60  ;;  %4152 = vmatpush3.bf16.msra.mxu0 %v4149_v5  ;;  %2278 = vmax.xlane.f32.xlu0 %v2277_v26  ;;  %v5249_v31 = vpop.f32.mrb[36].mxu1 }
 0x3cb   : > { %4341 = vpow2.f32 %v1245_v12  ;;  %v5251_v33 = vpop.eup %4331  ;;  %4166 = vmatprep.subr.bf16.mxu0 %v5247_v49  ;;  %v5254_v20 = vpop.f32.mrb[37].mxu1 }
 0x3cc   : > { %v1247_v34 = vmul.f32 1.442695, %v1227_v30  ;;  %v5256_v39 = vpop.eup %4333  ;;  %3876 = vmatprep.mubr.msk.f32.mxu0 %vm1182_vm3, %v5251_v33  ;;  %v2799_v47 = vsel %vm1182_vm3, %v5254_v20, -inf }
 0x3cd   : > { %v1218_v40 = vpop.xlane.xlu0 %1217  ;;  %3877 = vmatmul.mubr.msk.f32.gmra.mrb[18].mxu0 %vm1182_vm3, %v5256_v39  ;;  %2800 = vmax.xlane.f32.xlu1 %v2799_v47 }
 0x3ce   : > { %4343 = vpow2.f32 %v1247_v34  ;;  %v1230_v0 = vsub.f32 %v5114_v50, %v1218_v40  ;;  %2275 = vmax.xlane.f32.xlu0 %v2274_v24  ;;  %v5267_v53 = vpop.f32.mrb[38].mxu1  ;;  %v2802_v50 = vsel %vm1182_vm3, %v5249_v31, -inf }
 0x3cf   : > { %4345 = vpow2.f32 %v1249_v9  ;;  %v5269_v56 = vpop.eup %4335  ;;  %v5271_v18 = vpop.f32.mrb[39].mxu1  ;;  %v2808_v19 = vsel %vm1182_vm3, %v5267_v53, -inf }
 0x3d0   : > { %v4338_v58 = vpop.eup %4337  ;;  %3879 = vmatprep.mubr.msk.f32.mxu0 %vm1182_vm3, %v5269_v56  ;;  %v1253_v2 = vmul.f32 1.442695, %v1230_v0 }
 0x3d1   : > { %v1215_v59 = vpop.xlane.xlu0 %1214  ;;  %3880 = vmatmul.mubr.msk.f32.gmra.mrb[20].mxu0 %vm1182_vm3, %v4338_v58  ;;  %2809 = vmax.xlane.f32.xlu1 %v2808_v19 }
 0x3d2   : > { %v1229_v28 = vsub.f32 %v5116_v32, %v1215_v59  ;;  %2803 = vmax.xlane.f32.xlu0 %v2802_v50  ;;  %v5281_v41 = vpop.f32.mrb[40].mxu1  ;;  %v2805_v32 = vsel %vm1182_vm3, %v5271_v18, -inf  ;;  %v1258_v50 = vsel %vm1182_vm3, %v5223_v4, 0.0  ;;  %v1267_v4 = vsel %vm1182_vm3, %v5269_v56, 0.0 }
 0x3d3   : > { %v5283_v16 = vpop.f32.mrb[41].mxu1  ;;  %v2814_v26 = vsel %vm1182_vm3, %v5281_v41, -inf }
 0x3d4   : > { %v4340_v5 = vpop.eup %4339  ;;  %v1251_v11 = vmul.f32 1.442695, %v1229_v28  ;;  %v2811_v23 = vsel %vm1182_vm3, %v5283_v16, -inf }
 0x3d5   : > { %v4342_v37 = vpop.eup %4341  ;;  %3882 = vmatprep.mubr.msk.f32.mxu0 %vm1182_vm3, %v4340_v5  ;;  %2806 = vmax.xlane.f32.xlu1 %v2805_v32  ;;  %v1270_v32 = vsel %vm1182_vm3, %v4338_v58, 0.0 }
 0x3d6   : > { %4347 = vpow2.f32 %v1251_v11  ;;  %3883 = vmatmul.mubr.msk.f32.gmra.mrb[22].mxu0 %vm1182_vm3, %v4342_v37  ;;  %2812 = vmax.xlane.f32.xlu0 %v2811_v23  ;;  %v5291_v8 = vpop.f32.mrb[42].mxu1  ;;  %v1255_v11 = vsel %vm1182_vm3, %v5219_v10, 0.0  ;;  %v1273_v10 = vsel %vm1182_vm3, %v4340_v5, 0.0 }
 0x3d7   : > { %4349 = vpow2.f32 %v1253_v2  ;;  %v5293_v14 = vpop.f32.mrb[43].mxu1  ;;  %v2820_v9 = vsel %vm1182_vm3, %v5291_v8, -inf  ;;  %v1264_v2 = vsel %vm1182_vm3, %v5256_v39, 0.0 }
 0x3d8   : > { %v4344_v12 = vpop.eup %4343  ;;  %v2817_v60 = vsel %vm1182_vm3, %v5293_v14, -inf }
 0x3d9   : > { %v4346_v17 = vpop.eup %4345  ;;  %3885 = vmatprep.mubr.msk.f32.mxu0 %vm1182_vm3, %v4344_v12  ;;  %2815 = vmax.xlane.f32.xlu1 %v2814_v26 }
 0x3da   : > { %3886 = vmatmul.mubr.msk.f32.gmra.mrb[24].mxu0 %vm1182_vm3, %v4346_v17  ;;  %2818 = vmax.xlane.f32.xlu0 %v2817_v60  ;;  %v5301_v21 = vpop.f32.mrb[44].mxu1  ;;  %v1282_v39 = vsel %vm1182_vm3, %v4346_v17, 0.0 }
 0x3db   : > { %v5303_v30 = vpop.f32.mrb[45].mxu1  ;;  %v2826_v59 = vsel %vm1182_vm3, %v5301_v21, -inf }
 0x3dc   : > { %v2823_v34 = vsel %vm1182_vm3, %v5303_v30, -inf }
 0x3dd   : > { %2821 = vmax.xlane.f32.xlu1 %v2820_v9 }
 0x3de   : > { %2824 = vmax.xlane.f32.xlu0 %v2823_v34  ;;  %v5309_v40 = vpop.f32.mrb[46].mxu1 }
 0x3df   : > { %v5311_v24 = vpop.f32.mrb[47].mxu1  ;;  %v2832_v0 = vsel %vm1182_vm3, %v5309_v40, -inf }
 0x3e0   : > { %v4348_v47 = vpop.eup %4347  ;;  %v2829_v28 = vsel %vm1182_vm3, %v5311_v24, -inf }
 0x3e1   : > { %v4350_v19 = vpop.eup %4349  ;;  %3888 = vmatprep.mubr.msk.f32.mxu0 %vm1182_vm3, %v4348_v47  ;;  %2827 = vmax.xlane.f32.xlu1 %v2826_v59  ;;  %v1285_v34 = vsel %vm1182_vm3, %v4348_v47, 0.0  ;;  %v4283_v47 = vunpack.i.l.bf16 %v5172_v62 }
 0x3e2   : > { %3889 = vmatmul.mubr.msk.f32.gmra.mrb[26].mxu0 %vm1182_vm3, %v4350_v19  ;;  %2833 = vmax.xlane.f32.xlu0 %v2832_v0  ;;  %v1288_v58 = vsel %vm1182_vm3, %v4350_v19, 0.0 }
 0x3e6   : > { %2830 = vmax.xlane.f32.xlu0 %v2829_v28 }
 0x3f2   : > { %4286 = vrot.lane.b32.xlu1 %v4934_v48, %s4545_s24  ;;  %v1261_v48 = vsel %vm1182_vm3, %v5251_v33, 0.0 }
 0x3fc   : > { %4291 = vrot.lane.b32.xlu0 %v4943_v29, %s4545_s24  ;;  %v1276_v29 = vsel %vm1182_vm3, %v4342_v37, 0.0  ;;  %v1279_v37 = vsel %vm1182_vm3, %v4344_v12, 0.0 }
 0x416   : > { %1259 = vadd.xlane.f32.xlu1 %v1258_v50  ;;  %v4284_v50 = vunpack.i.h.bf16 %v5172_v62 }
 0x41a   : > { %1265 = vadd.xlane.f32.xlu1 %v1264_v2 }
 0x41b   : > { %1256 = vadd.xlane.f32.xlu0 %v1255_v11 }
 0x41e   : > { %1271 = vadd.xlane.f32.xlu1 %v1270_v32 }
 0x41f   : > { %1262 = vadd.xlane.f32.xlu0 %v1261_v48 }
 0x422   : > { %1277 = vadd.xlane.f32.xlu1 %v1276_v29 }
 0x423   : > { %1268 = vadd.xlane.f32.xlu0 %v1267_v4 }
 0x426   : > { %1283 = vadd.xlane.f32.xlu1 %v1282_v39 }
 0x427   : > { %1274 = vadd.xlane.f32.xlu0 %v1273_v10 }
 0x429   : > { %v1694_v23 = vpop.xlane.xlu0 %1693 }
 0x42a   : > { %v1726_v26 = vsub.f32 %v5124_v38, %v1694_v23  ;;  %v1691_v33 = vpop.xlane.xlu1 %1690  ;;  %1289 = vadd.xlane.f32.xlu1 %v1288_v58 }
 0x42b   : > { %v1725_v60 = vsub.f32 %v5126_v54, %v1691_v33  ;;  %1280 = vadd.xlane.f32.xlu0 %v1279_v37 }
 0x42c   : > { %v1739_v56 = vmul.f32 1.442695, %v1726_v26 }
 0x42d   : > { %v1737_v9 = vmul.f32 1.442695, %v1725_v60 }
 0x42e   : > { %4351 = vpow2.f32 %v1739_v56  ;;  %v1700_v17 = vpop.xlane.xlu1 %1699 }
 0x42f   : > { %4353 = vpow2.f32 %v1737_v9  ;;  %v1728_v5 = vsub.f32 %v5132_v6, %v1700_v17  ;;  %1286 = vadd.xlane.f32.xlu0 %v1285_v34 }
 0x431   : > { %v1743_v0 = vmul.f32 1.442695, %v1728_v5 }
 0x432   : > { %v1697_v19 = vpop.xlane.xlu1 %1696  ;;  %v1703_v38 = vpop.xlane.xlu0 %1702 }
 0x433   : > { %4355 = vpow2.f32 %v1743_v0  ;;  %v1727_v59 = vsub.f32 %v5134_v42, %v1697_v19  ;;  %v1729_v12 = vsub.f32 %v5140_v46, %v1703_v38 }
 0x435   : > { %v1741_v54 = vmul.f32 1.442695, %v1727_v59  ;;  %v1745_v28 = vmul.f32 1.442695, %v1729_v12 }
 0x436   : > { %v1706_v2 = vpop.xlane.xlu1 %1705  ;;  %v1709_v11 = vpop.xlane.xlu0 %1708 }
 0x437   : > { %4357 = vpow2.f32 %v1741_v54  ;;  %v1730_v6 = vsub.f32 %v5138_v43, %v1706_v2  ;;  %v1731_v32 = vsub.f32 %v5148_v52, %v1709_v11  ;;  %v4169_v52 = vpack.c.bf16 %v4284_v50, %v4283_v47 }
 0x438   : > { %v4352_v48 = vpop.eup %4351  ;;  %4359 = vpow2.f32 %v1745_v28 }
 0x439   : > { %v4354_v29 = vpop.eup %4353  ;;  %v1747_v4 = vmul.f32 1.442695, %v1730_v6  ;;  %v1749_v42 = vmul.f32 1.442695, %v1731_v32  ;;  %v1764_v46 = vsel %vm1182_vm3, %v4352_v48, 0.0 }
 0x43a   : > { %3925 = vmatprep.mubr.msk.f32.mxu0 %vm1182_vm3, %v4354_v29  ;;  %v1712_v39 = vpop.xlane.xlu1 %1711  ;;  %v1715_v10 = vpop.xlane.xlu0 %1714  ;;  %1765 = vadd.xlane.f32.xlu0 %v1764_v46  ;;  %v1761_v23 = vsel %vm1182_vm3, %v4354_v29, 0.0 }
 0x43b   : > { %4361 = vpow2.f32 %v1747_v4  ;;  %v1732_v62 = vsub.f32 %v5146_v51, %v1712_v39  ;;  %v1733_v43 = vsub.f32 %v5158_v36, %v1715_v10  ;;  %3926 = vmatmul.mubr.msk.f32.vlgmr.msra.gmra.mrb[28].mxu0 %vm1182_vm3, %v4352_v48  ;;  %1762 = vadd.xlane.f32.xlu1 %v1761_v23 }
 0x43c   : > { %4168 = vmatpush3.bf16.msra.mxu0 %v5247_v49  ;;  %4363 = vpow2.f32 %v1749_v42 }
 0x43d   : > { %v4356_v58 = vpop.eup %4355  ;;  %v1751_v26 = vmul.f32 1.442695, %v1732_v62  ;;  %v1753_v33 = vmul.f32 1.442695, %v1733_v43  ;;  %4170 = vmatprep.subr.bf16.mxu0 %v4169_v52 }
 0x43e   : > { %v1718_v37 = vpop.xlane.xlu1 %1717  ;;  %v1724_v60 = vpop.xlane.xlu0 %1723  ;;  %v1770_v56 = vsel %vm1182_vm3, %v4356_v58, 0.0 }
 0x43f   : > { %4365 = vpow2.f32 %v1751_v26  ;;  %v1734_v51 = vsub.f32 %v5156_v57, %v1718_v37  ;;  %v1736_v36 = vsub.f32 %v5164_v25, %v1724_v60  ;;  %1771 = vadd.xlane.f32.xlu1 %v1770_v56 }
 0x440   : > { %4172 = vmatpush3.bf16.msra.mxu0 %v4169_v52  ;;  %4367 = vpow2.f32 %v1753_v33 }
 0x441   : > { %v4358_v9 = vpop.eup %4357  ;;  %v1755_v17 = vmul.f32 1.442695, %v1734_v51  ;;  %v1759_v49 = vmul.f32 1.442695, %v1736_v36 }
 0x442   : > { %3928 = vmatprep.mubr.msk.f32.mxu0 %vm1182_vm3, %v4358_v9  ;;  %v2246_v34 = vpop.xlane.xlu1 %2245  ;;  %v1721_v5 = vpop.xlane.xlu0 %1720  ;;  %v1767_v0 = vsel %vm1182_vm3, %v4358_v9, 0.0 }
 0x443   : > { %v4360_v19 = vpop.eup %4359  ;;  %4369 = vpow2.f32 %v1755_v17  ;;  %v2280_v38 = vsub.f32 %v5178_v44, %v2246_v34  ;;  %v1735_v57 = vsub.f32 %v5168_v1, %v1721_v5  ;;  %3929 = vmatmul.mubr.msk.f32.gmra.mrb[30].mxu0 %vm1182_vm3, %v4356_v58  ;;  %1768 = vadd.xlane.f32.xlu0 %v1767_v0 }
 0x444   : > { %3931 = vmatprep.mubr.msk.f32.mxu0 %vm1182_vm3, %v4360_v19  ;;  %4371 = vpow2.f32 %v1759_v49  ;;  %v1773_v1 = vsel %vm1182_vm3, %v4360_v19, 0.0 }
 0x445   : > { %v4362_v25 = vpop.eup %4361  ;;  %v1757_v59 = vmul.f32 1.442695, %v1735_v57  ;;  %v2292_v12 = vmul.f32 1.442695, %v2280_v38 }
 0x446   : > { %v2255_v54 = vpop.xlane.xlu1 %2254  ;;  %v2249_v28 = vpop.xlane.xlu0 %2248  ;;  %v1776_v50 = vsel %vm1182_vm3, %v4362_v25, 0.0 }
 0x447   : > { %v4364_v2 = vpop.eup %4363  ;;  %v2281_v11 = vsub.f32 %v5176_v63, %v2249_v28  ;;  %3932 = vmatmul.mubr.msk.f32.gmra.mrb[32].mxu0 %vm1182_vm3, %v4362_v25  ;;  %1777 = vadd.xlane.f32.xlu1 %v1776_v50  ;;  %4373 = vpow2.f32 %v1757_v59  ;;  %v2283_v44 = vsub.f32 %v5186_v7, %v2255_v54 }
 0x448   : > { %1774 = vadd.xlane.f32.xlu0 %v1773_v1  ;;  %3934 = vmatprep.mubr.msk.f32.mxu0 %vm1182_vm3, %v4364_v2  ;;  %4375 = vpow2.f32 %v2292_v12  ;;  %v1779_v7 = vsel %vm1182_vm3, %v4364_v2, 0.0 }
 0x449   : > { %v4366_v47 = vpop.eup %4365  ;;  %v2294_v6 = vmul.f32 1.442695, %v2281_v11  ;;  %v2298_v46 = vmul.f32 1.442695, %v2283_v44 }
 0x44a   : > { %v2252_v32 = vpop.xlane.xlu1 %2251  ;;  %v2258_v48 = vpop.xlane.xlu0 %2257  ;;  %v1782_v29 = vsel %vm1182_vm3, %v4366_v47, 0.0 }
 0x44b   : > { %v4368_v4 = vpop.eup %4367  ;;  %v2282_v63 = vsub.f32 %v5188_v13, %v2252_v32  ;;  %v2284_v42 = vsub.f32 %v5197_v27, %v2258_v48  ;;  %3935 = vmatmul.mubr.msk.f32.gmra.mrb[34].mxu0 %vm1182_vm3, %v4366_v47  ;;  %1783 = vadd.xlane.f32.xlu1 %v1782_v29  ;;  %4377 = vpow2.f32 %v2294_v6 }
 0x44c   : > { %1780 = vadd.xlane.f32.xlu0 %v1779_v7  ;;  %3937 = vmatprep.mubr.msk.f32.mxu0 %vm1182_vm3, %v4368_v4  ;;  %v1785_v26 = vsel %vm1182_vm3, %v4368_v4, 0.0 }
 0x44d   : > { %v4370_v39 = vpop.eup %4369  ;;  %v2296_v10 = vmul.f32 1.442695, %v2282_v63  ;;  %v2300_v23 = vmul.f32 1.442695, %v2284_v42 }
 0x44e   : > { %v2261_v62 = vpop.xlane.xlu1 %2260  ;;  %v2264_v43 = vpop.xlane.xlu0 %2263  ;;  %v1788_v52 = vsel %vm1182_vm3, %v4370_v39, 0.0 }
 0x44f   : > { %v4372_v13 = vpop.eup %4371  ;;  %4379 = vpow2.f32 %v2296_v10  ;;  %v2285_v27 = vsub.f32 %v5195_v22, %v2261_v62  ;;  %v2286_v58 = vsub.f32 %v5207_v55, %v2264_v43  ;;  %3938 = vmatmul.mubr.msk.f32.gmra.mrb[36].mxu0 %vm1182_vm3, %v4370_v39  ;;  %1789 = vadd.xlane.f32.xlu1 %v1788_v52 }
 0x450   : > { %4381 = vpow2.f32 %v2298_v46  ;;  %1786 = vadd.xlane.f32.xlu0 %v1785_v26  ;;  %v1794_v51 = vsel %vm1182_vm3, %v4372_v13, 0.0 }
 0x451   : > { %4383 = vpow2.f32 %v2300_v23  ;;  %v2302_v33 = vmul.f32 1.442695, %v2285_v27  ;;  %v2304_v37 = vmul.f32 1.442695, %v2286_v58  ;;  %v4374_v60 = vpop.eup %4373 }
 0x452   : > { %v2267_v56 = vpop.xlane.xlu1 %2266  ;;  %3940 = vmatprep.mubr.msk.f32.mxu0 %vm1182_vm3, %v4374_v60  ;;  %v1791_v55 = vsel %vm1182_vm3, %v4374_v60, 0.0  ;;  %v4376_v9 = vpop.eup %4375 }
 0x453   : > { %4385 = vpow2.f32 %v2302_v33  ;;  %v2287_v36 = vsub.f32 %v5205_v15, %v2267_v56  ;;  %v2270_v22 = vpop.xlane.xlu0 %2269  ;;  %1795 = vadd.xlane.f32.xlu1 %v1794_v51  ;;  %3941 = vmatmul.mubr.msk.f32.gmra.mrb[38].mxu0 %vm1182_vm3, %v4372_v13  ;;  %v2316_v2 = vsel %vm1182_vm3, %v4376_v9, 0.0 }
 0x454   : > { %v2288_v17 = vsub.f32 %v5221_v3, %v2270_v22  ;;  %1792 = vadd.xlane.f32.xlu0 %v1791_v55  ;;  %4387 = vpow2.f32 %v2304_v37  ;;  %3977 = vmatprep.mubr.msk.f32.mxu0 %vm1182_vm3, %v4376_v9 }
 0x455   : > { %v2306_v49 = vmul.f32 1.442695, %v2287_v36  ;;  %v4378_v34 = vpop.eup %4377 }
 0x456   : > { %v2308_v5 = vmul.f32 1.442695, %v2288_v17  ;;  %v2273_v0 = vpop.xlane.xlu1 %2272  ;;  %v2319_v38 = vsel %vm1182_vm3, %v4378_v34, 0.0 }
 0x457   : > { %4389 = vpow2.f32 %v2306_v49  ;;  %v2289_v15 = vsub.f32 %v5217_v61, %v2273_v0  ;;  %v2279_v19 = vpop.xlane.xlu0 %2278  ;;  %3978 = vmatmul.mubr.msk.f32.vlgmr.msra.gmra.mrb[40].mxu0 %vm1182_vm3, %v4378_v34  ;;  %2320 = vadd.xlane.f32.xlu1 %v2319_v38 }
 0x458   : > { %4391 = vpow2.f32 %v2308_v5  ;;  %v2291_v25 = vsub.f32 %v5238_v35, %v2279_v19 }
 0x459   : > { %v4380_v3 = vpop.eup %4379  ;;  %v2310_v57 = vmul.f32 1.442695, %v2289_v15 }
 0x45a   : > { %v4382_v59 = vpop.eup %4381  ;;  %v2801_v12 = vpop.xlane.xlu1 %2800  ;;  %3980 = vmatprep.mubr.msk.f32.mxu0 %vm1182_vm3, %v4380_v3  ;;  %v2322_v54 = vsel %vm1182_vm3, %v4380_v3, 0.0  ;;  %v2314_v1 = vmul.f32 1.442695, %v2291_v25 }
 0x45b   : > { %v4384_v28 = vpop.eup %4383  ;;  %4393 = vpow2.f32 %v2310_v57  ;;  %v2835_v61 = vsub.f32 %v5254_v20, %v2801_v12  ;;  %v2276_v50 = vpop.xlane.xlu0 %2275  ;;  %2323 = vadd.xlane.f32.xlu0 %v2322_v54  ;;  %3981 = vmatmul.mubr.msk.f32.gmra.mrb[42].mxu0 %vm1182_vm3, %v4382_v59  ;;  %v2325_v29 = vsel %vm1182_vm3, %v4382_v59, 0.0 }
 0x45c   : > { %v2290_v11 = vsub.f32 %v5240_v45, %v2276_v50  ;;  %2317 = vadd.xlane.f32.xlu1 %v2316_v2  ;;  %3983 = vmatprep.mubr.msk.f32.mxu0 %vm1182_vm3, %v4384_v28  ;;  %v2328_v32 = vsel %vm1182_vm3, %v4384_v28, 0.0 }
 0x45d   : > { %v4386_v35 = vpop.eup %4385  ;;  %v2847_v44 = vmul.f32 1.442695, %v2835_v61 }
 0x45e   : > { %v2312_v47 = vmul.f32 1.442695, %v2290_v11  ;;  %v2810_v6 = vpop.xlane.xlu1 %2809  ;;  %v4388_v48 = vpop.eup %4387 }
 0x45f   : > { %v2804_v20 = vpop.xlane.xlu0 %2803  ;;  %2329 = vadd.xlane.f32.xlu0 %v2328_v32  ;;  %3984 = vmatmul.mubr.msk.f32.gmra.mrb[44].mxu0 %vm1182_vm3, %v4386_v35  ;;  %v2838_v63 = vsub.f32 %v5267_v53, %v2810_v6  ;;  %v2334_v46 = vsel %vm1182_vm3, %v4388_v48, 0.0 }
 0x460   : > { %4395 = vpow2.f32 %v2312_v47  ;;  %v2836_v45 = vsub.f32 %v5249_v31, %v2804_v20  ;;  %2326 = vadd.xlane.f32.xlu1 %v2325_v29  ;;  %3986 = vmatprep.mubr.msk.f32.mxu0 %vm1182_vm3, %v4388_v48  ;;  %v2331_v31 = vsel %vm1182_vm3, %v4386_v35, 0.0 }
 0x461   : > { %v4390_v4 = vpop.eup %4389  ;;  %4397 = vpow2.f32 %v2314_v1  ;;  %v2853_v53 = vmul.f32 1.442695, %v2838_v63 }
 0x462   : > { %4399 = vpow2.f32 %v2847_v44  ;;  %v2849_v42 = vmul.f32 1.442695, %v2836_v45  ;;  %v2807_v7 = vpop.xlane.xlu1 %2806  ;;  %v4392_v39 = vpop.eup %4391  ;;  %v2337_v33 = vsel %vm1182_vm3, %v4390_v4, 0.0 }
 0x463   : > { %v2837_v10 = vsub.f32 %v5271_v18, %v2807_v7  ;;  %v2813_v23 = vpop.xlane.xlu0 %2812  ;;  %2335 = vadd.xlane.f32.xlu0 %v2334_v46  ;;  %3987 = vmatmul.mubr.msk.f32.gmra.mrb[46].mxu0 %vm1182_vm3, %v4390_v4  ;;  %v2340_v27 = vsel %vm1182_vm3, %v4392_v39, 0.0 }
 0x464   : > { %v2839_v62 = vsub.f32 %v5283_v16, %v2813_v23  ;;  %2332 = vadd.xlane.f32.xlu1 %v2331_v31  ;;  %3989 = vmatprep.mubr.msk.f32.mxu0 %vm1182_vm3, %v4392_v39  ;;  %4401 = vpow2.f32 %v2849_v42 }
 0x465   : > { %v4394_v43 = vpop.eup %4393  ;;  %v2851_v52 = vmul.f32 1.442695, %v2837_v10 }
 0x466   : > { %v2816_v13 = vpop.xlane.xlu1 %2815  ;;  %v2855_v18 = vmul.f32 1.442695, %v2839_v62  ;;  %v2343_v51 = vsel %vm1182_vm3, %v4394_v43, 0.0 }
 0x467   : > { %4403 = vpow2.f32 %v2851_v52  ;;  %v2840_v58 = vsub.f32 %v5281_v41, %v2816_v13  ;;  %v2819_v26 = vpop.xlane.xlu0 %2818  ;;  %2341 = vadd.xlane.f32.xlu0 %v2340_v27  ;;  %3990 = vmatmul.mubr.msk.f32.gmra.mrb[48].mxu0 %vm1182_vm3, %v4394_v43 }
 0x468   : > { %v2841_v16 = vsub.f32 %v5293_v14, %v2819_v26  ;;  %2338 = vadd.xlane.f32.xlu1 %v2337_v33  ;;  %4405 = vpow2.f32 %v2853_v53 }
 0x469   : > { %v2857_v60 = vmul.f32 1.442695, %v2840_v58  ;;  %4407 = vpow2.f32 %v2855_v18 }
 0x46a   : > { %v4396_v37 = vpop.eup %4395  ;;  %v2822_v56 = vpop.xlane.xlu1 %2821  ;;  %v2859_v22 = vmul.f32 1.442695, %v2841_v16 }
 0x46b   : > { %v4398_v36 = vpop.eup %4397  ;;  %v2842_v41 = vsub.f32 %v5291_v8, %v2822_v56  ;;  %3992 = vmatprep.mubr.msk.f32.mxu0 %vm1182_vm3, %v4396_v37  ;;  %v2825_v55 = vpop.xlane.xlu0 %2824  ;;  %v2346_v9 = vsel %vm1182_vm3, %v4396_v37, 0.0  ;;  %4409 = vpow2.f32 %v2857_v60 }
 0x46c   : > { %v4400_v14 = vpop.eup %4399  ;;  %v2843_v17 = vsub.f32 %v5303_v30, %v2825_v55  ;;  %2344 = vadd.xlane.f32.xlu1 %v2343_v51  ;;  %3993 = vmatmul.mubr.msk.f32.gmra.mrb[50].mxu0 %vm1182_vm3, %v4398_v36  ;;  %4411 = vpow2.f32 %v2859_v22  ;;  %v2349_v15 = vsel %vm1182_vm3, %v4398_v36, 0.0 }
 0x46d   : > { %2347 = vadd.xlane.f32.xlu0 %v2346_v9  ;;  %4029 = vmatprep.mubr.msk.f32.mxu0 %vm1182_vm3, %v4400_v14  ;;  %v2861_v49 = vmul.f32 1.442695, %v2842_v41  ;;  %v2871_v30 = vsel %vm1182_vm3, %v4400_v14, 0.0 }
 0x46e   : > { %v2828_v34 = vpop.xlane.xlu1 %2827  ;;  %v2863_v5 = vmul.f32 1.442695, %v2843_v17  ;;  %v4402_v19 = vpop.eup %4401 }
 0x46f   : > { %v2844_v8 = vsub.f32 %v5301_v21, %v2828_v34  ;;  %v2834_v0 = vpop.xlane.xlu0 %2833  ;;  %4413 = vpow2.f32 %v2861_v49  ;;  %v2874_v28 = vsel %vm1182_vm3, %v4402_v19, 0.0 }
 0x470   : > { %2350 = vadd.xlane.f32.xlu1 %v2349_v15  ;;  %v2846_v57 = vsub.f32 %v5309_v40, %v2834_v0  ;;  %4415 = vpow2.f32 %v2863_v5 }
 0x471   : > { %v4404_v38 = vpop.eup %4403  ;;  %2872 = vadd.xlane.f32.xlu0 %v2871_v30  ;;  %v2865_v3 = vmul.f32 1.442695, %v2844_v8 }
 0x472   : > { %v4287_v25 = vpop.permute.xlu1 %4286  ;;  %v2877_v59 = vsel %vm1182_vm3, %v4404_v38, 0.0  ;;  %v4406_v61 = vpop.eup %4405  ;;  %v2869_v35 = vmul.f32 1.442695, %v2846_v57 }
 0x473   : > { %v4289_v12 = vunpack.i.h.bf16 %v4287_v25  ;;  %v4288_v54 = vunpack.i.l.bf16 %v4287_v25  ;;  %v2831_v21 = vpop.xlane.xlu0 %2830  ;;  %v4408_v2 = vpop.eup %4407  ;;  %4417 = vpow2.f32 %v2865_v3  ;;  %v2880_v44 = vsel %vm1182_vm3, %v4406_v61, 0.0 }
 0x474   : > { %v2845_v50 = vsub.f32 %v5311_v24, %v2831_v21  ;;  %2875 = vadd.xlane.f32.xlu1 %v2874_v28  ;;  %v2883_v48 = vsel %vm1182_vm3, %v4408_v2, 0.0 }
 0x475   : > { %v4185_v11 = vpack.c.bf16 %v4289_v12, %v4288_v54  ;;  %2878 = vadd.xlane.f32.xlu0 %v2877_v59  ;;  %v4410_v47 = vpop.eup %4409 }
 0x476   : > { %v2867_v1 = vmul.f32 1.442695, %v2845_v50  ;;  %v4412_v24 = vpop.eup %4411  ;;  %v2886_v29 = vsel %vm1182_vm3, %v4410_v47, 0.0 }
 0x477   : > { %v4292_v40 = vpop.permute.xlu0 %4291  ;;  %4186 = vmatprep.subr.bf16.mxu0 %v4185_v11  ;;  %v2889_v4 = vsel %vm1182_vm3, %v4412_v24, 0.0 }
 0x478   : > { %4419 = vpow2.f32 %v2867_v1  ;;  %v4294_v6 = vunpack.i.h.bf16 %v4292_v40  ;;  %v4293_v32 = vunpack.i.l.bf16 %v4292_v40  ;;  %2881 = vadd.xlane.f32.xlu1 %v2880_v44  ;;  %4188 = vmatpush3.bf16.msra.mxu0 %v4185_v11 }
 0x479   : > { %2884 = vadd.xlane.f32.xlu0 %v2883_v48  ;;  %4421 = vpow2.f32 %v2869_v35  ;;  %v4414_v45 = vpop.eup %4413 }
 0x47a   : > { %v4189_v20 = vpack.c.bf16 %v4294_v6, %v4293_v32  ;;  %v4416_v63 = vpop.eup %4415  ;;  %v2892_v42 = vsel %vm1182_vm3, %v4414_v45, 0.0 }
 0x47b   : > { %v2895_v46 = vsel %vm1182_vm3, %v4416_v63, 0.0 }
 0x47c   : > { %2887 = vadd.xlane.f32.xlu1 %v2886_v29  ;;  %4190 = vmatprep.subr.bf16.mxu0 %v4189_v20 }
 0x47d   : > { %2890 = vadd.xlane.f32.xlu0 %v2889_v4  ;;  %4192 = vmatpush3.bf16.msra.mxu0 %v4189_v20  ;;  %v4418_v7 = vpop.eup %4417 }
 0x47e   : > { %v2898_v10 = vsel %vm1182_vm3, %v4418_v7, 0.0 }
 0x480   : > { %2893 = vadd.xlane.f32.xlu1 %v2892_v42  ;;  %4030 = vmatmul.mubr.msk.f32.vlgmr.msra.gmra.mrb[52].mxu0 %vm1182_vm3, %v4402_v19 }
 0x481   : > { %2896 = vadd.xlane.f32.xlu0 %v2895_v46  ;;  %4032 = vmatprep.mubr.msk.f32.mxu0 %vm1182_vm3, %v4404_v38 }
 0x482   : > { %v4420_v39 = vpop.eup %4419 }
 0x483   : > { %v2901_v23 = vsel %vm1182_vm3, %v4420_v39, 0.0  ;;  %v4422_v31 = vpop.eup %4421 }
 0x484   : > { %2899 = vadd.xlane.f32.xlu1 %v2898_v10  ;;  %4033 = vmatmul.mubr.msk.f32.gmra.mrb[54].mxu0 %vm1182_vm3, %v4406_v61  ;;  %v2904_v62 = vsel %vm1182_vm3, %v4422_v31, 0.0 }
 0x485   : > { %2902 = vadd.xlane.f32.xlu0 %v2901_v23  ;;  %4035 = vmatprep.mubr.msk.f32.mxu0 %vm1182_vm3, %v4408_v2 }
 0x488   : > { %2905 = vadd.xlane.f32.xlu1 %v2904_v62  ;;  %4036 = vmatmul.mubr.msk.f32.gmra.mrb[56].mxu0 %vm1182_vm3, %v4410_v47 }
 0x489   : > { %4038 = vmatprep.mubr.msk.f32.mxu0 %vm1182_vm3, %v4412_v24 }
 0x48c   : > { %4039 = vmatmul.mubr.msk.f32.gmra.mrb[58].mxu0 %vm1182_vm3, %v4414_v45 }
 0x48d   : > { %4041 = vmatprep.mubr.msk.f32.mxu0 %vm1182_vm3, %v4416_v63 }
 0x490   : > { %4042 = vmatmul.mubr.msk.f32.gmra.mrb[60].mxu0 %vm1182_vm3, %v4418_v7 }
 0x491   : > { %4044 = vmatprep.mubr.msk.f32.mxu0 %vm1182_vm3, %v4420_v39 }
 0x494   : > { %4045 = vmatmul.mubr.msk.f32.gmra.mrb[62].mxu0 %vm1182_vm3, %v4422_v31 }
 0x498   : > { %v3875_v43 = vpop.f32.mrb[16].mxu0 }
 0x499   : > { %v1405_v52 = vpop.f32.mrb[17].mxu0 }
 0x4a0   : > { %v3878_v53 = vpop.f32.mrb[18].mxu0 }
 0x4a1   : > { %v1415_v13 = vpop.f32.mrb[19].mxu0 }
 0x4a3   : > { %v1260_v27 = vpop.xlane.xlu1 %1259 }
 0x4a4   : > { %v3881_v18 = vpop.f32.mrb[20].mxu0  ;;  %4423 = vrcp.f32 %v1260_v27 }
 0x4a5   : > { %v1425_v58 = vpop.f32.mrb[21].mxu0 }
 0x4a7   : > { %v1266_v26 = vpop.xlane.xlu1 %1265 }
 0x4a8   : > { %4425 = vrcp.f32 %v1266_v26  ;;  %v1257_v16 = vpop.xlane.xlu0 %1256 }
 0x4a9   : > { %v3884_v33 = vpop.f32.mrb[22].mxu0  ;;  %4427 = vrcp.f32 %v1257_v16 }
 0x4aa   : > { %v1435_v37 = vpop.f32.mrb[23].mxu0 }
 0x4ab   : > { %v1272_v60 = vpop.xlane.xlu1 %1271 }
 0x4ac   : > { %4429 = vrcp.f32 %v1272_v60  ;;  %v1263_v51 = vpop.xlane.xlu0 %1262 }
 0x4ad   : > { %v3887_v56 = vpop.f32.mrb[24].mxu0  ;;  %4431 = vrcp.f32 %v1263_v51 }
 0x4ae   : > { %v1445_v36 = vpop.f32.mrb[25].mxu0  ;;  %v4424_v22 = vpop.eup %4423 }
 0x4af   : > { %v1278_v41 = vpop.xlane.xlu1 %1277  ;;  %v1477_v55 = vmul.f32 %v4424_v22, %v3875_v43 }
 0x4b0   : > { %4433 = vrcp.f32 %v1278_v41  ;;  %v1269_v9 = vpop.xlane.xlu0 %1268 }
 0x4b1   : > { %4435 = vrcp.f32 %v1269_v9  ;;  %1489 = vst.msk [vmem:[#allocation2 + $0x8] sm:$0xff] %vm1008_vm1, %v1477_v55 }
 0x4b2   : > { %v4426_v14 = vpop.eup %4425 }
 0x4b3   : > { %v4428_v17 = vpop.eup %4427  ;;  %v1284_v49 = vpop.xlane.xlu1 %1283  ;;  %v1479_v34 = vmul.f32 %v4426_v14, %v3878_v53 }
 0x4b4   : > { %4437 = vrcp.f32 %v1284_v49  ;;  %v1275_v8 = vpop.xlane.xlu0 %1274  ;;  %v1476_v0 = vmul.f32 %v4428_v17, %v1405_v52 }
 0x4b5   : > { %v3890_v5 = vpop.f32.mrb[26].mxu0  ;;  %4439 = vrcp.f32 %v1275_v8  ;;  %1491 = vst.msk [vmem:[#allocation2 + $0x18] sm:$0xff] %vm1008_vm1, %v1479_v34 }
 0x4b6   : > { %v1455_v15 = vpop.f32.mrb[27].mxu0  ;;  %v4430_v19 = vpop.eup %4429  ;;  %1488 = vst.msk [vmem:[#allocation2] sm:$0xff] %vm1008_vm1, %v1476_v0 }
 0x4b7   : > { %v4432_v30 = vpop.eup %4431  ;;  %v1290_v38 = vpop.xlane.xlu1 %1289  ;;  %v1481_v3 = vmul.f32 %v4430_v19, %v3881_v18 }
 0x4b8   : > { %4441 = vrcp.f32 %v1290_v38  ;;  %v1281_v57 = vpop.xlane.xlu0 %1280  ;;  %v1478_v25 = vmul.f32 %v4432_v30, %v1415_v13 }
 0x4b9   : > { %4443 = vrcp.f32 %v1281_v57  ;;  %1493 = vst.msk [vmem:[#allocation2 + $0x28] sm:$0xff] %vm1008_vm1, %v1481_v3 }
 0x4ba   : > { %v4434_v59 = vpop.eup %4433  ;;  %1490 = vst.msk [vmem:[#allocation2 + $0x10] sm:$0xff] %vm1008_vm1, %v1478_v25 }
 0x4bb   : > { %v4436_v12 = vpop.eup %4435  ;;  %v1483_v54 = vmul.f32 %v4434_v59, %v3884_v33 }
 0x4bc   : > { %v1287_v21 = vpop.xlane.xlu0 %1286  ;;  %v1480_v28 = vmul.f32 %v4436_v12, %v1425_v58 }
 0x4bd   : > { %4445 = vrcp.f32 %v1287_v21  ;;  %1495 = vst.msk [vmem:[#allocation2 + $0x38] sm:$0xff] %vm1008_vm1, %v1483_v54 }
 0x4be   : > { %v4438_v61 = vpop.eup %4437  ;;  %1492 = vst.msk [vmem:[#allocation2 + $0x20] sm:$0xff] %vm1008_vm1, %v1480_v28 }
 0x4bf   : > { %v4440_v50 = vpop.eup %4439  ;;  %v1485_v2 = vmul.f32 %v4438_v61, %v3887_v56 }
 0x4c0   : > { %v1482_v11 = vmul.f32 %v4440_v50, %v1435_v37 }
 0x4c1   : > { %1497 = vst.msk [vmem:[#allocation2 + $0x48] sm:$0xff] %vm1008_vm1, %v1485_v2 }
 0x4c2   : > { %v4442_v35 = vpop.eup %4441  ;;  %1494 = vst.msk [vmem:[#allocation2 + $0x30] sm:$0xff] %vm1008_vm1, %v1482_v11 }
 0x4c3   : > { %v4444_v1 = vpop.eup %4443  ;;  %v1487_v40 = vmul.f32 %v4442_v35, %v3890_v5 }
 0x4c4   : > { %v1484_v44 = vmul.f32 %v4444_v1, %v1445_v36 }
 0x4c5   : > { %1499 = vst.msk [vmem:[#allocation2 + $0x58] sm:$0xff] %vm1008_vm1, %v1487_v40 }
 0x4c6   : > { %1496 = vst.msk [vmem:[#allocation2 + $0x40] sm:$0xff] %vm1008_vm1, %v1484_v44 }
 0x4c7   : > { %v4446_v47 = vpop.eup %4445  ;;  %v1766_v20 = vpop.xlane.xlu0 %1765 }
 0x4c8   : > { %v1486_v6 = vmul.f32 %v4446_v47, %v1455_v15  ;;  %v1763_v32 = vpop.xlane.xlu1 %1762  ;;  %4447 = vrcp.f32 %v1766_v20 }
 0x4c9   : > { %4449 = vrcp.f32 %v1763_v32 }
 0x4ca   : > { %1498 = vst.msk [vmem:[#allocation2 + $0x50] sm:$0xff] %vm1008_vm1, %v1486_v6 }
 0x4cc   : > { %v1772_v48 = vpop.xlane.xlu1 %1771 }
 0x4cd   : > { %4451 = vrcp.f32 %v1772_v48 }
 0x4d0   : > { %v1769_v29 = vpop.xlane.xlu0 %1768 }
 0x4d1   : > { %4453 = vrcp.f32 %v1769_v29 }
 0x4d2   : > { %v4448_v46 = vpop.eup %4447 }
 0x4d3   : > { %v4450_v10 = vpop.eup %4449 }
 0x4d4   : > { %v1778_v24 = vpop.xlane.xlu1 %1777 }
 0x4d5   : > { %v1775_v4 = vpop.xlane.xlu0 %1774  ;;  %4455 = vrcp.f32 %v1778_v24 }
 0x4d6   : > { %4457 = vrcp.f32 %v1775_v4 }
 0x4d7   : > { %v4452_v53 = vpop.eup %4451 }
 0x4d8   : > { %v1784_v45 = vpop.xlane.xlu1 %1783 }
 0x4d9   : > { %v1781_v42 = vpop.xlane.xlu0 %1780  ;;  %4459 = vrcp.f32 %v1784_v45 }
 0x4da   : > { %4461 = vrcp.f32 %v1781_v42 }
 0x4db   : > { %v4454_v27 = vpop.eup %4453 }
 0x4dc   : > { %v1790_v63 = vpop.xlane.xlu1 %1789 }
 0x4dd   : > { %v1787_v43 = vpop.xlane.xlu0 %1786  ;;  %4463 = vrcp.f32 %v1790_v63 }
 0x4de   : > { %4465 = vrcp.f32 %v1787_v43 }
 0x4df   : > { %v4456_v37 = vpop.eup %4455 }
 0x4e0   : > { %v1796_v7 = vpop.xlane.xlu1 %1795  ;;  %v4458_v56 = vpop.eup %4457 }
 0x4e1   : > { %v1793_v18 = vpop.xlane.xlu0 %1792  ;;  %4467 = vrcp.f32 %v1796_v7 }
 0x4e2   : > { %4469 = vrcp.f32 %v1793_v18 }
 0x4e3   : > { %v4460_v55 = vpop.eup %4459 }
 0x4e4   : > { %v2321_v52 = vpop.xlane.xlu1 %2320  ;;  %v4462_v17 = vpop.eup %4461 }
 0x4e5   : > { %4471 = vrcp.f32 %v2321_v52 }
 0x4e7   : > { %v4464_v0 = vpop.eup %4463 }
 0x4e8   : > { %v2324_v51 = vpop.xlane.xlu0 %2323  ;;  %v4466_v19 = vpop.eup %4465 }
 0x4e9   : > { %v2318_v33 = vpop.xlane.xlu1 %2317 }
 0x4ea   : > { %4473 = vrcp.f32 %v2318_v33 }
 0x4eb   : > { %4475 = vrcp.f32 %v2324_v51  ;;  %v4468_v25 = vpop.eup %4467 }
 0x4ec   : > { %v2330_v8 = vpop.xlane.xlu0 %2329  ;;  %v4470_v54 = vpop.eup %4469 }
 0x4ed   : > { %v2327_v9 = vpop.xlane.xlu1 %2326 }
 0x4ee   : > { %4477 = vrcp.f32 %v2327_v9 }
 0x4ef   : > { %4479 = vrcp.f32 %v2330_v8  ;;  %v4472_v2 = vpop.eup %4471 }
 0x4f0   : > { %v2336_v59 = vpop.xlane.xlu0 %2335 }
 0x4f1   : > { %v2333_v3 = vpop.xlane.xlu1 %2332 }
 0x4f2   : > { %4481 = vrcp.f32 %v2333_v3 }
 0x4f3   : > { %4483 = vrcp.f32 %v2336_v59 }
 0x4f4   : > { %v2342_v40 = vpop.xlane.xlu0 %2341  ;;  %v4474_v44 = vpop.eup %4473 }
 0x4f5   : > { %v2339_v50 = vpop.xlane.xlu1 %2338  ;;  %v4476_v6 = vpop.eup %4475 }
 0x4f6   : > { %4485 = vrcp.f32 %v2339_v50 }
 0x4f7   : > { %4487 = vrcp.f32 %v2342_v40 }
 0x4f8   : > { %v4478_v29 = vpop.eup %4477 }
 0x4f9   : > { %v2345_v32 = vpop.xlane.xlu1 %2344  ;;  %v4480_v63 = vpop.eup %4479 }
 0x4fa   : > { %v2348_v45 = vpop.xlane.xlu0 %2347  ;;  %4489 = vrcp.f32 %v2345_v32 }
 0x4fb   : > { %4491 = vrcp.f32 %v2348_v45 }
 0x50e   : > { %v3927_v39 = vpop.f32.mrb[28].mxu0 }
 0x50f   : > { %v1983_v23 = vmul.f32 %v4448_v46, %v3927_v39  ;;  %v1911_v31 = vpop.f32.mrb[29].mxu0  ;;  %v2351_v39 = vpop.xlane.xlu1 %2350 }
 0x510   : > { %v1982_v62 = vmul.f32 %v4450_v10, %v1911_v31  ;;  %v4482_v10 = vpop.eup %4481  ;;  %4493 = vrcp.f32 %v2351_v39 }
 0x511   : > { %2008 = vrot.lane.b32.xlu1 %v1983_v23, %s4545_s24  ;;  %v4484_v31 = vpop.eup %4483 }
 0x512   : > { %2006 = vrot.lane.b32.xlu0 %v1982_v62, %s4545_s24 }
 0x516   : > { %v3930_v13 = vpop.f32.mrb[30].mxu0 }
 0x517   : > { %v1985_v58 = vmul.f32 %v4452_v53, %v3930_v13  ;;  %v1921_v26 = vpop.f32.mrb[31].mxu0  ;;  %v3177_v53 = vld [vmem:[%s5632_s10] sm:$0xff]  ;;  %v3178_v13 = vld [vmem:[%s5632_s10 + $0x8] sm:$0xff] }
 0x518   : > { %v1984_v16 = vmul.f32 %v4454_v27, %v1921_v26  ;;  %v3179_v27 = vld [vmem:[%s5632_s10 + $0x10] sm:$0xff]  ;;  %v4193_v18 = vpack.c.bf16 %v3178_v13, %v3177_v53  ;;  %v4486_v26 = vpop.eup %4485 }
 0x519   : > { %2012 = vrot.lane.b32.xlu1 %v1985_v58, %s4545_s24  ;;  %v3180_v58 = vld [vmem:[%s5632_s10 + $0x18] sm:$0xff] }
 0x51a   : > { %v3933_v60 = vpop.f32.mrb[32].mxu0  ;;  %2010 = vrot.lane.b32.xlu0 %v1984_v16, %s4545_s24  ;;  %v4197_v16 = vpack.c.bf16 %v3180_v58, %v3179_v27  ;;  %4194 = vmatprep.subr.bf16.mxu1 %v4193_v18 }
 0x51b   : > { %v1987_v36 = vmul.f32 %v4456_v37, %v3933_v60  ;;  %v1931_v22 = vpop.f32.mrb[33].mxu0  ;;  %v4488_v37 = vpop.eup %4487  ;;  %4196 = vmatpush3.bf16.msra.mxu1 %v4193_v18 }
 0x51c   : > { %v1986_v41 = vmul.f32 %v4458_v56, %v1931_v22  ;;  %v2876_v60 = vpop.xlane.xlu1 %2875  ;;  %4198 = vmatprep.subr.bf16.mxu1 %v4197_v16 }
 0x51d   : > { %2016 = vrot.lane.b32.xlu1 %v1987_v36, %s4545_s24  ;;  %v2873_v36 = vpop.xlane.xlu0 %2872  ;;  %4495 = vrcp.f32 %v2876_v60 }
 0x51e   : > { %v3936_v14 = vpop.f32.mrb[34].mxu0  ;;  %2014 = vrot.lane.b32.xlu0 %v1986_v41, %s4545_s24  ;;  %v4490_v41 = vpop.eup %4489  ;;  %4497 = vrcp.f32 %v2873_v36 }
 0x51f   : > { %v1989_v49 = vmul.f32 %v4460_v55, %v3936_v14  ;;  %v1941_v34 = vpop.f32.mrb[35].mxu0  ;;  %v4492_v9 = vpop.eup %4491  ;;  %4200 = vmatpush3.bf16.msra.mxu1 %v4197_v16 }
 0x520   : > { %v1988_v5 = vmul.f32 %v4462_v17, %v1941_v34  ;;  %v2882_v34 = vpop.xlane.xlu1 %2881 }
 0x521   : > { %2020 = vrot.lane.b32.xlu1 %v1989_v49, %s4545_s24  ;;  %v2879_v8 = vpop.xlane.xlu0 %2878  ;;  %4499 = vrcp.f32 %v2882_v34 }
 0x522   : > { %v3939_v15 = vpop.f32.mrb[36].mxu0  ;;  %2018 = vrot.lane.b32.xlu0 %v1988_v5, %s4545_s24  ;;  %v4494_v5 = vpop.eup %4493  ;;  %4501 = vrcp.f32 %v2879_v8 }
 0x523   : > { %v1991_v30 = vmul.f32 %v4464_v0, %v3939_v15  ;;  %v1951_v38 = vpop.f32.mrb[37].mxu0 }
 0x524   : > { %v1990_v57 = vmul.f32 %v4466_v19, %v1951_v38  ;;  %v2888_v15 = vpop.xlane.xlu1 %2887  ;;  %v3182_v38 = vld [vmem:[%s5632_s10 + $0x28] sm:$0xff] }
 0x525   : > { %2024 = vrot.lane.b32.xlu1 %v1991_v30, %s4545_s24  ;;  %v2885_v19 = vpop.xlane.xlu0 %2884  ;;  %v3181_v30 = vld [vmem:[%s5632_s10 + $0x20] sm:$0xff]  ;;  %4503 = vrcp.f32 %v2888_v15 }
 0x526   : > { %2022 = vrot.lane.b32.xlu0 %v1990_v57, %s4545_s24  ;;  %v3942_v12 = vpop.f32.mrb[38].mxu0  ;;  %v4201_v3 = vpack.c.bf16 %v3182_v38, %v3181_v30  ;;  %v3183_v57 = vld [vmem:[%s5632_s10 + $0x30] sm:$0xff]  ;;  %4505 = vrcp.f32 %v2885_v19 }
 0x527   : > { %v1993_v21 = vmul.f32 %v4468_v25, %v3942_v12  ;;  %v1961_v28 = vpop.f32.mrb[39].mxu0  ;;  %v3184_v25 = vld [vmem:[%s5632_s10 + $0x38] sm:$0xff] }
 0x528   : > { %v1992_v61 = vmul.f32 %v4470_v54, %v1961_v28  ;;  %4202 = vmatprep.subr.bf16.mxu1 %v4201_v3  ;;  %v2894_v59 = vpop.xlane.xlu1 %2893  ;;  %v4205_v12 = vpack.c.bf16 %v3184_v25, %v3183_v57 }
 0x529   : > { %2028 = vrot.lane.b32.xlu1 %v1993_v21, %s4545_s24  ;;  %4204 = vmatpush3.bf16.msra.mxu1 %v4201_v3  ;;  %v2891_v54 = vpop.xlane.xlu0 %2890  ;;  %v4496_v21 = vpop.eup %4495  ;;  %4507 = vrcp.f32 %v2894_v59 }
 0x52a   : > { %v3979_v11 = vpop.f32.mrb[40].mxu0  ;;  %2026 = vrot.lane.b32.xlu0 %v1992_v61, %s4545_s24  ;;  %4206 = vmatprep.subr.bf16.mxu1 %v4205_v12  ;;  %v4498_v61 = vpop.eup %4497  ;;  %4509 = vrcp.f32 %v2891_v54 }
 0x52b   : > { %v2538_v35 = vmul.f32 %v4472_v2, %v3979_v11  ;;  %v2466_v1 = vpop.f32.mrb[41].mxu0  ;;  %v4500_v40 = vpop.eup %4499 }
 0x52c   : > { %v2537_v48 = vmul.f32 %v4474_v44, %v2466_v1  ;;  %v2900_v50 = vpop.xlane.xlu1 %2899 }
 0x52d   : > { %2563 = vrot.lane.b32.xlu1 %v2538_v35, %s4544_s20  ;;  %4208 = vmatpush3.bf16.msra.mxu1 %v4205_v12  ;;  %v2897_v35 = vpop.xlane.xlu0 %2896  ;;  %4511 = vrcp.f32 %v2900_v50 }
 0x52e   : > { %v3982_v47 = vpop.f32.mrb[42].mxu0  ;;  %4513 = vrcp.f32 %v2897_v35 }
 0x52f   : > { %v2476_v24 = vpop.f32.mrb[43].mxu0  ;;  %v2540_v42 = vmul.f32 %v4478_v29, %v3982_v47  ;;  %v4502_v47 = vpop.eup %4501 }
 0x530   : > { %v2539_v20 = vmul.f32 %v4476_v6, %v2476_v24  ;;  %v2906_v24 = vpop.xlane.xlu1 %2905 }
 0x531   : > { %2561 = vrot.lane.b32.xlu1 %v2537_v48, %s4544_s20  ;;  %v2903_v29 = vpop.xlane.xlu0 %2902  ;;  %4515 = vrcp.f32 %v2906_v24 }
 0x532   : > { %v3985_v4 = vpop.f32.mrb[44].mxu0  ;;  %2565 = vrot.lane.b32.xlu0 %v2539_v20, %s4544_s20  ;;  %v4504_v20 = vpop.eup %4503  ;;  %4517 = vrcp.f32 %v2903_v29 }
 0x533   : > { %v2486_v7 = vpop.f32.mrb[45].mxu0  ;;  %v2542_v62 = vmul.f32 %v4482_v10, %v3985_v4  ;;  %v4506_v4 = vpop.eup %4505 }
 0x534   : > { %v2541_v46 = vmul.f32 %v4480_v63, %v2486_v7 }
 0x535   : > { %2567 = vrot.lane.b32.xlu1 %v2540_v42, %s4544_s20 }
 0x536   : > { %v3988_v23 = vpop.f32.mrb[46].mxu0  ;;  %2569 = vrot.lane.b32.xlu0 %v2541_v46, %s4544_s20  ;;  %v4508_v46 = vpop.eup %4507 }
 0x537   : > { %v2496_v43 = vpop.f32.mrb[47].mxu0  ;;  %v2544_v56 = vmul.f32 %v4486_v26, %v3988_v23  ;;  %v4510_v10 = vpop.eup %4509 }
 0x538   : > { %v2543_v52 = vmul.f32 %v4484_v31, %v2496_v43  ;;  %v4512_v43 = vpop.eup %4511 }
 0x539   : > { %2571 = vrot.lane.b32.xlu1 %v2542_v62, %s4544_s20  ;;  %v4514_v53 = vpop.eup %4513 }
 0x53a   : > { %v3991_v33 = vpop.f32.mrb[48].mxu0  ;;  %2573 = vrot.lane.b32.xlu0 %v2543_v52, %s4544_s20 }
 0x53b   : > { %v2506_v51 = vpop.f32.mrb[49].mxu0  ;;  %v2546_v14 = vmul.f32 %v4490_v41, %v3991_v33  ;;  %v4516_v58 = vpop.eup %4515 }
 0x53c   : > { %v2545_v22 = vmul.f32 %v4488_v37, %v2506_v51  ;;  %v4518_v33 = vpop.eup %4517 }
 0x53d   : > { %2575 = vrot.lane.b32.xlu1 %v2544_v56, %s4544_s20 }
 0x53e   : > { %2577 = vrot.lane.b32.xlu0 %v2545_v22, %s4544_s20 }
 0x53f   : > { %v3994_v55 = vpop.f32.mrb[50].mxu0 }
 0x540   : > { %v2516_v17 = vpop.f32.mrb[51].mxu0  ;;  %v2548_v0 = vmul.f32 %v4494_v5, %v3994_v55 }
 0x541   : > { %v2547_v49 = vmul.f32 %v4492_v9, %v2516_v17  ;;  %2579 = vrot.lane.b32.xlu1 %v2546_v14, %s4544_s20 }
 0x543   : > { %2581 = vrot.lane.b32.xlu0 %v2547_v49, %s4544_s20 }
 0x545   : > { %2583 = vrot.lane.b32.xlu1 %v2548_v0, %s4544_s20 }
 0x553   : > { %v4031_v28 = vpop.f32.mrb[52].mxu0 }
 0x554   : > { %v3093_v2 = vmul.f32 %v4496_v21, %v4031_v28  ;;  %v3021_v11 = vpop.f32.mrb[53].mxu0 }
 0x555   : > { %v3092_v1 = vmul.f32 %v4498_v61, %v3021_v11 }
 0x556   : > { %3118 = vrot.lane.b32.xlu1 %v3093_v2, %s4543_s19 }
 0x557   : > { %3116 = vrot.lane.b32.xlu0 %v3092_v1, %s4543_s19  ;;  %v4034_v44 = vpop.f32.mrb[54].mxu0 }
 0x558   : > { %v3095_v6 = vmul.f32 %v4500_v40, %v4034_v44  ;;  %v3031_v32 = vpop.f32.mrb[55].mxu0 }
 0x559   : > { %v3094_v48 = vmul.f32 %v4502_v47, %v3031_v32 }
 0x55a   : > { %3122 = vrot.lane.b32.xlu1 %v3095_v6, %s4543_s19 }
 0x55b   : > { %3120 = vrot.lane.b32.xlu0 %v3094_v48, %s4543_s19  ;;  %v4037_v45 = vpop.f32.mrb[56].mxu0 }
 0x55c   : > { %v3097_v63 = vmul.f32 %v4504_v20, %v4037_v45  ;;  %v3041_v42 = vpop.f32.mrb[57].mxu0 }
 0x55d   : > { %v3096_v7 = vmul.f32 %v4506_v4, %v3041_v42 }
 0x55e   : > { %3126 = vrot.lane.b32.xlu1 %v3097_v63, %s4543_s19 }
 0x55f   : > { %3124 = vrot.lane.b32.xlu0 %v3096_v7, %s4543_s19  ;;  %v4040_v39 = vpop.f32.mrb[58].mxu0 }
 0x560   : > { %v3099_v23 = vmul.f32 %v4508_v46, %v4040_v39  ;;  %v3051_v31 = vpop.f32.mrb[59].mxu0 }
 0x561   : > { %v3098_v62 = vmul.f32 %v4510_v10, %v3051_v31  ;;  %v3587_v10 = vld [vmem:[%s5633_s11] ss:$0 sm:$0xff] }
 0x562   : > { %3130 = vrot.lane.b32.xlu1 %v3099_v23, %s4543_s19 }
 0x563   : > { %3128 = vrot.lane.b32.xlu0 %v3098_v62, %s4543_s19  ;;  %v4043_v52 = vpop.f32.mrb[60].mxu0 }
 0x564   : > { %v3101_v13 = vmul.f32 %v4512_v43, %v4043_v52  ;;  %v3061_v27 = vpop.f32.mrb[61].mxu0  ;;  %v4519_v52 = vld [vmem:[%s4627_s26 + $0x8] sm:$0xff] }
 0x565   : > { %v3100_v18 = vmul.f32 %v4514_v53, %v3061_v27 }
 0x566   : > { %3134 = vrot.lane.b32.xlu1 %v3101_v13, %s4543_s19  ;;  %v4520_v13 = vld [vmem:[%s4627_s26] sm:$0xff] }
 0x567   : > { %3132 = vrot.lane.b32.xlu0 %v3100_v18, %s4543_s19  ;;  %v4046_v26 = vpop.f32.mrb[62].mxu0 }
 0x568   : > { %v3103_v16 = vmul.f32 %v4516_v58, %v4046_v26  ;;  %v3071_v37 = vpop.f32.mrb[63].mxu0 }
 0x569   : > { %v3102_v60 = vmul.f32 %v4518_v33, %v3071_v37 }
 0x56a   : > { %3138 = vrot.lane.b32.xlu1 %v3103_v16, %s4543_s19  ;;  %v4521_v16 = vld [vmem:[%s4627_s26 + $0x18] sm:$0xff] }
 0x56b   : > { %3136 = vrot.lane.b32.xlu0 %v3102_v60, %s4543_s19  ;;  %v4522_v60 = vld [vmem:[%s4627_s26 + $0x10] sm:$0xff] }
 0x583   : > { %v2009_v56 = vpop.permute.xlu1 %2008 }
 0x584   : > { %2044 = vst.msk [vmem:[#allocation2 + $0x8] sm:$0xff] %vm2042_vm4, %v2009_v56  ;;  %v2007_v51 = vpop.permute.xlu0 %2006 }
 0x585   : > { %2043 = vst.msk [vmem:[#allocation2] sm:$0xff] %vm2042_vm4, %v2007_v51 }
 0x58b   : > { %v2013_v36 = vpop.permute.xlu1 %2012 }
 0x58c   : > { %2046 = vst.msk [vmem:[#allocation2 + $0x18] sm:$0xff] %vm2042_vm4, %v2013_v36  ;;  %v2011_v22 = vpop.permute.xlu0 %2010 }
 0x58d   : > { %2045 = vst.msk [vmem:[#allocation2 + $0x10] sm:$0xff] %vm2042_vm4, %v2011_v22 }
 0x58f   : > { %v2017_v41 = vpop.permute.xlu1 %2016 }
 0x590   : > { %2048 = vst.msk [vmem:[#allocation2 + $0x28] sm:$0xff] %vm2042_vm4, %v2017_v41  ;;  %v2015_v55 = vpop.permute.xlu0 %2014 }
 0x591   : > { %2047 = vst.msk [vmem:[#allocation2 + $0x20] sm:$0xff] %vm2042_vm4, %v2015_v55  ;;  %v4523_v55 = vld [vmem:[%s4627_s26 + $0x28] sm:$0xff] }
 0x593   : > { %v2021_v9 = vpop.permute.xlu1 %2020 }
 0x594   : > { %2050 = vst.msk [vmem:[#allocation2 + $0x38] sm:$0xff] %vm2042_vm4, %v2021_v9  ;;  %v2019_v14 = vpop.permute.xlu0 %2018 }
 0x595   : > { %2049 = vst.msk [vmem:[#allocation2 + $0x30] sm:$0xff] %vm2042_vm4, %v2019_v14  ;;  %v4524_v14 = vld [vmem:[%s4627_s26 + $0x20] sm:$0xff] }
 0x597   : > { %v2025_v17 = vpop.permute.xlu1 %2024 }
 0x598   : > { %2052 = vst.msk [vmem:[#allocation2 + $0x48] sm:$0xff] %vm2042_vm4, %v2025_v17  ;;  %v2023_v49 = vpop.permute.xlu0 %2022 }
 0x599   : > { %2051 = vst.msk [vmem:[#allocation2 + $0x40] sm:$0xff] %vm2042_vm4, %v2023_v49 }
 0x59b   : > { %v2029_v34 = vpop.permute.xlu1 %2028 }
 0x59c   : > { %2054 = vst.msk [vmem:[#allocation2 + $0x58] sm:$0xff] %vm2042_vm4, %v2029_v34  ;;  %v2027_v5 = vpop.permute.xlu0 %2026 }
 0x59d   : > { %2053 = vst.msk [vmem:[#allocation2 + $0x50] sm:$0xff] %vm2042_vm4, %v2027_v5 }
 0x59f   : > { %v2564_v8 = vpop.permute.xlu1 %2563 }
 0x5a0   : > { %2599 = vst.msk [vmem:[#allocation2 + $0x8] sm:$0xff] %vm2597_vm5, %v2564_v8 }
 0x5a3   : > { %v2562_v0 = vpop.permute.xlu1 %2561 }
 0x5a4   : > { %2598 = vst.msk [vmem:[#allocation2] sm:$0xff] %vm2597_vm5, %v2562_v0  ;;  %v2566_v15 = vpop.permute.xlu0 %2565  ;;  %v4525_v0 = vld [vmem:[%s4627_s26 + $0x38] sm:$0xff] }
 0x5a5   : > { %2600 = vst.msk [vmem:[#allocation2 + $0x10] sm:$0xff] %vm2597_vm5, %v2566_v15 }
 0x5a7   : > { %v2568_v19 = vpop.permute.xlu1 %2567 }
 0x5a8   : > { %2601 = vst.msk [vmem:[#allocation2 + $0x18] sm:$0xff] %vm2597_vm5, %v2568_v19  ;;  %v2570_v30 = vpop.permute.xlu0 %2569  ;;  %v4526_v19 = vld [vmem:[%s4627_s26 + $0x30] sm:$0xff] }
 0x5a9   : > { %2602 = vst.msk [vmem:[#allocation2 + $0x20] sm:$0xff] %vm2597_vm5, %v2570_v30 }
 0x5ab   : > { %v2572_v38 = vpop.permute.xlu1 %2571 }
 0x5ac   : > { %2603 = vst.msk [vmem:[#allocation2 + $0x28] sm:$0xff] %vm2597_vm5, %v2572_v38  ;;  %v2574_v3 = vpop.permute.xlu0 %2573 }
 0x5ad   : > { %2604 = vst.msk [vmem:[#allocation2 + $0x30] sm:$0xff] %vm2597_vm5, %v2574_v3 }
 0x5af   : > { %v2576_v57 = vpop.permute.xlu1 %2575 }
 0x5b0   : > { %2605 = vst.msk [vmem:[#allocation2 + $0x38] sm:$0xff] %vm2597_vm5, %v2576_v57  ;;  %v2578_v25 = vpop.permute.xlu0 %2577 }
 0x5b1   : > { %2606 = vst.msk [vmem:[#allocation2 + $0x40] sm:$0xff] %vm2597_vm5, %v2578_v25 }
 0x5b3   : > { %v2580_v59 = vpop.permute.xlu1 %2579 }
 0x5b4   : > { %2607 = vst.msk [vmem:[#allocation2 + $0x48] sm:$0xff] %vm2597_vm5, %v2580_v59  ;;  %v4527_v59 = vld [vmem:[%s4627_s26 + $0x48] sm:$0xff] }
 0x5b5   : > { %v2582_v12 = vpop.permute.xlu0 %2581 }
 0x5b6   : > { %2608 = vst.msk [vmem:[#allocation2 + $0x50] sm:$0xff] %vm2597_vm5, %v2582_v12 }
 0x5b7   : > { %v2584_v54 = vpop.permute.xlu1 %2583 }
 0x5b8   : > { %2609 = vst.msk [vmem:[#allocation2 + $0x58] sm:$0xff] %vm2597_vm5, %v2584_v54  ;;  %v4528_v54 = vld [vmem:[%s4627_s26 + $0x40] sm:$0xff] }
 0x5c8   : > { %v3119_v21 = vpop.permute.xlu1 %3118 }
 0x5c9   : > { %3154 = vst.msk [vmem:[#allocation2 + $0x8] sm:$0xff] %vm3152_vm6, %v3119_v21  ;;  %v3117_v28 = vpop.permute.xlu0 %3116 }
 0x5ca   : > { %3153 = vst.msk [vmem:[#allocation2] sm:$0xff] %vm3152_vm6, %v3117_v28 }
 0x5cc   : > { %v3123_v61 = vpop.permute.xlu1 %3122 }
 0x5cd   : > { %3156 = vst.msk [vmem:[#allocation2 + $0x18] sm:$0xff] %vm3152_vm6, %v3123_v61  ;;  %v3121_v50 = vpop.permute.xlu0 %3120 }
 0x5ce   : > { %3155 = vst.msk [vmem:[#allocation2 + $0x10] sm:$0xff] %vm3152_vm6, %v3121_v50 }
 0x5d0   : > { %v3127_v2 = vpop.permute.xlu1 %3126  ;;  %v3166_v1 = vld [vmem:[#allocation2 + $0x8] sm:$0xff] }
 0x5d1   : > { %3158 = vst.msk [vmem:[#allocation2 + $0x28] sm:$0xff] %vm3152_vm6, %v3127_v2  ;;  %v3125_v11 = vpop.permute.xlu0 %3124  ;;  %v3165_v35 = vld [vmem:[#allocation2] sm:$0xff] }
 0x5d2   : > { %3157 = vst.msk [vmem:[#allocation2 + $0x20] sm:$0xff] %vm3152_vm6, %v3125_v11  ;;  %4063 = vmatprep.mubr.msk.f32.mxu1 %vm452_vm0, %v3165_v35  ;;  %v4529_v11 = vld [vmem:[%s4627_s26 + $0x58] sm:$0xff] }
 0x5d3   : > { %4064 = vmatmul.mubr.msk.f32.vlgmr.msra.gmra.mrb[48].mxu1 %vm452_vm0, %v3166_v1  ;;  %v4530_v1 = vld [vmem:[%s4627_s26 + $0x50] sm:$0xff] }
 0x5d4   : > { %v3131_v40 = vpop.permute.xlu1 %3130  ;;  %v3168_v6 = vld [vmem:[#allocation2 + $0x18] sm:$0xff] }
 0x5d5   : > { %3160 = vst.msk [vmem:[#allocation2 + $0x38] sm:$0xff] %vm3152_vm6, %v3131_v40  ;;  %v3129_v44 = vpop.permute.xlu0 %3128  ;;  %v3167_v47 = vld [vmem:[#allocation2 + $0x10] sm:$0xff] }
 0x5d6   : > { %3159 = vst.msk [vmem:[#allocation2 + $0x30] sm:$0xff] %vm3152_vm6, %v3129_v44  ;;  %4066 = vmatprep.mubr.msk.f32.mxu1 %vm452_vm0, %v3167_v47 }
 0x5d7   : > { %4067 = vmatmul.mubr.msk.f32.gmra.mrb[50].mxu1 %vm452_vm0, %v3168_v6 }
 0x5d8   : > { %v3135_v32 = vpop.permute.xlu1 %3134  ;;  %v3170_v20 = vld [vmem:[#allocation2 + $0x28] sm:$0xff] }
 0x5d9   : > { %3162 = vst.msk [vmem:[#allocation2 + $0x48] sm:$0xff] %vm3152_vm6, %v3135_v32  ;;  %v3133_v48 = vpop.permute.xlu0 %3132  ;;  %v3169_v24 = vld [vmem:[#allocation2 + $0x20] sm:$0xff] }
 0x5da   : > { %3161 = vst.msk [vmem:[#allocation2 + $0x40] sm:$0xff] %vm3152_vm6, %v3133_v48  ;;  %4069 = vmatprep.mubr.msk.f32.mxu1 %vm452_vm0, %v3169_v24 }
 0x5db   : > { %4070 = vmatmul.mubr.msk.f32.gmra.mrb[52].mxu1 %vm452_vm0, %v3170_v20 }
 0x5dc   : > { %v3139_v29 = vpop.permute.xlu1 %3138  ;;  %v3172_v63 = vld [vmem:[#allocation2 + $0x38] sm:$0xff] }
 0x5dd   : > { %3164 = vst.msk [vmem:[#allocation2 + $0x58] sm:$0xff] %vm3152_vm6, %v3139_v29  ;;  %v3137_v45 = vpop.permute.xlu0 %3136  ;;  %v3171_v4 = vld [vmem:[#allocation2 + $0x30] sm:$0xff] }
 0x5de   : > { %3163 = vst.msk [vmem:[#allocation2 + $0x50] sm:$0xff] %vm3152_vm6, %v3137_v45  ;;  %4072 = vmatprep.mubr.msk.f32.mxu1 %vm452_vm0, %v3171_v4 }
 0x5df   : > { %4073 = vmatmul.mubr.msk.f32.gmra.mrb[54].mxu1 %vm452_vm0, %v3172_v63 }
 0x5e0   : > { %v3174_v7 = vld [vmem:[#allocation2 + $0x48] sm:$0xff] }
 0x5e1   : > { %v3173_v42 = vld [vmem:[#allocation2 + $0x40] sm:$0xff] }
 0x5e2   : > { %4075 = vmatprep.mubr.msk.f32.mxu1 %vm452_vm0, %v3173_v42 }
 0x5e3   : > { %4076 = vmatmul.mubr.msk.f32.gmra.mrb[56].mxu1 %vm452_vm0, %v3174_v7 }
 0x5e4   : > { %v3176_v39 = vld [vmem:[#allocation2 + $0x58] sm:$0xff] }
 0x5e5   : > { %v3175_v46 = vld [vmem:[#allocation2 + $0x50] sm:$0xff] }
 0x5e6   : > { %4078 = vmatprep.mubr.msk.f32.mxu1 %vm452_vm0, %v3175_v46 }
 0x5e7   : > { %4079 = vmatmul.mubr.msk.f32.gmra.mrb[58].mxu1 %vm452_vm0, %v3176_v39 }
 0x6a6   : > { %v4065_v23 = vpop.f32.mrb[48].mxu1 }
 0x6a7   : > { %v3300_v31 = vadd.f32 %v4065_v23, %v3587_v10  ;;  %v3294_v62 = vpop.f32.mrb[49].mxu1 }
 0x6a8   : > { %v3295_v43 = vadd.f32 %v3587_v10, %v3294_v62 }
 0x6a9   : > { %v3354_v53 = vadd.f32 %v4519_v52, %v3300_v31 }
 0x6aa   : > { %v3353_v27 = vadd.f32 %v4520_v13, %v3295_v43  ;;  %v4068_v18 = vpop.f32.mrb[50].mxu1 }
 0x6ab   : > { %3366 = vst.msk [vmem:[%s5581_s14 + $0x8] sm:$0xff] %vm452_vm0, %v3354_v53  ;;  %v3310_v58 = vadd.f32 %v4068_v18, %v3587_v10  ;;  %v3304_v26 = vpop.f32.mrb[51].mxu1 }
 0x6ac   : > { %3365 = vst.msk [vmem:[%s5581_s14] sm:$0xff] %vm452_vm0, %v3353_v27  ;;  %v3305_v33 = vadd.f32 %v3587_v10, %v3304_v26 }
 0x6ad   : > { %v3356_v37 = vadd.f32 %v4521_v16, %v3310_v58 }
 0x6ae   : > { %v3355_v56 = vadd.f32 %v4522_v60, %v3305_v33  ;;  %v4071_v51 = vpop.f32.mrb[52].mxu1 }
 0x6af   : > { %3368 = vst.msk [vmem:[%s5581_s14 + $0x18] sm:$0xff] %vm452_vm0, %v3356_v37  ;;  %v3320_v36 = vadd.f32 %v4071_v51, %v3587_v10  ;;  %v3314_v22 = vpop.f32.mrb[53].mxu1 }
 0x6b0   : > { %3367 = vst.msk [vmem:[%s5581_s14 + $0x10] sm:$0xff] %vm452_vm0, %v3355_v56  ;;  %v3315_v41 = vadd.f32 %v3587_v10, %v3314_v22 }
 0x6b1   : > { %v3358_v9 = vadd.f32 %v4523_v55, %v3320_v36 }
 0x6b2   : > { %v3357_v17 = vadd.f32 %v4524_v14, %v3315_v41  ;;  %v4074_v49 = vpop.f32.mrb[54].mxu1 }
 0x6b3   : > { %3370 = vst.msk [vmem:[%s5581_s14 + $0x28] sm:$0xff] %vm452_vm0, %v3358_v9  ;;  %v3330_v34 = vadd.f32 %v4074_v49, %v3587_v10  ;;  %v3324_v5 = vpop.f32.mrb[55].mxu1 }
 0x6b4   : > { %3369 = vst.msk [vmem:[%s5581_s14 + $0x20] sm:$0xff] %vm452_vm0, %v3357_v17  ;;  %v3325_v8 = vadd.f32 %v3587_v10, %v3324_v5 }
 0x6b5   : > { %v3360_v15 = vadd.f32 %v4525_v0, %v3330_v34 }
 0x6b6   : > { %v3359_v30 = vadd.f32 %v4526_v19, %v3325_v8  ;;  %v4077_v38 = vpop.f32.mrb[56].mxu1 }
 0x6b7   : > { %3372 = vst.msk [vmem:[%s5581_s14 + $0x38] sm:$0xff] %vm452_vm0, %v3360_v15  ;;  %v3340_v3 = vadd.f32 %v4077_v38, %v3587_v10  ;;  %v3334_v57 = vpop.f32.mrb[57].mxu1 }
 0x6b8   : > { %3371 = vst.msk [vmem:[%s5581_s14 + $0x30] sm:$0xff] %vm452_vm0, %v3359_v30  ;;  %v3335_v25 = vadd.f32 %v3587_v10, %v3334_v57 }
 0x6b9   : > { %v3362_v12 = vadd.f32 %v4527_v59, %v3340_v3 }
 0x6ba   : > { %v3361_v21 = vadd.f32 %v4528_v54, %v3335_v25  ;;  %v4080_v28 = vpop.f32.mrb[58].mxu1 }
 0x6bb   : > { %3374 = vst.msk [vmem:[%s5581_s14 + $0x48] sm:$0xff] %vm452_vm0, %v3362_v12  ;;  %v3350_v61 = vadd.f32 %v4080_v28, %v3587_v10  ;;  %v3344_v50 = vpop.f32.mrb[59].mxu1 }
 0x6bc   : > { %3373 = vst.msk [vmem:[%s5581_s14 + $0x40] sm:$0xff] %vm452_vm0, %v3361_v21  ;;  %v3345_v2 = vadd.f32 %v3587_v10, %v3344_v50 }
 0x6bd   : > { %v3364_v35 = vadd.f32 %v4529_v11, %v3350_v61 }
 0x6be   : > { %v3363_v40 = vadd.f32 %v4530_v1, %v3345_v2 }
 0x6bf   : > { %3376 = vst.msk [vmem:[%s5581_s14 + $0x58] sm:$0xff] %vm452_vm0, %v3364_v35 }
 0x6c0   : > { %3375 = vst.msk [vmem:[%s5581_s14 + $0x50] sm:$0xff] %vm452_vm0, %v3363_v40 }
 0x6c1 PF: > { %s22_s21 = sadd.s32 1, %s4537_s21  }
 0x6c2   : > { %p19_p4 = scmp.ge.s32.totalorder %s22_s21, 4  }
 0x6c4   :  { %21 = sbr.rel (!%p19_p4) target bundleno = 1 (0x1), region = 101 }

</bundles_post_ra>
